<compile_context>
chip_gen: v7x
topology: tpu7x:2x2x1
jax: 0.10.0
libtpu: 0.0.40
codegen_flags: <defaults>
</compile_context>

<pallas_src>
import functools

import jax
import jax.numpy as jnp
from jax.experimental import pallas as pl
from jax.experimental.pallas import tpu as pltpu

# Working sets here are tiny; 64 MiB leaves headroom for bigger tiles on
# v5e/v6e while staying within v7x's 64 MiB physical VMEM.
_VMEM_LIMIT = 64 * 1024 * 1024


# ----------------------------- Pallas kernels ------------------------------ #

def _conv_stats_kernel(w_ref, a_ref, y_ref, s_ref):
    """One (phase, M-tile) step of the conv-as-matmul.

    w_ref: [1, Cout, K] bf16  phase weight
    a_ref: [1, K, TM]   bf16  phase im2col tile (M = N*H*W is the lane axis)
    y_ref: [1, Cout, TM] bf16 pre-BN activation (lane-dense)
    s_ref: [1, Cout, 2] f32   per-tile sum / sum-of-squares for exact BN stats
    """
    y = jnp.dot(w_ref[0], a_ref[0], preferred_element_type=jnp.float32)
    y_ref[0] = y.astype(y_ref.dtype)
    ssum = jnp.sum(y, axis=1, keepdims=True)
    ssq = jnp.sum(y * y, axis=1, keepdims=True)
    s_ref[0] = jnp.concatenate([ssum, ssq], axis=1)


def _bn_relu_kernel(y_ref, scale_ref, shift_ref, o_ref):
    # y_ref: [1, Cout, TM] bf16; scale/shift: [Cout, 1] f32 (broadcast on lanes)
    y = y_ref[0].astype(jnp.float32)
    o_ref[0] = jnp.maximum(y * scale_ref[...] + shift_ref[...], 0.0).astype(o_ref.dtype)


def _conv_bias_tanh_kernel(w_ref, a_ref, b_ref, o_ref):
    y = jnp.dot(w_ref[0], a_ref[0], preferred_element_type=jnp.float32)
    o_ref[0] = jnp.tanh(y + b_ref[...])


def _self_attn_kernel(x_ref, wqkv_ref, bqkv_ref, g_ref, o_ref, *, cq):
    """SAGAN self-attention for one batch element, channel-major [C, HW]."""
    x = x_ref[...]                                                     # bf16
    qkv = jnp.dot(wqkv_ref[...], x, preferred_element_type=jnp.float32)
    qkv = qkv + bqkv_ref[...]
    q = qkv[:cq].astype(jnp.bfloat16)        # [cq, HW]
    k = qkv[cq:2 * cq].astype(jnp.bfloat16)  # [cq, HW]
    v = qkv[2 * cq:].astype(jnp.bfloat16)    # [C,  HW]
    # energy[i, j] = sum_c q[c, i] * k[c, j]   (no materialized transpose)
    energy = jax.lax.dot_general(q, k, (((0,), (0,)), ((), ())),
                                 preferred_element_type=jnp.float32)   # [HW, HW]
    energy = energy - jnp.max(energy, axis=-1, keepdims=True)
    p = jnp.exp(energy)
    attn = p * pl.reciprocal(jnp.sum(p, axis=-1, keepdims=True), approx=True)
    # out[c, i] = sum_j v[c, j] * attn[i, j]
    out = jax.lax.dot_general(v, attn.astype(jnp.bfloat16), (((1,), (1,)), ((), ())),
                              preferred_element_type=jnp.float32)      # [C, HW]
    o_ref[...] = (g_ref[0, 0] * out + x.astype(jnp.float32)).astype(o_ref.dtype)


# ----------------------------- host-side glue ------------------------------ #

def _pick_tile(m, target=512):
    """Largest divisor of m that is <= target and a multiple of 128, else m."""
    if m <= target:
        return m
    t = min(target, m)
    while t >= 128:
        if m % t == 0 and t % 128 == 0:
            return t
        t -= 128
    return m


def _phase_im2col(x_cm):
    """Sub-pixel decomposition for stride-2, k=4, pad=1 ConvTranspose2d.

    x_cm: [Cin, N, H, W]  ->  A: [4, Cin*4, N*H*W]   (no zero-stuffing).
    Phase p = py*2 + px produces output pixels (2m+py, 2n+px)."""
    Cin, N, H, W = x_cm.shape
    xp = jnp.pad(x_cm, ((0, 0), (0, 0), (1, 1), (1, 1)))
    rows = []
    for py in range(2):
        for px in range(2):
            taps = [xp[:, :, py + dy: py + dy + H, px + dx: px + dx + W]
                    for dy in range(2) for dx in range(2)]
            a = jnp.stack(taps, axis=1)                  # [Cin, 4, N, H, W]
            rows.append(a.reshape(Cin * 4, N * H * W))
    return jnp.stack(rows, axis=0), (N, H, W)            # [4, Cin*4, M]


def _phase_wmat(w):
    """ConvTranspose2d weight [Cin, Cout, 4, 4] -> phase matmul weights
    [4, Cout, Cin*4], column order (ci, dy, dx) matching _phase_im2col."""
    Cin, Cout, _, _ = w.shape
    mats = []
    for py in range(2):
        for px in range(2):
            taps = jnp.stack([w[:, :, 3 - py - 2 * dy, 3 - px - 2 * dx]
                              for dy in range(2) for dx in range(2)], axis=1)  # [Cin,4,Cout]
            mats.append(jnp.transpose(taps, (2, 0, 1)).reshape(Cout, Cin * 4))
    return jnp.stack(mats, axis=0)                        # [4, Cout, Cin*4]


def _full_im2col(x_cm, k, pad):
    """Generic stride-1 transposed conv: pad by k-1-pad, full kxk window."""
    Cin, N, H, W = x_cm.shape
    pp = k - 1 - pad
    xp = jnp.pad(x_cm, ((0, 0), (0, 0), (pp, pp), (pp, pp)))
    OH, OW = H + 2 * pp - k + 1, W + 2 * pp - k + 1
    taps = [xp[:, :, j: j + OH, i: i + OW] for j in range(k) for i in range(k)]
    a = jnp.stack(taps, axis=1).reshape(Cin * k * k, N * OH * OW)
    return a[None], (N, OH, OW)                           # [1, Cin*k*k, M]


def _full_wmat(w):
    # [Cin, Cout, k, k] -> [1, Cout, Cin*k*k] with spatial flip (correlation form)
    Cin, Cout, k, _ = w.shape
    wf = w[:, :, ::-1, ::-1]
    return jnp.transpose(wf, (1, 0, 2, 3)).reshape(Cout, Cin * k * k)[None]


def _phase_to_cm(y, shp):
    # y: [4, Cout, N*H*W] -> channel-major [Cout, N, 2H, 2W]
    N, H, W = shp
    Cout = y.shape[1]
    t = y.reshape(2, 2, Cout, N, H, W)
    t = jnp.transpose(t, (2, 3, 4, 0, 5, 1))              # [Cout, N, H, 2, W, 2]
    return t.reshape(Cout, N, 2 * H, 2 * W)


def _flat_to_cm(y, shp):
    # y: [1, Cout, N*OH*OW] -> [Cout, N, OH, OW]
    N, OH, OW = shp
    return y.reshape(y.shape[1], N, OH, OW)


def conv_t_bn_relu(x_cm, w, gamma, beta, *, stride, pad):
    """ConvTranspose2d(bias=False) + BatchNorm2d(batch stats) + ReLU.
    x_cm: [Cin, N, H, W] bf16 channel-major -> [Cout, N, OH, OW] bf16."""
    Cin, Cout, k, _ = w.shape
    if stride == 2:
        a, shp = _phase_im2col(x_cm)
        wm = _phase_wmat(w)
    else:
        a, shp = _full_im2col(x_cm, k, pad)
        wm = _full_wmat(w)
    a = a.astype(jnp.bfloat16)
    wm = wm.astype(jnp.bfloat16)
    P, K, M = a.shape
    tm = _pick_tile(M)
    nt = M // tm
    total = P * M                                          # = N * OH * OW

    y, stats = pl.pallas_call(
        _conv_stats_kernel,
        out_shape=(jax.ShapeDtypeStruct((P, Cout, M), jnp.bfloat16),
                   jax.ShapeDtypeStruct((P * nt, Cout, 2), jnp.float32)),
        grid=(P, nt),
        in_specs=[pl.BlockSpec((1, Cout, K), lambda p, i: (p, 0, 0)),
                  pl.BlockSpec((1, K, tm), lambda p, i: (p, 0, i))],
        out_specs=(pl.BlockSpec((1, Cout, tm), lambda p, i: (p, 0, i)),
                   pl.BlockSpec((1, Cout, 2), lambda p, i: (p * nt + i, 0, 0))),
        compiler_params=pltpu.CompilerParams(
            dimension_semantics=("parallel", "parallel"),
            vmem_limit_bytes=_VMEM_LIMIT),
    )(wm, a)

    # Exact batch statistics over all N*OH*OW positions per channel (f32).
    s = jnp.sum(stats, axis=0)                             # [Cout, 2]
    mean = s[:, 0] / total
    var = jnp.maximum(s[:, 1] / total - mean * mean, 0.0)  # biased, as BatchNorm
    scale = gamma * jax.lax.rsqrt(var + 1e-5)
    shift = beta - mean * scale

    out = pl.pallas_call(
        _bn_relu_kernel,
        out_shape=jax.ShapeDtypeStruct((P, Cout, M), jnp.bfloat16),
        grid=(P, nt),
        in_specs=[pl.BlockSpec((1, Cout, tm), lambda p, i: (p, 0, i)),
                  pl.BlockSpec((Cout, 1), lambda p, i: (0, 0)),
                  pl.BlockSpec((Cout, 1), lambda p, i: (0, 0))],
        out_specs=pl.BlockSpec((1, Cout, tm), lambda p, i: (p, 0, i)),
        compiler_params=pltpu.CompilerParams(
            dimension_semantics=("parallel", "parallel"),
            vmem_limit_bytes=_VMEM_LIMIT),
    )(y, scale.reshape(Cout, 1), shift.reshape(Cout, 1))

    return _phase_to_cm(out, shp) if stride == 2 else _flat_to_cm(out, shp)


def conv_t_tanh(x_cm, w, bias, *, stride, pad):
    """Final ConvTranspose2d (bias=True) + Tanh, stride-2 phase path."""
    Cin, Cout, k, _ = w.shape
    a, shp = _phase_im2col(x_cm)
    wm = _phase_wmat(w).astype(jnp.bfloat16)
    a = a.astype(jnp.bfloat16)
    P, K, M = a.shape
    tm = _pick_tile(M)
    nt = M // tm

    out = pl.pallas_call(
        _conv_bias_tanh_kernel,
        out_shape=jax.ShapeDtypeStruct((P, Cout, M), jnp.float32),
        grid=(P, nt),
        in_specs=[pl.BlockSpec((1, Cout, K), lambda p, i: (p, 0, 0)),
                  pl.BlockSpec((1, K, tm), lambda p, i: (p, 0, i)),
                  pl.BlockSpec((Cout, 1), lambda p, i: (0, 0))],
        out_specs=pl.BlockSpec((1, Cout, tm), lambda p, i: (p, 0, i)),
        compiler_params=pltpu.CompilerParams(
            dimension_semantics=("parallel", "parallel"),
            vmem_limit_bytes=_VMEM_LIMIT),
    )(wm, a, bias.reshape(Cout, 1).astype(jnp.float32))
    return _phase_to_cm(out, shp)                          # [Cout, N, 2H, 2W] f32


def self_attention(x_cm, wqkv, bqkv, gamma):
    """SAGAN self-attention on channel-major activations x_cm: [C, N, H, W]."""
    C, N, H, W = x_cm.shape
    hw = H * W
    x_flat = x_cm.reshape(C, N * hw).astype(jnp.bfloat16)
    rows = wqkv.shape[0]
    cq = (rows - C) // 2
    out = pl.pallas_call(
        functools.partial(_self_attn_kernel, cq=cq),
        out_shape=jax.ShapeDtypeStruct((C, N * hw), jnp.bfloat16),
        grid=(N,),
        in_specs=[pl.BlockSpec((C, hw), lambda b: (0, b)),
                  pl.BlockSpec((rows, C), lambda b: (0, 0)),
                  pl.BlockSpec((rows, 1), lambda b: (0, 0)),
                  pl.BlockSpec(memory_space=pltpu.MemorySpace.SMEM)],
        out_specs=pl.BlockSpec((C, hw), lambda b: (0, b)),
        compiler_params=pltpu.CompilerParams(
            dimension_semantics=("parallel",),
            vmem_limit_bytes=_VMEM_LIMIT),
    )(x_flat, wqkv.astype(jnp.bfloat16), bqkv.astype(jnp.float32), gamma)
    return out.reshape(C, N, H, W)


# ----------------------------- generator model ----------------------------- #

def init_params(key, channels_noise, channels_img, features_g):
    fg = features_g
    block_defs = [(channels_noise, fg * 16),
                  (fg * 16, fg * 8),
                  (fg * 8, fg * 4),
                  (fg * 4, fg * 2)]
    keys = iter(jax.random.split(key, 32))
    blocks = []
    for cin, cout in block_defs:
        w = 0.05 * jax.random.normal(next(keys), (cin, cout, 4, 4), jnp.float32)
        g = 1.0 + 0.1 * jax.random.normal(next(keys), (cout,), jnp.float32)
        b = 0.1 * jax.random.normal(next(keys), (cout,), jnp.float32)
        blocks.append((w, g, b))

    # SelfAttention (SAGAN-style assumed: 1x1 q/k/v convs, softmax over keys,
    # gamma*out + x).  q/k/v weights are packed into one fused projection.
    c_attn = fg * 4
    cq = max(c_attn // 8, 1)
    wq = 0.1 * jax.random.normal(next(keys), (cq, c_attn), jnp.float32)
    bq = 0.1 * jax.random.normal(next(keys), (cq, 1), jnp.float32)
    wk = 0.1 * jax.random.normal(next(keys), (cq, c_attn), jnp.float32)
    bk = 0.1 * jax.random.normal(next(keys), (cq, 1), jnp.float32)
    wv = 0.1 * jax.random.normal(next(keys), (c_attn, c_attn), jnp.float32)
    bv = 0.1 * jax.random.normal(next(keys), (c_attn, 1), jnp.float32)
    wqkv = jnp.concatenate([wq, wk, wv], axis=0)          # [2*cq + C, C]
    bqkv = jnp.concatenate([bq, bk, bv], axis=0)          # [2*cq + C, 1]
    gamma = jnp.full((1, 1), 0.5, jnp.float32)            # nonzero so attn path matters
    attn = (wqkv, bqkv, gamma)

    w_final = 0.05 * jax.random.normal(next(keys), (fg * 2, channels_img, 4, 4),
                                       jnp.float32)
    b_final = 0.05 * jax.random.normal(next(keys), (channels_img,), jnp.float32)
    return tuple(blocks), attn, (w_final, b_final)


@jax.jit
def generator_forward(x, params):
    blocks, attn, (w_final, b_final) = params
    # NCHW -> channel-major [C, N, H, W]; bf16 activations end-to-end.
    xc = jnp.transpose(x, (1, 0, 2, 3)).astype(jnp.bfloat16)

    xc = conv_t_bn_relu(xc, *blocks[0], stride=1, pad=0)        # 1x1   -> 4x4
    xc = conv_t_bn_relu(xc, *blocks[1], stride=2, pad=1)        # 4x4   -> 8x8
    xc = conv_t_bn_relu(xc, *blocks[2], stride=2, pad=1)        # 8x8   -> 16x16
    xc = self_attention(xc, *attn)                              # 16x16 (SAGAN)
    xc = conv_t_bn_relu(xc, *blocks[3], stride=2, pad=1)        # 16x16 -> 32x32
    out = conv_t_tanh(xc, w_final, b_final, stride=2, pad=1)    # 32x32 -> 64x64
    return jnp.transpose(out, (1, 0, 2, 3))                     # back to NCHW, f32


if __name__ == "__main__":
    channels_noise, channels_img, features_g = 8, 3, 4
    batch = 2

    key = jax.random.PRNGKey(0)
    k_param, k_x = jax.random.split(key)
    params = init_params(k_param, channels_noise, channels_img, features_g)
    x = jax.random.normal(k_x, (batch, channels_noise, 1, 1), jnp.float32)

    out = generator_forward(x, params)
    out = jax.block_until_ready(out)

    assert out.shape == (batch, channels_img, 64, 64), out.shape
    assert bool(jnp.all(jnp.isfinite(out)))
    print("KERNEL_OK")
</pallas_src>

<mosaic_0001>
module attributes {stable_mosaic.version = 11 : i64} {
  func.func @_conv_stats_kernel(%arg0: i32, %arg1: i32, %arg2: memref<1x64x128xbf16, #tpu.memory_space<vmem>>, %arg3: memref<1x128x32xbf16, #tpu.memory_space<vmem>>, %arg4: memref<1x64x32xbf16, #tpu.memory_space<vmem>>, %arg5: memref<1x64x2xf32, #tpu.memory_space<vmem>>) attributes {dimension_semantics = [#tpu.dimension_semantics<parallel>, #tpu.dimension_semantics<parallel>], iteration_bounds = array<i64: 1, 1>, scalar_prefetch = 0 : i64, scratch_operands = 0 : i64, tpu.core_type = #tpu.core_type<tc>, window_params = [{transform_indices = @transform_0, window_bounds = array<i64: 1, 64, 128>}, {transform_indices = @transform_1, window_bounds = array<i64: 1, 128, 32>}, {transform_indices = @transform_2, window_bounds = array<i64: 1, 64, 32>}, {transform_indices = @transform_3, window_bounds = array<i64: 1, 64, 2>}]} {
    %c0 = arith.constant 0 : index
    %c0_0 = arith.constant 0 : index
    %c0_1 = arith.constant 0 : index
    %0 = vector.load %arg2[%c0, %c0_0, %c0_1] : memref<1x64x128xbf16, #tpu.memory_space<vmem>>, vector<1x64x128xbf16>
    %1 = vector.shape_cast %0 : vector<1x64x128xbf16> to vector<64x128xbf16>
    %c0_2 = arith.constant 0 : index
    %c0_3 = arith.constant 0 : index
    %c0_4 = arith.constant 0 : index
    %2 = vector.load %arg3[%c0_2, %c0_3, %c0_4] : memref<1x128x32xbf16, #tpu.memory_space<vmem>>, vector<1x128x32xbf16>
    %3 = vector.shape_cast %2 : vector<1x128x32xbf16> to vector<128x32xbf16>
    %cst = arith.constant dense<0.000000e+00> : vector<64x32xf32>
    %4 = tpu.matmul %1, %3, %cst {dimension_numbers = #tpu.dot_dimension_numbers<[1], [0], [0], [1], [0, 0, 1, 1], [], []>} : vector<64x128xbf16>, vector<128x32xbf16>, vector<64x32xf32> -> vector<64x32xf32>
    %5 = arith.truncf %4 : vector<64x32xf32> to vector<64x32xbf16>
    %c0_5 = arith.constant 0 : index
    %c0_6 = arith.constant 0 : index
    %c0_7 = arith.constant 0 : index
    %6 = vector.load %arg4[%c0_5, %c0_6, %c0_7] : memref<1x64x32xbf16, #tpu.memory_space<vmem>>, vector<1x64x32xbf16>
    %7 = vector.shape_cast %6 : vector<1x64x32xbf16> to vector<64x32xbf16>
    %8 = vector.shape_cast %5 : vector<64x32xbf16> to vector<1x64x32xbf16>
    tpu.vector_store %arg4[%c0_5, %c0_6, %c0_7], %8 {strides = array<i32>} : memref<1x64x32xbf16, #tpu.memory_space<vmem>>, vector<1x64x32xbf16>,
    %cst_8 = arith.constant dense<0.000000e+00> : vector<64xf32>
    %9 = vector.multi_reduction <add>, %4, %cst_8 [1] : vector<64x32xf32> to vector<64xf32>
    %10 = vector.shape_cast %9 : vector<64xf32> to vector<64x1xf32>
    %11 = arith.mulf %4, %4 : vector<64x32xf32>
    %cst_9 = arith.constant dense<0.000000e+00> : vector<64xf32>
    %12 = vector.multi_reduction <add>, %11, %cst_9 [1] : vector<64x32xf32> to vector<64xf32>
    %13 = vector.shape_cast %12 : vector<64xf32> to vector<64x1xf32>
    %14 = tpu.concatenate %10, %13 in 1 : vector<64x1xf32>, vector<64x1xf32> -> vector<64x2xf32>
    %c0_10 = arith.constant 0 : index
    %c0_11 = arith.constant 0 : index
    %c0_12 = arith.constant 0 : index
    %15 = vector.load %arg5[%c0_10, %c0_11, %c0_12] : memref<1x64x2xf32, #tpu.memory_space<vmem>>, vector<1x64x2xf32>
    %16 = vector.shape_cast %15 : vector<1x64x2xf32> to vector<64x2xf32>
    %17 = vector.shape_cast %14 : vector<64x2xf32> to vector<1x64x2xf32>
    tpu.vector_store %arg5[%c0_10, %c0_11, %c0_12], %17 {strides = array<i32>} : memref<1x64x2xf32, #tpu.memory_space<vmem>>, vector<1x64x2xf32>,
    return
  }
  func.func @transform_0(%arg0: i32, %arg1: i32) -> (i32, i32, i32) {
    %c0_i32 = arith.constant 0 : i32
    %c0_i32_0 = arith.constant 0 : i32
    %c0_i32_1 = arith.constant 0 : i32
    return %arg0, %c0_i32, %c0_i32_0 : i32, i32, i32
  }
  func.func @transform_1(%arg0: i32, %arg1: i32) -> (i32, i32, i32) {
    %c0_i32 = arith.constant 0 : i32
    %c0_i32_0 = arith.constant 0 : i32
    return %arg0, %c0_i32, %arg1 : i32, i32, i32
  }
  func.func @transform_2(%arg0: i32, %arg1: i32) -> (i32, i32, i32) {
    %c0_i32 = arith.constant 0 : i32
    %c0_i32_0 = arith.constant 0 : i32
    return %arg0, %c0_i32, %arg1 : i32, i32, i32
  }
  func.func @transform_3(%arg0: i32, %arg1: i32) -> (i32, i32, i32) {
    %c1_i32 = arith.constant 1 : i32
    %0 = arith.muli %arg0, %c1_i32 : i32
    %1 = arith.addi %0, %arg1 : i32
    %c0_i32 = arith.constant 0 : i32
    %c0_i32_0 = arith.constant 0 : i32
    %c0_i32_1 = arith.constant 0 : i32
    return %1, %c0_i32, %c0_i32_0 : i32, i32, i32
  }
}

module attributes {stable_mosaic.version = 11 : i64} {
  func.func @_bn_relu_kernel(%arg0: i32, %arg1: i32, %arg2: memref<1x64x32xbf16, #tpu.memory_space<vmem>>, %arg3: memref<64x1xf32, #tpu.memory_space<vmem>>, %arg4: memref<64x1xf32, #tpu.memory_space<vmem>>, %arg5: memref<1x64x32xbf16, #tpu.memory_space<vmem>>) attributes {dimension_semantics = [#tpu.dimension_semantics<parallel>, #tpu.dimension_semantics<parallel>], iteration_bounds = array<i64: 1, 1>, scalar_prefetch = 0 : i64, scratch_operands = 0 : i64, tpu.core_type = #tpu.core_type<tc>, window_params = [{transform_indices = @transform_0, window_bounds = array<i64: 1, 64, 32>}, {pipeline_mode = #tpu.pipeline_mode<synchronous>, transform_indices = @transform_1, window_bounds = array<i64: 64, 1>}, {pipeline_mode = #tpu.pipeline_mode<synchronous>, transform_indices = @transform_2, window_bounds = array<i64: 64, 1>}, {transform_indices = @transform_3, window_bounds = array<i64: 1, 64, 32>}]} {
    %c0 = arith.constant 0 : index
    %c0_0 = arith.constant 0 : index
    %c0_1 = arith.constant 0 : index
    %0 = vector.load %arg2[%c0, %c0_0, %c0_1] : memref<1x64x32xbf16, #tpu.memory_space<vmem>>, vector<1x64x32xbf16>
    %1 = vector.shape_cast %0 : vector<1x64x32xbf16> to vector<64x32xbf16>
    %2 = arith.extf %1 : vector<64x32xbf16> to vector<64x32xf32>
    %c0_2 = arith.constant 0 : index
    %c0_3 = arith.constant 0 : index
    %3 = vector.load %arg3[%c0_2, %c0_3] : memref<64x1xf32, #tpu.memory_space<vmem>>, vector<64x1xf32>
    %4 = vector.broadcast %3 : vector<64x1xf32> to vector<64x32xf32>
    %5 = arith.mulf %2, %4 : vector<64x32xf32>
    %c0_4 = arith.constant 0 : index
    %c0_5 = arith.constant 0 : index
    %6 = vector.load %arg4[%c0_4, %c0_5] : memref<64x1xf32, #tpu.memory_space<vmem>>, vector<64x1xf32>
    %7 = vector.broadcast %6 : vector<64x1xf32> to vector<64x32xf32>
    %8 = arith.addf %5, %7 : vector<64x32xf32>
    %cst = arith.constant 0.000000e+00 : f32
    %9 = vector.broadcast %cst : f32 to vector<64x32xf32>
    %10 = arith.maximumf %8, %9 : vector<64x32xf32>
    %11 = arith.truncf %10 : vector<64x32xf32> to vector<64x32xbf16>
    %c0_6 = arith.constant 0 : index
    %c0_7 = arith.constant 0 : index
    %c0_8 = arith.constant 0 : index
    %12 = vector.load %arg5[%c0_6, %c0_7, %c0_8] : memref<1x64x32xbf16, #tpu.memory_space<vmem>>, vector<1x64x32xbf16>
    %13 = vector.shape_cast %12 : vector<1x64x32xbf16> to vector<64x32xbf16>
    %14 = vector.shape_cast %11 : vector<64x32xbf16> to vector<1x64x32xbf16>
    tpu.vector_store %arg5[%c0_6, %c0_7, %c0_8], %14 {strides = array<i32>} : memref<1x64x32xbf16, #tpu.memory_space<vmem>>, vector<1x64x32xbf16>,
    return
  }
  func.func @transform_0(%arg0: i32, %arg1: i32) -> (i32, i32, i32) {
    %c0_i32 = arith.constant 0 : i32
    %c0_i32_0 = arith.constant 0 : i32
    return %arg0, %c0_i32, %arg1 : i32, i32, i32
  }
  func.func @transform_1(%arg0: i32, %arg1: i32) -> (i32, i32) {
    %c0_i32 = arith.constant 0 : i32
    %c0_i32_0 = arith.constant 0 : i32
    %c0_i32_1 = arith.constant 0 : i32
    return %c0_i32, %c0_i32_0 : i32, i32
  }
  func.func @transform_2(%arg0: i32, %arg1: i32) -> (i32, i32) {
    %c0_i32 = arith.constant 0 : i32
    %c0_i32_0 = arith.constant 0 : i32
    %c0_i32_1 = arith.constant 0 : i32
    return %c0_i32, %c0_i32_0 : i32, i32
  }
  func.func @transform_3(%arg0: i32, %arg1: i32) -> (i32, i32, i32) {
    %c0_i32 = arith.constant 0 : i32
    %c0_i32_0 = arith.constant 0 : i32
    return %arg0, %c0_i32, %arg1 : i32, i32, i32
  }
}

module attributes {stable_mosaic.version = 11 : i64} {
  func.func @_bn_relu_kernel(%arg0: i32, %arg1: i32, %arg2: memref<1x32x32xbf16, #tpu.memory_space<vmem>>, %arg3: memref<32x1xf32, #tpu.memory_space<vmem>>, %arg4: memref<32x1xf32, #tpu.memory_space<vmem>>, %arg5: memref<1x32x32xbf16, #tpu.memory_space<vmem>>) attributes {dimension_semantics = [#tpu.dimension_semantics<parallel>, #tpu.dimension_semantics<parallel>], iteration_bounds = array<i64: 4, 1>, scalar_prefetch = 0 : i64, scratch_operands = 0 : i64, tpu.core_type = #tpu.core_type<tc>, window_params = [{transform_indices = @transform_0, window_bounds = array<i64: 1, 32, 32>}, {pipeline_mode = #tpu.pipeline_mode<synchronous>, transform_indices = @transform_1, window_bounds = array<i64: 32, 1>}, {pipeline_mode = #tpu.pipeline_mode<synchronous>, transform_indices = @transform_2, window_bounds = array<i64: 32, 1>}, {transform_indices = @transform_3, window_bounds = array<i64: 1, 32, 32>}]} {
    %c0 = arith.constant 0 : index
    %c0_0 = arith.constant 0 : index
    %c0_1 = arith.constant 0 : index
    %0 = vector.load %arg2[%c0, %c0_0, %c0_1] : memref<1x32x32xbf16, #tpu.memory_space<vmem>>, vector<1x32x32xbf16>
    %1 = vector.shape_cast %0 : vector<1x32x32xbf16> to vector<32x32xbf16>
    %2 = arith.extf %1 : vector<32x32xbf16> to vector<32x32xf32>
    %c0_2 = arith.constant 0 : index
    %c0_3 = arith.constant 0 : index
    %3 = vector.load %arg3[%c0_2, %c0_3] : memref<32x1xf32, #tpu.memory_space<vmem>>, vector<32x1xf32>
    %4 = vector.broadcast %3 : vector<32x1xf32> to vector<32x32xf32>
    %5 = arith.mulf %2, %4 : vector<32x32xf32>
    %c0_4 = arith.constant 0 : index
    %c0_5 = arith.constant 0 : index
    %6 = vector.load %arg4[%c0_4, %c0_5] : memref<32x1xf32, #tpu.memory_space<vmem>>, vector<32x1xf32>
    %7 = vector.broadcast %6 : vector<32x1xf32> to vector<32x32xf32>
    %8 = arith.addf %5, %7 : vector<32x32xf32>
    %cst = arith.constant 0.000000e+00 : f32
    %9 = vector.broadcast %cst : f32 to vector<32x32xf32>
    %10 = arith.maximumf %8, %9 : vector<32x32xf32>
    %11 = arith.truncf %10 : vector<32x32xf32> to vector<32x32xbf16>
    %c0_6 = arith.constant 0 : index
    %c0_7 = arith.constant 0 : index
    %c0_8 = arith.constant 0 : index
    %12 = vector.load %arg5[%c0_6, %c0_7, %c0_8] : memref<1x32x32xbf16, #tpu.memory_space<vmem>>, vector<1x32x32xbf16>
    %13 = vector.shape_cast %12 : vector<1x32x32xbf16> to vector<32x32xbf16>
    %14 = vector.shape_cast %11 : vector<32x32xbf16> to vector<1x32x32xbf16>
    tpu.vector_store %arg5[%c0_6, %c0_7, %c0_8], %14 {strides = array<i32>} : memref<1x32x32xbf16, #tpu.memory_space<vmem>>, vector<1x32x32xbf16>,
    return
  }
  func.func @transform_0(%arg0: i32, %arg1: i32) -> (i32, i32, i32) {
    %c0_i32 = arith.constant 0 : i32
    %c0_i32_0 = arith.constant 0 : i32
    return %arg0, %c0_i32, %arg1 : i32, i32, i32
  }
  func.func @transform_1(%arg0: i32, %arg1: i32) -> (i32, i32) {
    %c0_i32 = arith.constant 0 : i32
    %c0_i32_0 = arith.constant 0 : i32
    %c0_i32_1 = arith.constant 0 : i32
    return %c0_i32, %c0_i32_0 : i32, i32
  }
  func.func @transform_2(%arg0: i32, %arg1: i32) -> (i32, i32) {
    %c0_i32 = arith.constant 0 : i32
    %c0_i32_0 = arith.constant 0 : i32
    %c0_i32_1 = arith.constant 0 : i32
    return %c0_i32, %c0_i32_0 : i32, i32
  }
  func.func @transform_3(%arg0: i32, %arg1: i32) -> (i32, i32, i32) {
    %c0_i32 = arith.constant 0 : i32
    %c0_i32_0 = arith.constant 0 : i32
    return %arg0, %c0_i32, %arg1 : i32, i32, i32
  }
}

module attributes {stable_mosaic.version = 11 : i64} {
  func.func @_conv_stats_kernel(%arg0: i32, %arg1: i32, %arg2: memref<1x32x256xbf16, #tpu.memory_space<vmem>>, %arg3: memref<1x256x32xbf16, #tpu.memory_space<vmem>>, %arg4: memref<1x32x32xbf16, #tpu.memory_space<vmem>>, %arg5: memref<1x32x2xf32, #tpu.memory_space<vmem>>) attributes {dimension_semantics = [#tpu.dimension_semantics<parallel>, #tpu.dimension_semantics<parallel>], iteration_bounds = array<i64: 4, 1>, scalar_prefetch = 0 : i64, scratch_operands = 0 : i64, tpu.core_type = #tpu.core_type<tc>, window_params = [{transform_indices = @transform_0, window_bounds = array<i64: 1, 32, 256>}, {transform_indices = @transform_1, window_bounds = array<i64: 1, 256, 32>}, {transform_indices = @transform_2, window_bounds = array<i64: 1, 32, 32>}, {transform_indices = @transform_3, window_bounds = array<i64: 1, 32, 2>}]} {
    %c0 = arith.constant 0 : index
    %c0_0 = arith.constant 0 : index
    %c0_1 = arith.constant 0 : index
    %0 = vector.load %arg2[%c0, %c0_0, %c0_1] : memref<1x32x256xbf16, #tpu.memory_space<vmem>>, vector<1x32x256xbf16>
    %1 = vector.shape_cast %0 : vector<1x32x256xbf16> to vector<32x256xbf16>
    %c0_2 = arith.constant 0 : index
    %c0_3 = arith.constant 0 : index
    %c0_4 = arith.constant 0 : index
    %2 = vector.load %arg3[%c0_2, %c0_3, %c0_4] : memref<1x256x32xbf16, #tpu.memory_space<vmem>>, vector<1x256x32xbf16>
    %3 = vector.shape_cast %2 : vector<1x256x32xbf16> to vector<256x32xbf16>
    %cst = arith.constant dense<0.000000e+00> : vector<32x32xf32>
    %4 = tpu.matmul %1, %3, %cst {dimension_numbers = #tpu.dot_dimension_numbers<[1], [0], [0], [1], [0, 0, 1, 1], [], []>} : vector<32x256xbf16>, vector<256x32xbf16>, vector<32x32xf32> -> vector<32x32xf32>
    %5 = arith.truncf %4 : vector<32x32xf32> to vector<32x32xbf16>
    %c0_5 = arith.constant 0 : index
    %c0_6 = arith.constant 0 : index
    %c0_7 = arith.constant 0 : index
    %6 = vector.load %arg4[%c0_5, %c0_6, %c0_7] : memref<1x32x32xbf16, #tpu.memory_space<vmem>>, vector<1x32x32xbf16>
    %7 = vector.shape_cast %6 : vector<1x32x32xbf16> to vector<32x32xbf16>
    %8 = vector.shape_cast %5 : vector<32x32xbf16> to vector<1x32x32xbf16>
    tpu.vector_store %arg4[%c0_5, %c0_6, %c0_7], %8 {strides = array<i32>} : memref<1x32x32xbf16, #tpu.memory_space<vmem>>, vector<1x32x32xbf16>,
    %cst_8 = arith.constant dense<0.000000e+00> : vector<32xf32>
    %9 = vector.multi_reduction <add>, %4, %cst_8 [1] : vector<32x32xf32> to vector<32xf32>
    %10 = vector.shape_cast %9 : vector<32xf32> to vector<32x1xf32>
    %11 = arith.mulf %4, %4 : vector<32x32xf32>
    %cst_9 = arith.constant dense<0.000000e+00> : vector<32xf32>
    %12 = vector.multi_reduction <add>, %11, %cst_9 [1] : vector<32x32xf32> to vector<32xf32>
    %13 = vector.shape_cast %12 : vector<32xf32> to vector<32x1xf32>
    %14 = tpu.concatenate %10, %13 in 1 : vector<32x1xf32>, vector<32x1xf32> -> vector<32x2xf32>
    %c0_10 = arith.constant 0 : index
    %c0_11 = arith.constant 0 : index
    %c0_12 = arith.constant 0 : index
    %15 = vector.load %arg5[%c0_10, %c0_11, %c0_12] : memref<1x32x2xf32, #tpu.memory_space<vmem>>, vector<1x32x2xf32>
    %16 = vector.shape_cast %15 : vector<1x32x2xf32> to vector<32x2xf32>
    %17 = vector.shape_cast %14 : vector<32x2xf32> to vector<1x32x2xf32>
    tpu.vector_store %arg5[%c0_10, %c0_11, %c0_12], %17 {strides = array<i32>} : memref<1x32x2xf32, #tpu.memory_space<vmem>>, vector<1x32x2xf32>,
    return
  }
  func.func @transform_0(%arg0: i32, %arg1: i32) -> (i32, i32, i32) {
    %c0_i32 = arith.constant 0 : i32
    %c0_i32_0 = arith.constant 0 : i32
    %c0_i32_1 = arith.constant 0 : i32
    return %arg0, %c0_i32, %c0_i32_0 : i32, i32, i32
  }
  func.func @transform_1(%arg0: i32, %arg1: i32) -> (i32, i32, i32) {
    %c0_i32 = arith.constant 0 : i32
    %c0_i32_0 = arith.constant 0 : i32
    return %arg0, %c0_i32, %arg1 : i32, i32, i32
  }
  func.func @transform_2(%arg0: i32, %arg1: i32) -> (i32, i32, i32) {
    %c0_i32 = arith.constant 0 : i32
    %c0_i32_0 = arith.constant 0 : i32
    return %arg0, %c0_i32, %arg1 : i32, i32, i32
  }
  func.func @transform_3(%arg0: i32, %arg1: i32) -> (i32, i32, i32) {
    %c1_i32 = arith.constant 1 : i32
    %0 = arith.muli %arg0, %c1_i32 : i32
    %1 = arith.addi %0, %arg1 : i32
    %c0_i32 = arith.constant 0 : i32
    %c0_i32_0 = arith.constant 0 : i32
    %c0_i32_1 = arith.constant 0 : i32
    return %1, %c0_i32, %c0_i32_0 : i32, i32, i32
  }
}

module attributes {stable_mosaic.version = 11 : i64} {
  func.func @_conv_stats_kernel(%arg0: i32, %arg1: i32, %arg2: memref<1x16x128xbf16, #tpu.memory_space<vmem>>, %arg3: memref<1x128x128xbf16, #tpu.memory_space<vmem>>, %arg4: memref<1x16x128xbf16, #tpu.memory_space<vmem>>, %arg5: memref<1x16x2xf32, #tpu.memory_space<vmem>>) attributes {dimension_semantics = [#tpu.dimension_semantics<parallel>, #tpu.dimension_semantics<parallel>], iteration_bounds = array<i64: 4, 1>, scalar_prefetch = 0 : i64, scratch_operands = 0 : i64, tpu.core_type = #tpu.core_type<tc>, window_params = [{transform_indices = @transform_0, window_bounds = array<i64: 1, 16, 128>}, {transform_indices = @transform_1, window_bounds = array<i64: 1, 128, 128>}, {transform_indices = @transform_2, window_bounds = array<i64: 1, 16, 128>}, {transform_indices = @transform_3, window_bounds = array<i64: 1, 16, 2>}]} {
    %c0 = arith.constant 0 : index
    %c0_0 = arith.constant 0 : index
    %c0_1 = arith.constant 0 : index
    %0 = vector.load %arg2[%c0, %c0_0, %c0_1] : memref<1x16x128xbf16, #tpu.memory_space<vmem>>, vector<1x16x128xbf16>
    %1 = vector.shape_cast %0 : vector<1x16x128xbf16> to vector<16x128xbf16>
    %c0_2 = arith.constant 0 : index
    %c0_3 = arith.constant 0 : index
    %c0_4 = arith.constant 0 : index
    %2 = vector.load %arg3[%c0_2, %c0_3, %c0_4] : memref<1x128x128xbf16, #tpu.memory_space<vmem>>, vector<1x128x128xbf16>
    %3 = vector.shape_cast %2 : vector<1x128x128xbf16> to vector<128x128xbf16>
    %cst = arith.constant dense<0.000000e+00> : vector<16x128xf32>
    %4 = tpu.matmul %1, %3, %cst {dimension_numbers = #tpu.dot_dimension_numbers<[1], [0], [0], [1], [0, 0, 1, 1], [], []>} : vector<16x128xbf16>, vector<128x128xbf16>, vector<16x128xf32> -> vector<16x128xf32>
    %5 = arith.truncf %4 : vector<16x128xf32> to vector<16x128xbf16>
    %c0_5 = arith.constant 0 : index
    %c0_6 = arith.constant 0 : index
    %c0_7 = arith.constant 0 : index
    %6 = vector.load %arg4[%c0_5, %c0_6, %c0_7] : memref<1x16x128xbf16, #tpu.memory_space<vmem>>, vector<1x16x128xbf16>
    %7 = vector.shape_cast %6 : vector<1x16x128xbf16> to vector<16x128xbf16>
    %8 = vector.shape_cast %5 : vector<16x128xbf16> to vector<1x16x128xbf16>
    tpu.vector_store %arg4[%c0_5, %c0_6, %c0_7], %8 {strides = array<i32>} : memref<1x16x128xbf16, #tpu.memory_space<vmem>>, vector<1x16x128xbf16>,
    %cst_8 = arith.constant dense<0.000000e+00> : vector<16xf32>
    %9 = vector.multi_reduction <add>, %4, %cst_8 [1] : vector<16x128xf32> to vector<16xf32>
    %10 = vector.shape_cast %9 : vector<16xf32> to vector<16x1xf32>
    %11 = arith.mulf %4, %4 : vector<16x128xf32>
    %cst_9 = arith.constant dense<0.000000e+00> : vector<16xf32>
    %12 = vector.multi_reduction <add>, %11, %cst_9 [1] : vector<16x128xf32> to vector<16xf32>
    %13 = vector.shape_cast %12 : vector<16xf32> to vector<16x1xf32>
    %14 = tpu.concatenate %10, %13 in 1 : vector<16x1xf32>, vector<16x1xf32> -> vector<16x2xf32>
    %c0_10 = arith.constant 0 : index
    %c0_11 = arith.constant 0 : index
    %c0_12 = arith.constant 0 : index
    %15 = vector.load %arg5[%c0_10, %c0_11, %c0_12] : memref<1x16x2xf32, #tpu.memory_space<vmem>>, vector<1x16x2xf32>
    %16 = vector.shape_cast %15 : vector<1x16x2xf32> to vector<16x2xf32>
    %17 = vector.shape_cast %14 : vector<16x2xf32> to vector<1x16x2xf32>
    tpu.vector_store %arg5[%c0_10, %c0_11, %c0_12], %17 {strides = array<i32>} : memref<1x16x2xf32, #tpu.memory_space<vmem>>, vector<1x16x2xf32>,
    return
  }
  func.func @transform_0(%arg0: i32, %arg1: i32) -> (i32, i32, i32) {
    %c0_i32 = arith.constant 0 : i32
    %c0_i32_0 = arith.constant 0 : i32
    %c0_i32_1 = arith.constant 0 : i32
    return %arg0, %c0_i32, %c0_i32_0 : i32, i32, i32
  }
  func.func @transform_1(%arg0: i32, %arg1: i32) -> (i32, i32, i32) {
    %c0_i32 = arith.constant 0 : i32
    %c0_i32_0 = arith.constant 0 : i32
    return %arg0, %c0_i32, %arg1 : i32, i32, i32
  }
  func.func @transform_2(%arg0: i32, %arg1: i32) -> (i32, i32, i32) {
    %c0_i32 = arith.constant 0 : i32
    %c0_i32_0 = arith.constant 0 : i32
    return %arg0, %c0_i32, %arg1 : i32, i32, i32
  }
  func.func @transform_3(%arg0: i32, %arg1: i32) -> (i32, i32, i32) {
    %c1_i32 = arith.constant 1 : i32
    %0 = arith.muli %arg0, %c1_i32 : i32
    %1 = arith.addi %0, %arg1 : i32
    %c0_i32 = arith.constant 0 : i32
    %c0_i32_0 = arith.constant 0 : i32
    %c0_i32_1 = arith.constant 0 : i32
    return %1, %c0_i32, %c0_i32_0 : i32, i32, i32
  }
}

module attributes {stable_mosaic.version = 11 : i64} {
  func.func @_bn_relu_kernel(%arg0: i32, %arg1: i32, %arg2: memref<1x16x128xbf16, #tpu.memory_space<vmem>>, %arg3: memref<16x1xf32, #tpu.memory_space<vmem>>, %arg4: memref<16x1xf32, #tpu.memory_space<vmem>>, %arg5: memref<1x16x128xbf16, #tpu.memory_space<vmem>>) attributes {dimension_semantics = [#tpu.dimension_semantics<parallel>, #tpu.dimension_semantics<parallel>], iteration_bounds = array<i64: 4, 1>, scalar_prefetch = 0 : i64, scratch_operands = 0 : i64, tpu.core_type = #tpu.core_type<tc>, window_params = [{transform_indices = @transform_0, window_bounds = array<i64: 1, 16, 128>}, {pipeline_mode = #tpu.pipeline_mode<synchronous>, transform_indices = @transform_1, window_bounds = array<i64: 16, 1>}, {pipeline_mode = #tpu.pipeline_mode<synchronous>, transform_indices = @transform_2, window_bounds = array<i64: 16, 1>}, {transform_indices = @transform_3, window_bounds = array<i64: 1, 16, 128>}]} {
    %c0 = arith.constant 0 : index
    %c0_0 = arith.constant 0 : index
    %c0_1 = arith.constant 0 : index
    %0 = vector.load %arg2[%c0, %c0_0, %c0_1] : memref<1x16x128xbf16, #tpu.memory_space<vmem>>, vector<1x16x128xbf16>
    %1 = vector.shape_cast %0 : vector<1x16x128xbf16> to vector<16x128xbf16>
    %2 = arith.extf %1 : vector<16x128xbf16> to vector<16x128xf32>
    %c0_2 = arith.constant 0 : index
    %c0_3 = arith.constant 0 : index
    %3 = vector.load %arg3[%c0_2, %c0_3] : memref<16x1xf32, #tpu.memory_space<vmem>>, vector<16x1xf32>
    %4 = vector.broadcast %3 : vector<16x1xf32> to vector<16x128xf32>
    %5 = arith.mulf %2, %4 : vector<16x128xf32>
    %c0_4 = arith.constant 0 : index
    %c0_5 = arith.constant 0 : index
    %6 = vector.load %arg4[%c0_4, %c0_5] : memref<16x1xf32, #tpu.memory_space<vmem>>, vector<16x1xf32>
    %7 = vector.broadcast %6 : vector<16x1xf32> to vector<16x128xf32>
    %8 = arith.addf %5, %7 : vector<16x128xf32>
    %cst = arith.constant 0.000000e+00 : f32
    %9 = vector.broadcast %cst : f32 to vector<16x128xf32>
    %10 = arith.maximumf %8, %9 : vector<16x128xf32>
    %11 = arith.truncf %10 : vector<16x128xf32> to vector<16x128xbf16>
    %c0_6 = arith.constant 0 : index
    %c0_7 = arith.constant 0 : index
    %c0_8 = arith.constant 0 : index
    %12 = vector.load %arg5[%c0_6, %c0_7, %c0_8] : memref<1x16x128xbf16, #tpu.memory_space<vmem>>, vector<1x16x128xbf16>
    %13 = vector.shape_cast %12 : vector<1x16x128xbf16> to vector<16x128xbf16>
    %14 = vector.shape_cast %11 : vector<16x128xbf16> to vector<1x16x128xbf16>
    tpu.vector_store %arg5[%c0_6, %c0_7, %c0_8], %14 {strides = array<i32>} : memref<1x16x128xbf16, #tpu.memory_space<vmem>>, vector<1x16x128xbf16>,
    return
  }
  func.func @transform_0(%arg0: i32, %arg1: i32) -> (i32, i32, i32) {
    %c0_i32 = arith.constant 0 : i32
    %c0_i32_0 = arith.constant 0 : i32
    return %arg0, %c0_i32, %arg1 : i32, i32, i32
  }
  func.func @transform_1(%arg0: i32, %arg1: i32) -> (i32, i32) {
    %c0_i32 = arith.constant 0 : i32
    %c0_i32_0 = arith.constant 0 : i32
    %c0_i32_1 = arith.constant 0 : i32
    return %c0_i32, %c0_i32_0 : i32, i32
  }
  func.func @transform_2(%arg0: i32, %arg1: i32) -> (i32, i32) {
    %c0_i32 = arith.constant 0 : i32
    %c0_i32_0 = arith.constant 0 : i32
    %c0_i32_1 = arith.constant 0 : i32
    return %c0_i32, %c0_i32_0 : i32, i32
  }
  func.func @transform_3(%arg0: i32, %arg1: i32) -> (i32, i32, i32) {
    %c0_i32 = arith.constant 0 : i32
    %c0_i32_0 = arith.constant 0 : i32
    return %arg0, %c0_i32, %arg1 : i32, i32, i32
  }
}

module attributes {stable_mosaic.version = 11 : i64} {
  func.func @_self_attn_kernel(%arg0: i32, %arg1: memref<16x256xbf16, #tpu.memory_space<vmem>>, %arg2: memref<20x16xbf16, #tpu.memory_space<vmem>>, %arg3: memref<20x1xf32, #tpu.memory_space<vmem>>, %arg4: memref<1x1xf32, #tpu.memory_space<smem>>, %arg5: memref<16x256xbf16, #tpu.memory_space<vmem>>) attributes {dimension_semantics = [#tpu.dimension_semantics<parallel>], iteration_bounds = array<i64: 2>, scalar_prefetch = 0 : i64, scratch_operands = 0 : i64, tpu.core_type = #tpu.core_type<tc>, window_params = [{transform_indices = @transform_0, window_bounds = array<i64: 16, 256>}, {pipeline_mode = #tpu.pipeline_mode<synchronous>, transform_indices = @transform_1, window_bounds = array<i64: 20, 16>}, {pipeline_mode = #tpu.pipeline_mode<synchronous>, transform_indices = @transform_2, window_bounds = array<i64: 20, 1>}, {transform_indices = @transform_3, window_bounds = array<i64: 1, 1>}, {transform_indices = @transform_4, window_bounds = array<i64: 16, 256>}]} {
    %c0 = arith.constant 0 : index
    %c0_0 = arith.constant 0 : index
    %0 = vector.load %arg1[%c0, %c0_0] : memref<16x256xbf16, #tpu.memory_space<vmem>>, vector<16x256xbf16>
    %c0_1 = arith.constant 0 : index
    %c0_2 = arith.constant 0 : index
    %1 = vector.load %arg2[%c0_1, %c0_2] : memref<20x16xbf16, #tpu.memory_space<vmem>>, vector<20x16xbf16>
    %cst = arith.constant dense<0.000000e+00> : vector<20x256xf32>
    %2 = tpu.matmul %1, %0, %cst {dimension_numbers = #tpu.dot_dimension_numbers<[1], [0], [0], [1], [0, 0, 1, 1], [], []>} : vector<20x16xbf16>, vector<16x256xbf16>, vector<20x256xf32> -> vector<20x256xf32>
    %c0_3 = arith.constant 0 : index
    %c0_4 = arith.constant 0 : index
    %3 = vector.load %arg3[%c0_3, %c0_4] : memref<20x1xf32, #tpu.memory_space<vmem>>, vector<20x1xf32>
    %4 = vector.broadcast %3 : vector<20x1xf32> to vector<20x256xf32>
    %5 = arith.addf %2, %4 : vector<20x256xf32>
    %6 = vector.extract_strided_slice %5 {offsets = [0, 0], sizes = [2, 256], strides = [1, 1]} : vector<20x256xf32> to vector<2x256xf32>
    %7 = arith.truncf %6 : vector<2x256xf32> to vector<2x256xbf16>
    %8 = vector.extract_strided_slice %5 {offsets = [2, 0], sizes = [2, 256], strides = [1, 1]} : vector<20x256xf32> to vector<2x256xf32>
    %9 = arith.truncf %8 : vector<2x256xf32> to vector<2x256xbf16>
    %10 = vector.extract_strided_slice %5 {offsets = [4, 0], sizes = [16, 256], strides = [1, 1]} : vector<20x256xf32> to vector<16x256xf32>
    %11 = arith.truncf %10 : vector<16x256xf32> to vector<16x256xbf16>
    %cst_5 = arith.constant dense<0.000000e+00> : vector<256x256xf32>
    %12 = tpu.matmul %7, %9, %cst_5 {dimension_numbers = #tpu.dot_dimension_numbers<[0], [0], [1], [1], [0, 1, 1, 1], [], []>} : vector<2x256xbf16>, vector<2x256xbf16>, vector<256x256xf32> -> vector<256x256xf32>
    %cst_6 = arith.constant dense<0xFF800000> : vector<256xf32>
    %13 = vector.multi_reduction <maximumf>, %12, %cst_6 [1] : vector<256x256xf32> to vector<256xf32>
    %14 = vector.shape_cast %13 : vector<256xf32> to vector<256x1xf32>
    %15 = vector.broadcast %14 : vector<256x1xf32> to vector<256x256xf32>
    %16 = arith.subf %12, %15 : vector<256x256xf32>
    %17 = math.exp %16 : vector<256x256xf32>
    %cst_7 = arith.constant dense<0.000000e+00> : vector<256xf32>
    %18 = vector.multi_reduction <add>, %17, %cst_7 [1] : vector<256x256xf32> to vector<256xf32>
    %19 = vector.shape_cast %18 : vector<256xf32> to vector<256x1xf32>
    %20 = tpu.reciprocal %19 {approx = true} : vector<256x1xf32> -> vector<256x1xf32>
    %21 = vector.broadcast %20 : vector<256x1xf32> to vector<256x256xf32>
    %22 = arith.mulf %17, %21 : vector<256x256xf32>
    %23 = arith.truncf %22 : vector<256x256xf32> to vector<256x256xbf16>
    %cst_8 = arith.constant dense<0.000000e+00> : vector<16x256xf32>
    %24 = tpu.matmul %11, %23, %cst_8 {dimension_numbers = #tpu.dot_dimension_numbers<[1], [1], [0], [0], [0, 0, 1, 0], [], []>} : vector<16x256xbf16>, vector<256x256xbf16>, vector<16x256xf32> -> vector<16x256xf32>
    %c0_9 = arith.constant 0 : index
    %c0_10 = arith.constant 0 : index
    %25 = memref.load %arg4[%c0_9, %c0_10] : memref<1x1xf32, #tpu.memory_space<smem>>
    %26 = vector.broadcast %25 : f32 to vector<16x256xf32>
    %27 = arith.mulf %26, %24 : vector<16x256xf32>
    %28 = arith.extf %0 : vector<16x256xbf16> to vector<16x256xf32>
    %29 = arith.addf %27, %28 : vector<16x256xf32>
    %30 = arith.truncf %29 : vector<16x256xf32> to vector<16x256xbf16>
    %c0_11 = arith.constant 0 : index
    %c0_12 = arith.constant 0 : index
    %31 = vector.load %arg5[%c0_11, %c0_12] : memref<16x256xbf16, #tpu.memory_space<vmem>>, vector<16x256xbf16>
    tpu.vector_store %arg5[%c0_11, %c0_12], %30 {strides = array<i32>} : memref<16x256xbf16, #tpu.memory_space<vmem>>, vector<16x256xbf16>,
    return
  }
  func.func @transform_0(%arg0: i32) -> (i32, i32) {
    %c0_i32 = arith.constant 0 : i32
    %c0_i32_0 = arith.constant 0 : i32
    return %c0_i32, %arg0 : i32, i32
  }
  func.func @transform_1(%arg0: i32) -> (i32, i32) {
    %c0_i32 = arith.constant 0 : i32
    %c0_i32_0 = arith.constant 0 : i32
    %c0_i32_1 = arith.constant 0 : i32
    return %c0_i32, %c0_i32_0 : i32, i32
  }
  func.func @transform_2(%arg0: i32) -> (i32, i32) {
    %c0_i32 = arith.constant 0 : i32
    %c0_i32_0 = arith.constant 0 : i32
    %c0_i32_1 = arith.constant 0 : i32
    return %c0_i32, %c0_i32_0 : i32, i32
  }
  func.func @transform_3(%arg0: i32) -> (i32, i32) {
    %c0_i32 = arith.constant 0 : i32
    %c0_i32_0 = arith.constant 0 : i32
    %c0_i32_1 = arith.constant 0 : i32
    return %c0_i32, %c0_i32_0 : i32, i32
  }
  func.func @transform_4(%arg0: i32) -> (i32, i32) {
    %c0_i32 = arith.constant 0 : i32
    %c0_i32_0 = arith.constant 0 : i32
    return %c0_i32, %arg0 : i32, i32
  }
}

module attributes {stable_mosaic.version = 11 : i64} {
  func.func @_conv_stats_kernel(%arg0: i32, %arg1: i32, %arg2: memref<1x8x64xbf16, #tpu.memory_space<vmem>>, %arg3: memref<1x64x512xbf16, #tpu.memory_space<vmem>>, %arg4: memref<1x8x512xbf16, #tpu.memory_space<vmem>>, %arg5: memref<1x8x2xf32, #tpu.memory_space<vmem>>) attributes {dimension_semantics = [#tpu.dimension_semantics<parallel>, #tpu.dimension_semantics<parallel>], iteration_bounds = array<i64: 4, 1>, scalar_prefetch = 0 : i64, scratch_operands = 0 : i64, tpu.core_type = #tpu.core_type<tc>, window_params = [{transform_indices = @transform_0, window_bounds = array<i64: 1, 8, 64>}, {transform_indices = @transform_1, window_bounds = array<i64: 1, 64, 512>}, {transform_indices = @transform_2, window_bounds = array<i64: 1, 8, 512>}, {transform_indices = @transform_3, window_bounds = array<i64: 1, 8, 2>}]} {
    %c0 = arith.constant 0 : index
    %c0_0 = arith.constant 0 : index
    %c0_1 = arith.constant 0 : index
    %0 = vector.load %arg2[%c0, %c0_0, %c0_1] : memref<1x8x64xbf16, #tpu.memory_space<vmem>>, vector<1x8x64xbf16>
    %1 = vector.shape_cast %0 : vector<1x8x64xbf16> to vector<8x64xbf16>
    %c0_2 = arith.constant 0 : index
    %c0_3 = arith.constant 0 : index
    %c0_4 = arith.constant 0 : index
    %2 = vector.load %arg3[%c0_2, %c0_3, %c0_4] : memref<1x64x512xbf16, #tpu.memory_space<vmem>>, vector<1x64x512xbf16>
    %3 = vector.shape_cast %2 : vector<1x64x512xbf16> to vector<64x512xbf16>
    %cst = arith.constant dense<0.000000e+00> : vector<8x512xf32>
    %4 = tpu.matmul %1, %3, %cst {dimension_numbers = #tpu.dot_dimension_numbers<[1], [0], [0], [1], [0, 0, 1, 1], [], []>} : vector<8x64xbf16>, vector<64x512xbf16>, vector<8x512xf32> -> vector<8x512xf32>
    %5 = arith.truncf %4 : vector<8x512xf32> to vector<8x512xbf16>
    %c0_5 = arith.constant 0 : index
    %c0_6 = arith.constant 0 : index
    %c0_7 = arith.constant 0 : index
    %6 = vector.load %arg4[%c0_5, %c0_6, %c0_7] : memref<1x8x512xbf16, #tpu.memory_space<vmem>>, vector<1x8x512xbf16>
    %7 = vector.shape_cast %6 : vector<1x8x512xbf16> to vector<8x512xbf16>
    %8 = vector.shape_cast %5 : vector<8x512xbf16> to vector<1x8x512xbf16>
    tpu.vector_store %arg4[%c0_5, %c0_6, %c0_7], %8 {strides = array<i32>} : memref<1x8x512xbf16, #tpu.memory_space<vmem>>, vector<1x8x512xbf16>,
    %cst_8 = arith.constant dense<0.000000e+00> : vector<8xf32>
    %9 = vector.multi_reduction <add>, %4, %cst_8 [1] : vector<8x512xf32> to vector<8xf32>
    %10 = vector.shape_cast %9 : vector<8xf32> to vector<8x1xf32>
    %11 = arith.mulf %4, %4 : vector<8x512xf32>
    %cst_9 = arith.constant dense<0.000000e+00> : vector<8xf32>
    %12 = vector.multi_reduction <add>, %11, %cst_9 [1] : vector<8x512xf32> to vector<8xf32>
    %13 = vector.shape_cast %12 : vector<8xf32> to vector<8x1xf32>
    %14 = tpu.concatenate %10, %13 in 1 : vector<8x1xf32>, vector<8x1xf32> -> vector<8x2xf32>
    %c0_10 = arith.constant 0 : index
    %c0_11 = arith.constant 0 : index
    %c0_12 = arith.constant 0 : index
    %15 = vector.load %arg5[%c0_10, %c0_11, %c0_12] : memref<1x8x2xf32, #tpu.memory_space<vmem>>, vector<1x8x2xf32>
    %16 = vector.shape_cast %15 : vector<1x8x2xf32> to vector<8x2xf32>
    %17 = vector.shape_cast %14 : vector<8x2xf32> to vector<1x8x2xf32>
    tpu.vector_store %arg5[%c0_10, %c0_11, %c0_12], %17 {strides = array<i32>} : memref<1x8x2xf32, #tpu.memory_space<vmem>>, vector<1x8x2xf32>,
    return
  }
  func.func @transform_0(%arg0: i32, %arg1: i32) -> (i32, i32, i32) {
    %c0_i32 = arith.constant 0 : i32
    %c0_i32_0 = arith.constant 0 : i32
    %c0_i32_1 = arith.constant 0 : i32
    return %arg0, %c0_i32, %c0_i32_0 : i32, i32, i32
  }
  func.func @transform_1(%arg0: i32, %arg1: i32) -> (i32, i32, i32) {
    %c0_i32 = arith.constant 0 : i32
    %c0_i32_0 = arith.constant 0 : i32
    return %arg0, %c0_i32, %arg1 : i32, i32, i32
  }
  func.func @transform_2(%arg0: i32, %arg1: i32) -> (i32, i32, i32) {
    %c0_i32 = arith.constant 0 : i32
    %c0_i32_0 = arith.constant 0 : i32
    return %arg0, %c0_i32, %arg1 : i32, i32, i32
  }
  func.func @transform_3(%arg0: i32, %arg1: i32) -> (i32, i32, i32) {
    %c1_i32 = arith.constant 1 : i32
    %0 = arith.muli %arg0, %c1_i32 : i32
    %1 = arith.addi %0, %arg1 : i32
    %c0_i32 = arith.constant 0 : i32
    %c0_i32_0 = arith.constant 0 : i32
    %c0_i32_1 = arith.constant 0 : i32
    return %1, %c0_i32, %c0_i32_0 : i32, i32, i32
  }
}

module attributes {stable_mosaic.version = 11 : i64} {
  func.func @_bn_relu_kernel(%arg0: i32, %arg1: i32, %arg2: memref<1x8x512xbf16, #tpu.memory_space<vmem>>, %arg3: memref<8x1xf32, #tpu.memory_space<vmem>>, %arg4: memref<8x1xf32, #tpu.memory_space<vmem>>, %arg5: memref<1x8x512xbf16, #tpu.memory_space<vmem>>) attributes {dimension_semantics = [#tpu.dimension_semantics<parallel>, #tpu.dimension_semantics<parallel>], iteration_bounds = array<i64: 4, 1>, scalar_prefetch = 0 : i64, scratch_operands = 0 : i64, tpu.core_type = #tpu.core_type<tc>, window_params = [{transform_indices = @transform_0, window_bounds = array<i64: 1, 8, 512>}, {pipeline_mode = #tpu.pipeline_mode<synchronous>, transform_indices = @transform_1, window_bounds = array<i64: 8, 1>}, {pipeline_mode = #tpu.pipeline_mode<synchronous>, transform_indices = @transform_2, window_bounds = array<i64: 8, 1>}, {transform_indices = @transform_3, window_bounds = array<i64: 1, 8, 512>}]} {
    %c0 = arith.constant 0 : index
    %c0_0 = arith.constant 0 : index
    %c0_1 = arith.constant 0 : index
    %0 = vector.load %arg2[%c0, %c0_0, %c0_1] : memref<1x8x512xbf16, #tpu.memory_space<vmem>>, vector<1x8x512xbf16>
    %1 = vector.shape_cast %0 : vector<1x8x512xbf16> to vector<8x512xbf16>
    %2 = arith.extf %1 : vector<8x512xbf16> to vector<8x512xf32>
    %c0_2 = arith.constant 0 : index
    %c0_3 = arith.constant 0 : index
    %3 = vector.load %arg3[%c0_2, %c0_3] : memref<8x1xf32, #tpu.memory_space<vmem>>, vector<8x1xf32>
    %4 = vector.broadcast %3 : vector<8x1xf32> to vector<8x512xf32>
    %5 = arith.mulf %2, %4 : vector<8x512xf32>
    %c0_4 = arith.constant 0 : index
    %c0_5 = arith.constant 0 : index
    %6 = vector.load %arg4[%c0_4, %c0_5] : memref<8x1xf32, #tpu.memory_space<vmem>>, vector<8x1xf32>
    %7 = vector.broadcast %6 : vector<8x1xf32> to vector<8x512xf32>
    %8 = arith.addf %5, %7 : vector<8x512xf32>
    %cst = arith.constant 0.000000e+00 : f32
    %9 = vector.broadcast %cst : f32 to vector<8x512xf32>
    %10 = arith.maximumf %8, %9 : vector<8x512xf32>
    %11 = arith.truncf %10 : vector<8x512xf32> to vector<8x512xbf16>
    %c0_6 = arith.constant 0 : index
    %c0_7 = arith.constant 0 : index
    %c0_8 = arith.constant 0 : index
    %12 = vector.load %arg5[%c0_6, %c0_7, %c0_8] : memref<1x8x512xbf16, #tpu.memory_space<vmem>>, vector<1x8x512xbf16>
    %13 = vector.shape_cast %12 : vector<1x8x512xbf16> to vector<8x512xbf16>
    %14 = vector.shape_cast %11 : vector<8x512xbf16> to vector<1x8x512xbf16>
    tpu.vector_store %arg5[%c0_6, %c0_7, %c0_8], %14 {strides = array<i32>} : memref<1x8x512xbf16, #tpu.memory_space<vmem>>, vector<1x8x512xbf16>,
    return
  }
  func.func @transform_0(%arg0: i32, %arg1: i32) -> (i32, i32, i32) {
    %c0_i32 = arith.constant 0 : i32
    %c0_i32_0 = arith.constant 0 : i32
    return %arg0, %c0_i32, %arg1 : i32, i32, i32
  }
  func.func @transform_1(%arg0: i32, %arg1: i32) -> (i32, i32) {
    %c0_i32 = arith.constant 0 : i32
    %c0_i32_0 = arith.constant 0 : i32
    %c0_i32_1 = arith.constant 0 : i32
    return %c0_i32, %c0_i32_0 : i32, i32
  }
  func.func @transform_2(%arg0: i32, %arg1: i32) -> (i32, i32) {
    %c0_i32 = arith.constant 0 : i32
    %c0_i32_0 = arith.constant 0 : i32
    %c0_i32_1 = arith.constant 0 : i32
    return %c0_i32, %c0_i32_0 : i32, i32
  }
  func.func @transform_3(%arg0: i32, %arg1: i32) -> (i32, i32, i32) {
    %c0_i32 = arith.constant 0 : i32
    %c0_i32_0 = arith.constant 0 : i32
    return %arg0, %c0_i32, %arg1 : i32, i32, i32
  }
}

module attributes {stable_mosaic.version = 11 : i64} {
  func.func @_conv_bias_tanh_kernel(%arg0: i32, %arg1: i32, %arg2: memref<1x3x32xbf16, #tpu.memory_space<vmem>>, %arg3: memref<1x32x512xbf16, #tpu.memory_space<vmem>>, %arg4: memref<3x1xf32, #tpu.memory_space<vmem>>, %arg5: memref<1x3x512xf32, #tpu.memory_space<vmem>>) attributes {dimension_semantics = [#tpu.dimension_semantics<parallel>, #tpu.dimension_semantics<parallel>], iteration_bounds = array<i64: 4, 4>, scalar_prefetch = 0 : i64, scratch_operands = 0 : i64, tpu.core_type = #tpu.core_type<tc>, window_params = [{transform_indices = @transform_0, window_bounds = array<i64: 1, 3, 32>}, {transform_indices = @transform_1, window_bounds = array<i64: 1, 32, 512>}, {pipeline_mode = #tpu.pipeline_mode<synchronous>, transform_indices = @transform_2, window_bounds = array<i64: 3, 1>}, {transform_indices = @transform_3, window_bounds = array<i64: 1, 3, 512>}]} {
    %c0 = arith.constant 0 : index
    %c0_0 = arith.constant 0 : index
    %c0_1 = arith.constant 0 : index
    %0 = vector.load %arg2[%c0, %c0_0, %c0_1] : memref<1x3x32xbf16, #tpu.memory_space<vmem>>, vector<1x3x32xbf16>
    %1 = vector.shape_cast %0 : vector<1x3x32xbf16> to vector<3x32xbf16>
    %c0_2 = arith.constant 0 : index
    %c0_3 = arith.constant 0 : index
    %c0_4 = arith.constant 0 : index
    %2 = vector.load %arg3[%c0_2, %c0_3, %c0_4] : memref<1x32x512xbf16, #tpu.memory_space<vmem>>, vector<1x32x512xbf16>
    %3 = vector.shape_cast %2 : vector<1x32x512xbf16> to vector<32x512xbf16>
    %cst = arith.constant dense<0.000000e+00> : vector<3x512xf32>
    %4 = tpu.matmul %1, %3, %cst {dimension_numbers = #tpu.dot_dimension_numbers<[1], [0], [0], [1], [0, 0, 1, 1], [], []>} : vector<3x32xbf16>, vector<32x512xbf16>, vector<3x512xf32> -> vector<3x512xf32>
    %c0_5 = arith.constant 0 : index
    %c0_6 = arith.constant 0 : index
    %5 = vector.load %arg4[%c0_5, %c0_6] : memref<3x1xf32, #tpu.memory_space<vmem>>, vector<3x1xf32>
    %6 = vector.broadcast %5 : vector<3x1xf32> to vector<3x512xf32>
    %7 = arith.addf %4, %6 : vector<3x512xf32>
    %8 = math.tanh %7 : vector<3x512xf32>
    %c0_7 = arith.constant 0 : index
    %c0_8 = arith.constant 0 : index
    %c0_9 = arith.constant 0 : index
    %9 = vector.load %arg5[%c0_7, %c0_8, %c0_9] : memref<1x3x512xf32, #tpu.memory_space<vmem>>, vector<1x3x512xf32>
    %10 = vector.shape_cast %9 : vector<1x3x512xf32> to vector<3x512xf32>
    %11 = vector.shape_cast %8 : vector<3x512xf32> to vector<1x3x512xf32>
    tpu.vector_store %arg5[%c0_7, %c0_8, %c0_9], %11 {strides = array<i32>} : memref<1x3x512xf32, #tpu.memory_space<vmem>>, vector<1x3x512xf32>,
    return
  }
  func.func @transform_0(%arg0: i32, %arg1: i32) -> (i32, i32, i32) {
    %c0_i32 = arith.constant 0 : i32
    %c0_i32_0 = arith.constant 0 : i32
    %c0_i32_1 = arith.constant 0 : i32
    return %arg0, %c0_i32, %c0_i32_0 : i32, i32, i32
  }
  func.func @transform_1(%arg0: i32, %arg1: i32) -> (i32, i32, i32) {
    %c0_i32 = arith.constant 0 : i32
    %c0_i32_0 = arith.constant 0 : i32
    return %arg0, %c0_i32, %arg1 : i32, i32, i32
  }
  func.func @transform_2(%arg0: i32, %arg1: i32) -> (i32, i32) {
    %c0_i32 = arith.constant 0 : i32
    %c0_i32_0 = arith.constant 0 : i32
    %c0_i32_1 = arith.constant 0 : i32
    return %c0_i32, %c0_i32_0 : i32, i32
  }
  func.func @transform_3(%arg0: i32, %arg1: i32) -> (i32, i32, i32) {
    %c0_i32 = arith.constant 0 : i32
    %c0_i32_0 = arith.constant 0 : i32
    return %arg0, %c0_i32, %arg1 : i32, i32, i32
  }
}

</mosaic_0001>

<bundles_post_ra>
// kernel: generator_forward.10
= control target key start
LH: loop header
LB: loop body
LE: loop exit
PB: predicated region body
PF: predicated region fallthrough
CT: control target
= control target key end

     0   :  { %9 = vsyncpa [#allocation3], 0  ;;  %s681_s0 = inlined_call_operand.hbm [shape: bf16[1,64,128], index: 0, kind: input, shape index: {}]   ;;  %s682_s1 = inlined_call_operand.hbm [shape: bf16[1,128,32], index: 1, kind: input, shape index: {}]   ;;  %s683_s2 = inlined_call_operand.hbm [shape: bf16[1,64,32], index: 2, kind: output, shape index: {0}]   ;;  %s684_s3 = inlined_call_operand.hbm [shape: f32[1,64,2], index: 3, kind: output, shape index: {1}]  }
   0x1   :  { %10 = vsyncpa [#allocation6], 0 }
   0x2   :  { %11 = vsyncpa [#allocation4], 0 }
   0x3   :  { %12 = vsyncpa [#allocation9], 0  ;;  %s556_s12 = smov [#allocation2]   ;;  %s460_s16 = scalar_lea.hbm %s681_s0, 512 }
   0x4   :  { %s18_s13 = sshll.u32 %s556_s12, 4  ;;  %p461_p0 = scmp.ne.s32.totalorder %s681_s0, %s460_s16  ;;  %s19_s13 = int_to_ptr.vmem [resolvable:$true] %s18_s13 }
   0x5   :  { %p464_p1 = scmp.lt.u32.totalorder %s460_s16, %s681_s0 }
   0x7   :  { %p466_p2 = pnand %p464_p1, %p461_p0 }
   0x9   :  { %469 = shalt.err (!%p466_p2)
}
   0xa   :  { %s470_s21 = scalar_lea.vmem %s19_s13, 512  ;;  %p475_p4 = scmp.lt.s32.totalorder %s19_s13, %s19_s13 }
   0xb   :  { %p471_p3 = scmp.ne.s32.totalorder %s19_s13, %s470_s21  ;;  %p476_p5 = scmp.lt.s32.totalorder %s470_s21, %s470_s21 }
   0xd   :  { %p477_p6 = por %p476_p5, %p475_p4 }
   0xf   :  { %p478_p7 = pnand %p477_p6, %p471_p3 }
  0x11   :  { %481 = shalt.err (!%p478_p7)
}
  0x12   :  { %s557_s22 = smov 64   ;;  %s558_s23 = smov 4  }
  0x13   :  { %24 = dma.hbm_to_vmem [thread:$0]  %s681_s0, 512, %s19_s13, [#allocation3], %s557_s22, %s557_s22, %s558_s23  }
  0x14   :  { %s559_s26 = smov [#allocation5]   ;;  %s482_s30 = scalar_lea.hbm %s682_s1, 1024 }
  0x15   :  { %s30_s27 = sshll.u32 %s559_s26, 4  ;;  %p483_p8 = scmp.ne.s32.totalorder %s682_s1, %s482_s30  ;;  %s31_s27 = int_to_ptr.vmem [resolvable:$true] %s30_s27 }
  0x16   :  { %p486_p9 = scmp.lt.u32.totalorder %s482_s30, %s682_s1 }
  0x18   :  { %p488_p10 = pnand %p486_p9, %p483_p8 }
  0x1a   :  { %491 = shalt.err (!%p488_p10)
}
  0x1b   :  { %s492_s8 = scalar_lea.vmem %s31_s27, 1024  ;;  %p497_p12 = scmp.lt.s32.totalorder %s31_s27, %s31_s27 }
  0x1c   :  { %p493_p11 = scmp.ne.s32.totalorder %s31_s27, %s492_s8  ;;  %p498_p13 = scmp.lt.s32.totalorder %s492_s8, %s492_s8 }
  0x1e   :  { %p499_p0 = por %p498_p13, %p497_p12 }
  0x20   :  { %p500_p1 = pnand %p499_p0, %p493_p11 }
  0x22   :  { %503 = shalt.err (!%p500_p1)
}
  0x23   :  { %36 = dma.hbm_to_vmem [thread:$0]  %s682_s1, 1024, %s31_s27, [#allocation6], %s557_s22, %s557_s22, %s558_s23  }
  0x24   :  { %548 = dma.done.wait [#allocation3], 512  }
  0x25   :  { %549 = vsyncadd [#allocation3], 4294966784 }
  0x26   :  { %550 = dma.done.wait [#allocation6], 1024  }
  0x27   :  { %551 = vsyncadd [#allocation6], 4294966272  ;;  %v448_v0 = vld [vmem:[#allocation5] sm:$0xff]   ;;  %v449_v1 = vld [vmem:[#allocation5 + $0x8] sm:$0xff]   ;;  %vm247_vm0 = vcmask 261120   ;;  %vm238_vm1 = vcmask 257024  }
  0x28   :  { %400 = vmatprep.subr.bf16.mxu0 %v448_v0  ;;  %424 = vmatprep.subr.bf16.mxu1 %v448_v0  ;;  %v450_v2 = vld [vmem:[#allocation5 + $0x10] sm:$0xff]   ;;  %v451_v3 = vld [vmem:[#allocation5 + $0x18] sm:$0xff]   ;;  %v456_v4 = vld [vmem:[#allocation2] sm:$0xff]   ;;  %s560_s1 = smov [#allocation7]  }
  0x29   :  { %401 = vmatpush3.bf16.msra.mxu0 %v448_v0  ;;  %432 = vmatpush3.bf16.msra.mxu1 %v448_v0  ;;  %v457_v5 = vld [vmem:[#allocation2 + $0x10] sm:$0xff]   ;;  %v452_v6 = vld [vmem:[#allocation5 + $0x20] sm:$0xff]   ;;  %v453_v7 = vld [vmem:[#allocation5 + $0x28] sm:$0xff]   ;;  %s327_s10 = sshll.u32 %s560_s1, 4  ;;  %s328_s10 = int_to_ptr.vmem [resolvable:$true] %s327_s10 }
  0x2a   :  { %402 = vmatprep.subr.bf16.mxu0 %v449_v1  ;;  %425 = vmatprep.subr.bf16.mxu1 %v449_v1  ;;  %v454_v8 = vld [vmem:[#allocation5 + $0x30] sm:$0xff]   ;;  %v455_v9 = vld [vmem:[#allocation5 + $0x38] sm:$0xff]   ;;  %v458_v10 = vld [vmem:[#allocation2 + $0x8] sm:$0xff]   ;;  %s504_s11 = scalar_lea.vmem %s328_s10, 512  ;;  %p509_p3 = scmp.lt.s32.totalorder %s328_s10, %s328_s10 }
  0x2b   :  { %416 = vmatprep.mubr.bf16.mxu0 %v456_v4  ;;  %420 = vmatprep.mubr.bf16.mxu1 %v457_v5  ;;  %v459_v11 = vld [vmem:[#allocation2 + $0x18] sm:$0xff]   ;;  %p505_p2 = scmp.ne.s32.totalorder %s328_s10, %s504_s11  ;;  %p510_p4 = scmp.lt.s32.totalorder %s504_s11, %s504_s11 }
  0x2d   :  { %403 = vmatpush3.bf16.msra.mxu0 %v449_v1  ;;  %433 = vmatpush3.bf16.msra.mxu1 %v449_v1  ;;  %p511_p5 = por %p510_p4, %p509_p3 }
  0x2e   :  { %404 = vmatprep.subr.bf16.mxu0 %v450_v2  ;;  %426 = vmatprep.subr.bf16.mxu1 %v450_v2 }
  0x2f   :  { %p512_p6 = pnand %p511_p5, %p505_p2 }
  0x31   :  { %405 = vmatpush3.bf16.msra.mxu0 %v450_v2  ;;  %434 = vmatpush3.bf16.msra.mxu1 %v450_v2 }
  0x32   :  { %406 = vmatprep.subr.bf16.mxu0 %v451_v3  ;;  %427 = vmatprep.subr.bf16.mxu1 %v451_v3 }
  0x35   :  { %407 = vmatpush3.bf16.msra.mxu0 %v451_v3  ;;  %435 = vmatpush3.bf16.msra.mxu1 %v451_v3 }
  0x36   :  { %408 = vmatprep.subr.bf16.mxu0 %v452_v6  ;;  %428 = vmatprep.subr.bf16.mxu1 %v452_v6 }
  0x39   :  { %409 = vmatpush3.bf16.msra.mxu0 %v452_v6  ;;  %436 = vmatpush3.bf16.msra.mxu1 %v452_v6 }
  0x3a   :  { %410 = vmatprep.subr.bf16.mxu0 %v453_v7  ;;  %429 = vmatprep.subr.bf16.mxu1 %v453_v7 }
  0x3d   :  { %411 = vmatpush3.bf16.msra.mxu0 %v453_v7  ;;  %437 = vmatpush3.bf16.msra.mxu1 %v453_v7 }
  0x3e   :  { %412 = vmatprep.subr.bf16.mxu0 %v454_v8  ;;  %430 = vmatprep.subr.bf16.mxu1 %v454_v8 }
  0x41   :  { %413 = vmatpush3.bf16.msra.mxu0 %v454_v8  ;;  %438 = vmatpush3.bf16.msra.mxu1 %v454_v8 }
  0x42   :  { %414 = vmatprep.subr.bf16.mxu0 %v455_v9  ;;  %431 = vmatprep.subr.bf16.mxu1 %v455_v9 }
  0x45   :  { %415 = vmatpush3.bf16.msra.mxu0 %v455_v9  ;;  %439 = vmatpush3.bf16.msra.mxu1 %v455_v9 }
  0x48   :  { %417 = vmatmul.mubr.bf16.vlgmr.msra.gmra.mrb[0].mxu0 %v458_v10  ;;  %421 = vmatmul.mubr.bf16.vlgmr.msra.gmra.mrb[0].mxu1 %v459_v11 }
 0x11b   :  { %v418_v12 = vpop.f32.mrb[0].mxu0  ;;  %v422_v13 = vpop.f32.mrb[0].mxu1 }
 0x11c   :  { %v382_v14 = vpack.c.bf16 %v418_v12, %v418_v12  ;;  %v386_v15 = vpack.c.bf16 %v422_v13, %v422_v13  ;;  %v175_v16 = vpop.f32.mrb[1].mxu0  ;;  %v191_v17 = vpop.f32.mrb[1].mxu1  ;;  %v266_v18 = vsel %vm247_vm0, %v422_v13, 0.0  ;;  %v254_v19 = vsel %vm247_vm0, %v418_v12, 0.0 }
 0x11d   :  { %v380_v20 = vpack.c.bf16 %v175_v16, %v175_v16  ;;  %v384_v21 = vpack.c.bf16 %v191_v17, %v191_v17  ;;  %267 = vadd.xlane.f32.xlu0 %v266_v18  ;;  %v423_v22 = vpop.f32.mrb[2].mxu1  ;;  %255 = vadd.xlane.f32.xlu1 %v254_v19  ;;  %v419_v23 = vpop.f32.mrb[2].mxu0  ;;  %v248_v30 = vsel %vm247_vm0, %v175_v16, 0.0  ;;  %v260_v32 = vsel %vm247_vm0, %v191_v17, 0.0 }
 0x11e   :  { %241 = vst.msk [vmem:[#allocation7 + $0x8] sm:$0xf] %vm238_vm1, %v382_v14  ;;  %245 = vst.msk [vmem:[#allocation7 + $0x18] sm:$0xf] %vm238_vm1, %v386_v15  ;;  %v387_v24 = vpack.c.bf16 %v423_v22, %v423_v22  ;;  %v383_v25 = vpack.c.bf16 %v419_v23, %v419_v23  ;;  %v178_v26 = vpop.f32.mrb[3].mxu0  ;;  %v194_v27 = vpop.f32.mrb[3].mxu1  ;;  %v274_v34 = vmul.f32 %v418_v12, %v418_v12 }
 0x11f   :  { %239 = vst.msk [vmem:[#allocation7] sm:$0xf] %vm238_vm1, %v380_v20  ;;  %243 = vst.msk [vmem:[#allocation7 + $0x10] sm:$0xf] %vm238_vm1, %v384_v21  ;;  %v381_v28 = vpack.c.bf16 %v178_v26, %v178_v26  ;;  %v385_v29 = vpack.c.bf16 %v194_v27, %v194_v27  ;;  %v257_v31 = vsel %vm247_vm0, %v419_v23, 0.0  ;;  %v269_v33 = vsel %vm247_vm0, %v423_v22, 0.0 }
 0x120   :  { %246 = vst.msk [vmem:[#allocation7 + $0x1c] sm:$0xf] %vm238_vm1, %v387_v24  ;;  %242 = vst.msk [vmem:[#allocation7 + $0xc] sm:$0xf] %vm238_vm1, %v383_v25  ;;  %v286_v35 = vsel %vm247_vm0, %v274_v34, 0.0  ;;  %v263_v36 = vsel %vm247_vm0, %v194_v27, 0.0  ;;  %v275_v37 = vmul.f32 %v419_v23, %v419_v23  ;;  %v273_v38 = vmul.f32 %v178_v26, %v178_v26 }
 0x121   :  { %240 = vst.msk [vmem:[#allocation7 + $0x4] sm:$0xf] %vm238_vm1, %v381_v28  ;;  %244 = vst.msk [vmem:[#allocation7 + $0x14] sm:$0xf] %vm238_vm1, %v385_v29  ;;  %249 = vadd.xlane.f32.xlu0 %v248_v30  ;;  %258 = vadd.xlane.f32.xlu1 %v257_v31  ;;  %v251_v40 = vsel %vm247_vm0, %v178_v26, 0.0  ;;  %v272_v41 = vmul.f32 %v175_v16, %v175_v16  ;;  %v277_v42 = vmul.f32 %v194_v27, %v194_v27 }
 0x122   :  { %v289_v39 = vsel %vm247_vm0, %v275_v37, 0.0  ;;  %v283_v43 = vsel %vm247_vm0, %v273_v38, 0.0  ;;  %v276_v45 = vmul.f32 %v191_v17, %v191_v17  ;;  %v279_v48 = vmul.f32 %v423_v22, %v423_v22 }
 0x123   :  { %v280_v44 = vsel %vm247_vm0, %v272_v41, 0.0  ;;  %v295_v46 = vsel %vm247_vm0, %v277_v42, 0.0  ;;  %v278_v49 = vmul.f32 %v422_v13, %v422_v13 }
 0x124   :  { %v292_v47 = vsel %vm247_vm0, %v276_v45, 0.0  ;;  %v301_v50 = vsel %vm247_vm0, %v279_v48, 0.0 }
 0x125   :  { %261 = vadd.xlane.f32.xlu0 %v260_v32  ;;  %270 = vadd.xlane.f32.xlu1 %v269_v33  ;;  %v298_v51 = vsel %vm247_vm0, %v278_v49, 0.0 }
 0x129   :  { %287 = vadd.xlane.f32.xlu0 %v286_v35  ;;  %264 = vadd.xlane.f32.xlu1 %v263_v36 }
 0x12d   :  { %290 = vadd.xlane.f32.xlu1 %v289_v39  ;;  %252 = vadd.xlane.f32.xlu0 %v251_v40 }
 0x131   :  { %284 = vadd.xlane.f32.xlu1 %v283_v43  ;;  %281 = vadd.xlane.f32.xlu0 %v280_v44 }
 0x135   :  { %296 = vadd.xlane.f32.xlu1 %v295_v46  ;;  %293 = vadd.xlane.f32.xlu0 %v292_v47 }
 0x139   :  { %302 = vadd.xlane.f32.xlu1 %v301_v50  ;;  %299 = vadd.xlane.f32.xlu0 %v298_v51 }
 0x13a   :  { %515 = shalt.err (!%p512_p6)
}
 0x13b   :  { %s516_s14 = scalar_lea.hbm %s683_s2, 512 }
 0x13c   :  { %p517_p7 = scmp.ne.s32.totalorder %s683_s2, %s516_s14  ;;  %p520_p8 = scmp.lt.u32.totalorder %s516_s14, %s683_s2 }
 0x13e   :  { %p522_p9 = pnand %p520_p8, %p517_p7 }
 0x140   :  { %525 = shalt.err (!%p522_p9)
}
 0x141   :  { %333 = dma.vmem_to_hbm [thread:$0]  %s328_s10, 512, %s683_s2, [#allocation4], %s557_s22, %s557_s22, %s558_s23   ;;  %vm304_vm2 = vcmask 7168   ;;  %vm313_vm3 = vcmask 15360  }
 0x142   :  { %s561_s2 = smov [#allocation8]  }
 0x143   :  { %s343_s21 = sshll.u32 %s561_s2, 4  ;;  %s344_s21 = int_to_ptr.vmem [resolvable:$true] %s343_s21 }
 0x144   :  { %s526_s22 = scalar_lea.vmem %s344_s21, 1024  ;;  %p531_p11 = scmp.lt.s32.totalorder %s344_s21, %s344_s21 }
 0x145   :  { %p527_p10 = scmp.ne.s32.totalorder %s344_s21, %s526_s22  ;;  %p532_p12 = scmp.lt.s32.totalorder %s526_s22, %s526_s22 }
 0x147   :  { %p533_p13 = por %p532_p12, %p531_p11 }
 0x149   :  { %p534_p0 = pnand %p533_p13, %p527_p10 }
 0x1aa   :  { %v268_v52 = vpop.xlane.xlu0 %267  ;;  %v256_v53 = vpop.xlane.xlu1 %255 }
 0x1ae   :  { %v250_v54 = vpop.xlane.xlu0 %249  ;;  %v259_v55 = vpop.xlane.xlu1 %258 }
 0x1b2   :  { %v262_v56 = vpop.xlane.xlu0 %261  ;;  %v271_v57 = vpop.xlane.xlu1 %270 }
 0x1b6   :  { %v288_v58 = vpop.xlane.xlu0 %287  ;;  %v265_v59 = vpop.xlane.xlu1 %264 }
 0x1b7   :  { %v307_v60 = vsel %vm304_vm2, %v256_v53, %v288_v58 }
 0x1b8   :  { %316 = vst.msk [vmem:[#allocation8 + $0x10] sm:$0xff] %vm313_vm3, %v307_v60 }
 0x1ba   :  { %v291_v61 = vpop.xlane.xlu1 %290  ;;  %v253_v62 = vpop.xlane.xlu0 %252 }
 0x1bb   :  { %v308_v63 = vsel %vm304_vm2, %v259_v55, %v291_v61 }
 0x1bc   :  { %317 = vst.msk [vmem:[#allocation8 + $0x18] sm:$0xff] %vm313_vm3, %v308_v63 }
 0x1be   :  { %v285_v0 = vpop.xlane.xlu1 %284  ;;  %v282_v1 = vpop.xlane.xlu0 %281 }
 0x1bf   :  { %v306_v2 = vsel %vm304_vm2, %v253_v62, %v285_v0  ;;  %v305_v3 = vsel %vm304_vm2, %v250_v54, %v282_v1 }
 0x1c0   :  { %315 = vst.msk [vmem:[#allocation8 + $0x8] sm:$0xff] %vm313_vm3, %v306_v2  ;;  %314 = vst.msk [vmem:[#allocation8] sm:$0xff] %vm313_vm3, %v305_v3 }
 0x1c2   :  { %v297_v4 = vpop.xlane.xlu1 %296  ;;  %v294_v5 = vpop.xlane.xlu0 %293 }
 0x1c3   :  { %v310_v6 = vsel %vm304_vm2, %v265_v59, %v297_v4  ;;  %v309_v7 = vsel %vm304_vm2, %v262_v56, %v294_v5 }
 0x1c4   :  { %319 = vst.msk [vmem:[#allocation8 + $0x28] sm:$0xff] %vm313_vm3, %v310_v6  ;;  %318 = vst.msk [vmem:[#allocation8 + $0x20] sm:$0xff] %vm313_vm3, %v309_v7 }
 0x1c6   :  { %v303_v8 = vpop.xlane.xlu1 %302  ;;  %v300_v9 = vpop.xlane.xlu0 %299 }
 0x1c7   :  { %v312_v10 = vsel %vm304_vm2, %v271_v57, %v303_v8  ;;  %v311_v11 = vsel %vm304_vm2, %v268_v52, %v300_v9 }
 0x1c8   :  { %321 = vst.msk [vmem:[#allocation8 + $0x38] sm:$0xff] %vm313_vm3, %v312_v10  ;;  %320 = vst.msk [vmem:[#allocation8 + $0x30] sm:$0xff] %vm313_vm3, %v311_v11 }
 0x1c9   :  { %537 = shalt.err (!%p534_p0)
}
 0x1ca   :  { %s538_s25 = scalar_lea.hbm %s684_s3, 1024 }
 0x1cb   :  { %p539_p1 = scmp.ne.s32.totalorder %s684_s3, %s538_s25  ;;  %p542_p2 = scmp.lt.u32.totalorder %s538_s25, %s684_s3 }
 0x1cd   :  { %p544_p3 = pnand %p542_p2, %p539_p1 }
 0x1cf   :  { %547 = shalt.err (!%p544_p3)
}
 0x1d0   :  { %s562_s30 = smov 128   ;;  %s563_s4 = smov 8  }
 0x1d1   :  { %349 = dma.vmem_to_hbm [thread:$0]  %s344_s21, 1024, %s684_s3, [#allocation9], %s562_s30, %s562_s30, %s563_s4  }
 0x1d2   :  { %552 = dma.done.wait [#allocation4], 512  }
 0x1d3   :  { %553 = vsyncadd [#allocation4], 4294966784 }
 0x1d4   :  { %554 = dma.done.wait [#allocation9], 1024  }
 0x1d5   :  { %555 = vsyncadd [#allocation9], 4294966272 }
 0x1d6   :  { %356 = vsyncpa [#allocation3], 1 }
 0x1d7   :  { %357 = vsyncpa [#allocation6], 1 }
 0x1d8   :  { %358 = vsyncpa [#allocation4], 1 }
 0x1d9   :  { %359 = vsyncpa [#allocation9], 1 }

// kernel: generator_forward.11
= control target key start
LH: loop header
LB: loop body
LE: loop exit
PB: predicated region body
PF: predicated region fallthrough
CT: control target
= control target key end

     0   :  { %8 = vsyncpa [#allocation3], 0  ;;  %s488_s0 = inlined_call_operand.hbm [shape: bf16[1,64,32], index: 0, kind: input, shape index: {}]   ;;  %s489_s1 = inlined_call_operand.hbm [shape: f32[64,1], index: 1, kind: input, shape index: {}]   ;;  %s490_s2 = inlined_call_operand.hbm [shape: f32[64,1], index: 2, kind: input, shape index: {}]   ;;  %s491_s3 = inlined_call_operand.hbm [shape: bf16[1,64,32], index: 3, kind: output, shape index: {}]  }
   0x1   :  { %9 = vsyncpa [#allocation6], 0 }
   0x2   :  { %10 = vsyncpa [#allocation4], 0  ;;  %s391_s12 = smov [#allocation5]   ;;  %s297_s16 = scalar_lea.hbm %s489_s1, 1024 }
   0x3   :  { %s28_s13 = sshll.u32 %s391_s12, 4  ;;  %p298_p0 = scmp.ne.s32.totalorder %s489_s1, %s297_s16  ;;  %s29_s13 = int_to_ptr.vmem [resolvable:$true] %s28_s13 }
   0x4   :  { %p301_p1 = scmp.lt.u32.totalorder %s297_s16, %s489_s1 }
   0x6   :  { %p303_p2 = pnand %p301_p1, %p298_p0 }
   0x8   :  { %306 = shalt.err (!%p303_p2)
}
   0x9   :  { %s307_s21 = scalar_lea.vmem %s29_s13, 1024  ;;  %p312_p4 = scmp.lt.s32.totalorder %s29_s13, %s29_s13 }
   0xa   :  { %p308_p3 = scmp.ne.s32.totalorder %s29_s13, %s307_s21  ;;  %p313_p5 = scmp.lt.s32.totalorder %s307_s21, %s307_s21 }
   0xc   :  { %p314_p6 = por %p313_p5, %p312_p4 }
   0xe   :  { %p315_p7 = pnand %p314_p6, %p308_p3 }
  0x10   :  { %318 = shalt.err (!%p315_p7)
}
  0x11   :  { %s392_s22 = smov 128   ;;  %s393_s23 = smov 8  }
  0x12   :  { %34 = dma.hbm_to_vmem [thread:$0]  %s489_s1, 1024, %s29_s13, [#allocation6], %s392_s22, %s392_s22, %s393_s23  }
  0x13   :  { %s394_s26 = smov [#allocation2]   ;;  %s319_s30 = scalar_lea.hbm %s488_s0, 512 }
  0x14   :  { %s16_s27 = sshll.u32 %s394_s26, 4  ;;  %p320_p8 = scmp.ne.s32.totalorder %s488_s0, %s319_s30  ;;  %s17_s27 = int_to_ptr.vmem [resolvable:$true] %s16_s27 }
  0x15   :  { %p323_p9 = scmp.lt.u32.totalorder %s319_s30, %s488_s0 }
  0x17   :  { %p325_p10 = pnand %p323_p9, %p320_p8 }
  0x19   :  { %328 = shalt.err (!%p325_p10)
}
  0x1a   :  { %s329_s8 = scalar_lea.vmem %s17_s27, 512  ;;  %p334_p12 = scmp.lt.s32.totalorder %s17_s27, %s17_s27 }
  0x1b   :  { %p330_p11 = scmp.ne.s32.totalorder %s17_s27, %s329_s8  ;;  %p335_p13 = scmp.lt.s32.totalorder %s329_s8, %s329_s8 }
  0x1d   :  { %p336_p0 = por %p335_p13, %p334_p12 }
  0x1f   :  { %p337_p1 = pnand %p336_p0, %p330_p11 }
  0x21   :  { %340 = shalt.err (!%p337_p1)
}
  0x22   :  { %s395_s1 = smov 64   ;;  %s396_s9 = smov 4  }
  0x23   :  { %22 = dma.hbm_to_vmem [thread:$0]  %s488_s0, 512, %s17_s27, [#allocation3], %s395_s1, %s395_s1, %s396_s9  }
  0x24   :  { %s397_s12 = smov [#allocation7]   ;;  %s341_s16 = scalar_lea.hbm %s490_s2, 1024 }
  0x25   :  { %s40_s13 = sshll.u32 %s397_s12, 4  ;;  %p342_p2 = scmp.ne.s32.totalorder %s490_s2, %s341_s16  ;;  %s41_s13 = int_to_ptr.vmem [resolvable:$true] %s40_s13 }
  0x26   :  { %p345_p3 = scmp.lt.u32.totalorder %s341_s16, %s490_s2 }
  0x28   :  { %p347_p4 = pnand %p345_p3, %p342_p2 }
  0x2a   :  { %350 = shalt.err (!%p347_p4)
}
  0x2b   :  { %s351_s21 = scalar_lea.vmem %s41_s13, 1024  ;;  %p356_p6 = scmp.lt.s32.totalorder %s41_s13, %s41_s13 }
  0x2c   :  { %p352_p5 = scmp.ne.s32.totalorder %s41_s13, %s351_s21  ;;  %p357_p7 = scmp.lt.s32.totalorder %s351_s21, %s351_s21 }
  0x2e   :  { %p358_p8 = por %p357_p7, %p356_p6 }
  0x30   :  { %p359_p9 = pnand %p358_p8, %p352_p5 }
  0x32   :  { %362 = shalt.err (!%p359_p9)
}
  0x33   :  { %46 = dma.hbm_to_vmem [thread:$0]  %s490_s2, 1024, %s41_s13, [#allocation6], %s392_s22, %s392_s22, %s393_s23  }
  0x34   :  { %385 = dma.done.wait [#allocation3], 512  }
  0x35   :  { %386 = vsyncadd [#allocation3], 4294966784 }
  0x36   :  { %387 = dma.done.wait [#allocation6], 2048  }
  0x37   :  { %388 = vsyncadd [#allocation6], 4294965248  ;;  %v398_v0 = vmov 0   ;;  %v74_v1 = vld [vmem:[#allocation5 + $0x10] sm:$0xff]  ;;  %v72_v2 = vld [vmem:[#allocation5] sm:$0xff]  ;;  %vm224_vm0 = vcmask 257024  }
  0x38   :  { %296 = vset.pattern.permute.xlu1 %v398_v0  ;;  %295 = vset.pattern.permute.xlu0 %v398_v0  ;;  %v75_v3 = vld [vmem:[#allocation5 + $0x18] sm:$0xff]  ;;  %v73_v4 = vld [vmem:[#allocation5 + $0x8] sm:$0xff]  ;;  %v76_v6 = vld [vmem:[#allocation5 + $0x20] sm:$0xff]  ;;  %s399_s2 = smov [#allocation8]  }
  0x39   :  { %92 = vperm.xlu1 %296, %v74_v1   ;;  %82 = vperm.xlu0 %295, %v72_v2   ;;  %v77_v5 = vld [vmem:[#allocation5 + $0x28] sm:$0xff]  ;;  %v79_v7 = vld [vmem:[#allocation5 + $0x38] sm:$0xff]  ;;  %v78_v8 = vld [vmem:[#allocation5 + $0x30] sm:$0xff]  ;;  %s238_s22 = sshll.u32 %s399_s2, 4  ;;  %s239_s22 = int_to_ptr.vmem [resolvable:$true] %s238_s22 }
  0x3a   :  { %v129_v9 = vld [vmem:[#allocation7 + $0x8] sm:$0xff]  ;;  %v128_v10 = vld [vmem:[#allocation7] sm:$0xff]  ;;  %v131_v11 = vld [vmem:[#allocation7 + $0x18] sm:$0xff]  ;;  %s363_s23 = scalar_lea.vmem %s239_s22, 512  ;;  %p368_p11 = scmp.lt.s32.totalorder %s239_s22, %s239_s22 }
  0x3b   :  { %v130_v12 = vld [vmem:[#allocation7 + $0x10] sm:$0xff]  ;;  %v133_v13 = vld [vmem:[#allocation7 + $0x28] sm:$0xff]  ;;  %v132_v14 = vld [vmem:[#allocation7 + $0x20] sm:$0xff]  ;;  %p364_p10 = scmp.ne.s32.totalorder %s239_s22, %s363_s23  ;;  %p369_p12 = scmp.lt.s32.totalorder %s363_s23, %s363_s23 }
  0x3c   :  { %v135_v15 = vld [vmem:[#allocation7 + $0x38] sm:$0xff]  ;;  %v134_v16 = vld [vmem:[#allocation7 + $0x30] sm:$0xff]  ;;  %v268_v21 = vld [vmem:[#allocation2] sm:$0xff]  }
  0x3d   :  { %97 = vperm.xlu1 %296, %v75_v3   ;;  %87 = vperm.xlu0 %295, %v73_v4   ;;  %v269_v24 = vunpack.c.l.bf16 %v268_v21  ;;  %v270_v25 = vunpack.c.h.bf16 %v268_v21  ;;  %v283_v26 = vld [vmem:[#allocation2 + $0x8] sm:$0xff]   ;;  %v284_v33 = vld [vmem:[#allocation2 + $0x10] sm:$0xff]   ;;  %v285_v42 = vld [vmem:[#allocation2 + $0x18] sm:$0xff]   ;;  %p370_p13 = por %p369_p12, %p368_p11 }
  0x3e   :  { %v273_v29 = vunpack.c.l.bf16 %v283_v26  ;;  %v274_v31 = vunpack.c.h.bf16 %v283_v26  ;;  %v278_v38 = vunpack.c.h.bf16 %v284_v33  ;;  %v277_v39 = vunpack.c.l.bf16 %v284_v33 }
  0x3f   :  { %v282_v51 = vunpack.c.h.bf16 %v285_v42  ;;  %v281_v52 = vunpack.c.l.bf16 %v285_v42  ;;  %p371_p0 = pnand %p370_p13, %p364_p10 }
  0x41   :  { %107 = vperm.xlu1 %296, %v77_v5   ;;  %102 = vperm.xlu0 %295, %v76_v6  }
  0x45   :  { %117 = vperm.xlu1 %296, %v79_v7   ;;  %112 = vperm.xlu0 %295, %v78_v8  }
  0x49   :  { %143 = vperm.xlu1 %296, %v129_v9   ;;  %138 = vperm.xlu0 %295, %v128_v10  }
  0x4d   :  { %153 = vperm.xlu1 %296, %v131_v11   ;;  %148 = vperm.xlu0 %295, %v130_v12  }
  0x51   :  { %163 = vperm.xlu1 %296, %v133_v13   ;;  %158 = vperm.xlu0 %295, %v132_v14  }
  0x55   :  { %173 = vperm.xlu1 %296, %v135_v15   ;;  %168 = vperm.xlu0 %295, %v134_v16  }
  0xb8   :  { %v93_v17 = vpop.permute.xlu1 %92  ;;  %v83_v18 = vpop.permute.xlu0 %82 }
  0xb9   :  { %v120_v30 = vmul.f32 %v269_v24, %v83_v18  ;;  %v122_v40 = vmul.f32 %v273_v29, %v93_v17 }
  0xbc   :  { %v98_v19 = vpop.permute.xlu1 %97  ;;  %v88_v20 = vpop.permute.xlu0 %87 }
  0xbd   :  { %v121_v32 = vmul.f32 %v270_v25, %v88_v20  ;;  %v123_v41 = vmul.f32 %v274_v31, %v98_v19 }
  0xc0   :  { %v108_v22 = vpop.permute.xlu1 %107  ;;  %v103_v23 = vpop.permute.xlu0 %102 }
  0xc1   :  { %v125_v53 = vmul.f32 %v278_v38, %v108_v22  ;;  %v124_v54 = vmul.f32 %v277_v39, %v103_v23 }
  0xc4   :  { %v118_v27 = vpop.permute.xlu1 %117  ;;  %v113_v28 = vpop.permute.xlu0 %112 }
  0xc5   :  { %v127_v63 = vmul.f32 %v282_v51, %v118_v27  ;;  %v126_v0 = vmul.f32 %v281_v52, %v113_v28 }
  0xc8   :  { %v144_v34 = vpop.permute.xlu1 %143  ;;  %v139_v35 = vpop.permute.xlu0 %138 }
  0xc9   :  { %v177_v36 = vadd.f32 %v144_v34, %v121_v32  ;;  %v176_v37 = vadd.f32 %v139_v35, %v120_v30 }
  0xcb   :  { %v185_v43 = vmax.f32 %v177_v36, 0.0  ;;  %v184_v44 = vmax.f32 %v176_v37, 0.0 }
  0xcc   :  { %v154_v45 = vpop.permute.xlu1 %153  ;;  %v149_v46 = vpop.permute.xlu0 %148 }
  0xcd   :  { %v260_v47 = vpack.c.bf16 %v185_v43, %v185_v43  ;;  %v259_v48 = vpack.c.bf16 %v184_v44, %v184_v44  ;;  %v179_v49 = vadd.f32 %v154_v45, %v123_v41  ;;  %v178_v50 = vadd.f32 %v149_v46, %v122_v40 }
  0xcf   :  { %226 = vst.msk [vmem:[#allocation8 + $0x4] sm:$0xf] %vm224_vm0, %v260_v47  ;;  %225 = vst.msk [vmem:[#allocation8] sm:$0xf] %vm224_vm0, %v259_v48  ;;  %v187_v55 = vmax.f32 %v179_v49, 0.0  ;;  %v186_v56 = vmax.f32 %v178_v50, 0.0 }
  0xd0   :  { %v164_v57 = vpop.permute.xlu1 %163  ;;  %v159_v58 = vpop.permute.xlu0 %158 }
  0xd1   :  { %v262_v59 = vpack.c.bf16 %v187_v55, %v187_v55  ;;  %v261_v60 = vpack.c.bf16 %v186_v56, %v186_v56  ;;  %v181_v61 = vadd.f32 %v164_v57, %v125_v53  ;;  %v180_v62 = vadd.f32 %v159_v58, %v124_v54 }
  0xd3   :  { %228 = vst.msk [vmem:[#allocation8 + $0xc] sm:$0xf] %vm224_vm0, %v262_v59  ;;  %227 = vst.msk [vmem:[#allocation8 + $0x8] sm:$0xf] %vm224_vm0, %v261_v60  ;;  %v189_v1 = vmax.f32 %v181_v61, 0.0  ;;  %v188_v2 = vmax.f32 %v180_v62, 0.0 }
  0xd4   :  { %v174_v3 = vpop.permute.xlu1 %173  ;;  %v169_v4 = vpop.permute.xlu0 %168 }
  0xd5   :  { %v264_v5 = vpack.c.bf16 %v189_v1, %v189_v1  ;;  %v263_v6 = vpack.c.bf16 %v188_v2, %v188_v2  ;;  %v183_v7 = vadd.f32 %v174_v3, %v127_v63  ;;  %v182_v8 = vadd.f32 %v169_v4, %v126_v0 }
  0xd7   :  { %230 = vst.msk [vmem:[#allocation8 + $0x14] sm:$0xf] %vm224_vm0, %v264_v5  ;;  %229 = vst.msk [vmem:[#allocation8 + $0x10] sm:$0xf] %vm224_vm0, %v263_v6  ;;  %v191_v9 = vmax.f32 %v183_v7, 0.0  ;;  %v190_v10 = vmax.f32 %v182_v8, 0.0 }
  0xd9   :  { %v266_v11 = vpack.c.bf16 %v191_v9, %v191_v9  ;;  %v265_v12 = vpack.c.bf16 %v190_v10, %v190_v10 }
  0xdb   :  { %232 = vst.msk [vmem:[#allocation8 + $0x1c] sm:$0xf] %vm224_vm0, %v266_v11  ;;  %231 = vst.msk [vmem:[#allocation8 + $0x18] sm:$0xf] %vm224_vm0, %v265_v12 }
  0xdc   :  { %374 = shalt.err (!%p371_p0)
}
  0xdd   :  { %s375_s27 = scalar_lea.hbm %s491_s3, 512 }
  0xde   :  { %p376_p1 = scmp.ne.s32.totalorder %s491_s3, %s375_s27  ;;  %p379_p2 = scmp.lt.u32.totalorder %s375_s27, %s491_s3 }
  0xe0   :  { %p381_p3 = pnand %p379_p2, %p376_p1 }
  0xe2   :  { %384 = shalt.err (!%p381_p3)
}
  0xe3   :  { %244 = dma.vmem_to_hbm [thread:$0]  %s239_s22, 512, %s491_s3, [#allocation4], %s395_s1, %s395_s1, %s396_s9  }
  0xe4   :  { %389 = dma.done.wait [#allocation4], 512  }
  0xe5   :  { %390 = vsyncadd [#allocation4], 4294966784 }
  0xe6   :  { %248 = vsyncpa [#allocation3], 1 }
  0xe7   :  { %249 = vsyncpa [#allocation6], 1 }
  0xe8   :  { %250 = vsyncpa [#allocation4], 1 }

// kernel: generator_forward.13
= control target key start
LH: loop header
LB: loop body
LE: loop exit
PB: predicated region body
PF: predicated region fallthrough
CT: control target
= control target key end

     0   :  { %8 = vsyncpa [#allocation3], 0  ;;  %s1032_s0 = inlined_call_operand.hbm [shape: bf16[4,32,32], index: 0, kind: input, shape index: {}]   ;;  %s1033_s1 = inlined_call_operand.hbm [shape: f32[32,1], index: 1, kind: input, shape index: {}]   ;;  %s1034_s2 = inlined_call_operand.hbm [shape: f32[32,1], index: 2, kind: input, shape index: {}]   ;;  %s1035_s3 = inlined_call_operand.hbm [shape: bf16[4,32,32], index: 3, kind: output, shape index: {}]  }
   0x1   :  { %10 = vsyncpa [#allocation3 + $0x1], 0 }
   0x2   :  { %11 = vsyncpa [#allocation6], 0 }
   0x3   :  { %12 = vsyncpa [#allocation4], 0 }
   0x4   :  { %14 = vsyncpa [#allocation4 + $0x1], 0  ;;  %s778_s12 = smov 0   ;;  %s780_s13 = smov 0  }
   0x5   :  { %s782_s14 = smov 0   ;;  %s784_s15 = smov 0  }
   0x6   :  { %s786_s16 = smov 0   ;;  %s788_s17 = smov 0  }
   0x7 LB: > { %s443_s18 = sadd.s32 4294967295, %s745_s17   ;;  %s444_s19 = sadd.s32 4294967294, %s745_s17   ;;  %s745_s17 = sphi %s788_s17, %s20_s17   ;;  %s741_s16 = sphi %s786_s16, %s1057_s16   ;;  %s737_s15 = sphi %s784_s15, %s1056_s15   ;;  %s733_s14 = sphi %s782_s14, %s1055_s14   ;;  %s729_s13 = sphi %s780_s13, %s1054_s13   ;;  %s725_s12 = sphi %s778_s12, %s1053_s12  }
   0x8   : > { %p54_p0 = scmp.ne.s32.totalorder %s729_s13, %s725_s12  ;;  %p812_p1 = scmp.eq.s32.totalorder %s443_s18, 0 }
   0x9   : > { %p816_p2 = scmp.eq.s32.totalorder %s443_s18, 3  ;;  %p128_p3 = scmp.eq.s32.totalorder %s444_s19, 3 }
   0xa   : > { %s1040_s20 = scalar_select %p812_p1, 1, 0 }
   0xb   : > { %s1041_s21 = scalar_select %p816_p2, 1, 0 }
   0xc   : > { %p822_p4 = por %p812_p1, %p54_p0  ;;  %p445_p5 = scmp.ge.s32.totalorder %s745_s17, 1 }
   0xd   : > { %p827_p6 = por %p128_p3, %p54_p0  ;;  %p135_p7 = scmp.lt.s32.totalorder %s745_s17, 5 }
   0xe   : > { %s1042_s22 = scalar_select %p822_p4, 1, 0 }
   0xf   : > { %s1043_s23 = scalar_select %p827_p6, 1, 0 }
  0x10   : > { %p832_p8 = pnand %p445_p5, %p135_p7  ;;  %s747_s25 = smov [#allocation5]  }
  0x11   : > { %s147_s26 = sshll.u32 %s747_s25, 4  ;;  %s748_s28 = smov [#allocation7]   ;;  %s148_s26 = int_to_ptr.vmem [resolvable:$true] %s147_s26 }
  0x12   : > { %s1044_s24 = scalar_select %p832_p8, 1, 0 }
  0x13   : > { %p493_p9 = pneg %p832_p8  ;;  %s160_s29 = sshll.u32 %s748_s28, 4  ;;  %s844_s29 = int_to_ptr.vmem [resolvable:$true] %s160_s29 }
  0x14   : > { %s573_s5 = scalar_lea.hbm %s1033_s1, 512 }
  0x15   : > { %p840_p10 = pnand %p493_p9, %p812_p1  ;;  %p574_p11 = scmp.ne.s32.totalorder %s1033_s1, %s573_s5 }
  0x16   : > { %p580_p3 = scmp.lt.u32.totalorder %s573_s5, %s1033_s1 }
  0x17   : > { %p575_p12 = pneg %p840_p10 }
  0x19   : > { %p576_p13 = pnand %p575_p12, %p574_p11 }
  0x1b   : > { %p577_p0 = pneg %p576_p13 }
  0x1d   : > { %p582_p5 = pnand %p580_p3, %p577_p0 }
  0x1f   : > { %585 = shalt.err (!%p582_p5)
}
  0x20   : > { %s586_s10 = scalar_lea.vmem %s148_s26, 512  ;;  %p594_p1 = scmp.lt.s32.totalorder %s148_s26, %s148_s26 }
  0x21   : > { %p587_p7 = scmp.ne.s32.totalorder %s148_s26, %s586_s10  ;;  %p595_p4 = scmp.lt.s32.totalorder %s586_s10, %s586_s10 }
  0x23   : > { %p589_p9 = pnand %p587_p7, %p575_p12  ;;  %p596_p8 = por %p595_p4, %p594_p1 }
  0x25   : > { %p590_p6 = pneg %p589_p9 }
  0x27   : > { %p597_p2 = pnand %p596_p8, %p590_p6 }
  0x29   : > { %600 = shalt.err (!%p597_p2)
}
  0x2a   : > { %s749_s11 = smov 128   ;;  %s750_s18 = smov 8  }
  0x2b   : > { %496 = dma.hbm_to_vmem [thread:$0]  (!%p840_p10), %s1033_s1, 512, %s148_s26, [#allocation6], %s749_s11, %s749_s11, %s750_s18  }
  0x2c   : > { %s601_s4 = scalar_lea.hbm %s1034_s2, 512 }
  0x2d   : > { %p602_p11 = scmp.ne.s32.totalorder %s1034_s2, %s601_s4  ;;  %p608_p4 = scmp.lt.u32.totalorder %s601_s4, %s1034_s2 }
  0x2f   : > { %p604_p1 = pnand %p602_p11, %p575_p12 }
  0x31   : > { %p605_p2 = pneg %p604_p1 }
  0x33   : > { %p610_p6 = pnand %p608_p4, %p605_p2 }
  0x35   : > { %613 = shalt.err (!%p610_p6)
}
  0x36   : > { %s614_s26 = scalar_lea.vmem %s844_s29, 512  ;;  %p622_p3 = scmp.lt.s32.totalorder %s844_s29, %s844_s29 }
  0x37   : > { %p615_p8 = scmp.ne.s32.totalorder %s844_s29, %s614_s26  ;;  %p623_p5 = scmp.lt.s32.totalorder %s614_s26, %s614_s26 }
  0x39   : > { %p617_p13 = pnand %p615_p8, %p575_p12  ;;  %p624_p7 = por %p623_p5, %p622_p3 }
  0x3b   : > { %p618_p0 = pneg %p617_p13 }
  0x3d   : > { %p625_p9 = pnand %p624_p7, %p618_p0 }
  0x3f   : > { %628 = shalt.err (!%p625_p9)
}
  0x40   : > { %499 = dma.hbm_to_vmem [thread:$0]  (!%p840_p10), %s1034_s2, 512, %s844_s29, [#allocation6], %s749_s11, %s749_s11, %s750_s18  }
  0x41   : > { %s32_s19 = sadd.s32 1, %s741_s16  ;;  %s41_s25 = sadd.s32 1, %s733_s14 }
  0x42   : > { %p34_p12 = scmp.ge.s32.totalorder %s32_s19, 4  ;;  %p48_p11 = scmp.ne.s32.totalorder %s733_s14, %s729_s13 }
  0x43   : > { %p49_p1 = scmp.eq.s32.totalorder %s745_s17, 0  ;;  %p510_p2 = scmp.lt.s32.totalorder %s745_s17, 4 }
  0x44   : > { %s1059_s19 = smov (%p34_p12, %s32_s19), 0  ;;  %p1046_p6 = scmp.ne.s32.totalorder %s1041_s21, 0 }
  0x45   : > { %p50_p4 = por %p49_p1, %p48_p11  ;;  %s36_s28 = ssub.s32 %s741_s16, %s1059_s19 }
  0x46   : > { %p903_p8 = por %p1046_p6, %p48_p11  ;;  %s174_s30 = sand.u32 1, %s733_s14  }
  0x47   : > { %p39_p13 = scmp.eq.s32.totalorder %s36_s28, 0  ;;  %s449_s29 = sshll.u32 %s174_s30, 4 }
  0x48   : > { %s466_s11 = sshll.u32 %s741_s16, 8  ;;  %s178_s21 = scalar_lea.vmem [#allocation2], %s449_s29 }
  0x49   : > { %s912_s18 = scalar_select %p39_p13, %s733_s14, %s41_s25  }
  0x4a   : > { %s917_s6 = scalar_lea.hbm %s1032_s0, %s466_s11  ;;  %s186_s7 = sshll.u32 %s178_s21, 4  ;;  %s925_s7 = int_to_ptr.vmem [resolvable:$true] %s186_s7 }
  0x4b   : > { %p921_p10 = pnand %p510_p2, %p50_p4  ;;  %s927_s26 = scalar_lea.sflag [#allocation3], %s174_s30 }
  0x4c   : > { %s629_s9 = scalar_lea.hbm %s917_s6, 256  ;;  %s634_s28 = scalar_lea.hbm %s1032_s0, 1024 }
  0x4d   : > { %p630_p0 = scmp.ne.s32.totalorder %s917_s6, %s629_s9  ;;  %p631_p3 = pneg %p921_p10 }
  0x4e   : > { %p635_p9 = scmp.lt.u32.totalorder %s917_s6, %s1032_s0  ;;  %p636_p12 = scmp.lt.u32.totalorder %s634_s28, %s629_s9 }
  0x4f   : > { %p632_p5 = pnand %p631_p3, %p630_p0  ;;  %p638_p1 = scmp.lt.u32.totalorder %s629_s9, %s917_s6 }
  0x50   : > { %p637_p11 = por %p636_p12, %p635_p9 }
  0x51   : > { %p633_p7 = pneg %p632_p5 }
  0x52   : > { %p639_p2 = por %p638_p1, %p637_p11 }
  0x54   : > { %p640_p4 = pnand %p639_p2, %p633_p7 }
  0x56   : > { %643 = shalt.err (!%p640_p4)
}
  0x57   : > { %s644_s30 = scalar_lea.vmem %s925_s7, 256  ;;  %s751_s4 = smov [#allocation2]  }
  0x58   : > { %p645_p6 = scmp.ne.s32.totalorder %s925_s7, %s644_s30  ;;  %s649_s5 = sshll.u32 %s751_s4, 4  ;;  %s650_s5 = int_to_ptr.vmem [resolvable:$false] %s649_s5 }
  0x59   : > { %s651_s21 = scalar_lea.vmem %s650_s5, 512  ;;  %p652_p5 = scmp.lt.s32.totalorder %s925_s7, %s650_s5 }
  0x5a   : > { %p647_p13 = pnand %p645_p6, %p631_p3  ;;  %p653_p9 = scmp.lt.s32.totalorder %s651_s21, %s644_s30 }
  0x5c   : > { %p648_p0 = pneg %p647_p13  ;;  %p654_p12 = por %p653_p9, %p652_p5 }
  0x5e   : > { %p655_p11 = pnand %p654_p12, %p648_p0 }
  0x60   : > { %658 = shalt.err (!%p655_p11)
}
  0x61   : > { %s752_s9 = smov 64   ;;  %s753_s10 = smov 4  }
  0x62   : > { %503 = dma.hbm_to_vmem [thread:$0]  (!%p921_p10), %s917_s6, 256, %s925_s7, %s927_s26, %s752_s9, %s752_s9, %s753_s10  }
  0x63   : > { %p1049_p3 = scmp.ne.s32.totalorder %s1044_s24, 0 }
  0x64   : > { %s958_s25 = sand.u32 (!%p1049_p3), 1, %s729_s13   ;;  %p1050_p7 = scmp.ne.s32.totalorder (!%p1049_p3), %s1042_s22, 0 }
  0x65   : > { %198 = sbr.rel (%p1049_p3) target bundleno = 275 (0x113), region = 32  ;;  %s453_s28 = sshll.u32 (!%p1049_p3), %s958_s25, 4 }
  0x66   : > { %s201_s29 = scalar_lea.sflag (!%p1049_p3), [#allocation3], %s958_s25  ;;  %s204_s11 = scalar_lea.vmem (!%p1049_p3), [#allocation2], %s453_s28 }
  0x6c   : > { %712 = dma.done.wait (%p1050_p7), %s201_s29, 256  }
  0x6d   : > { %714 = vsyncadd (%p1050_p7), %s201_s29, 4294967040  ;;  %p1051_p10 = scmp.ne.s32.totalorder %s1040_s20, 0 }
  0x6f   : > { %716 = dma.done.wait (%p1051_p10), [#allocation6], 1024  }
  0x70   : > { %718 = vsyncadd (%p1051_p10), [#allocation6], 4294966272  ;;  %v754_v0 = vmov 0   ;;  %v245_v1 = vld [vmem:[#allocation5 + $0x10] sm:$0xff]  ;;  %v243_v2 = vld [vmem:[#allocation5] sm:$0xff]  ;;  %vm319_vm0 = vcmask 257024  }
  0x71   : > { %572 = vset.pattern.permute.xlu1 %v754_v0  ;;  %571 = vset.pattern.permute.xlu0 %v754_v0  ;;  %v246_v3 = vld [vmem:[#allocation5 + $0x18] sm:$0xff]  ;;  %v244_v4 = vld [vmem:[#allocation5 + $0x8] sm:$0xff]  ;;  %v271_v6 = vld [vmem:[#allocation7] sm:$0xff]  ;;  %s234_s20 = scalar_lea.vmem [#allocation8], %s453_s28  ;;  %s471_s24 = sshll.u32 %s737_s15, 8 }
  0x72   : > { %259 = vperm.xlu1 %572, %v245_v1   ;;  %249 = vperm.xlu0 %571, %v243_v2   ;;  %v272_v5 = vld [vmem:[#allocation7 + $0x8] sm:$0xff]  ;;  %v274_v7 = vld [vmem:[#allocation7 + $0x18] sm:$0xff]  ;;  %v273_v8 = vld [vmem:[#allocation7 + $0x10] sm:$0xff]  ;;  %s339_s22 = sshll.u32 %s234_s20, 4  ;;  %s982_s8 = scalar_lea.hbm %s1035_s3, %s471_s24  ;;  %s975_s22 = int_to_ptr.vmem [resolvable:$true] %s339_s22 }
  0x73   : > { %v473_v11 = vld [vmem:[%s204_s11] sm:$0xff]   ;;  %v480_v14 = vld [vmem:[%s204_s11 + $0x8] sm:$0xff]   ;;  %s325_s15 = scalar_lea.sflag [#allocation4], %s958_s25  ;;  %s659_s26 = scalar_lea.vmem %s975_s22, 256 }
  0x74   : > { %v474_v12 = vunpack.c.l.bf16 %v473_v11  ;;  %v475_v13 = vunpack.c.h.bf16 %v473_v11  ;;  %v478_v17 = vunpack.c.l.bf16 %v480_v14  ;;  %v479_v19 = vunpack.c.h.bf16 %v480_v14  ;;  %p660_p1 = scmp.ne.s32.totalorder %s975_s22, %s659_s26  ;;  %s755_s30 = smov [#allocation8]  }
  0x75   : > { %s663_s4 = sshll.u32 %s755_s30, 4  ;;  %s664_s4 = int_to_ptr.vmem [resolvable:$false] %s663_s4 }
  0x76   : > { %264 = vperm.xlu1 %572, %v246_v3   ;;  %254 = vperm.xlu0 %571, %v244_v4   ;;  %p661_p2 = pnand %p660_p1, %p903_p8  ;;  %s665_s5 = scalar_lea.vmem %s664_s4, 512 }
  0x77   : > { %p666_p6 = scmp.lt.s32.totalorder %s975_s22, %s664_s4  ;;  %p667_p13 = scmp.lt.s32.totalorder %s665_s5, %s659_s26 }
  0x78   : > { %p662_p4 = pneg %p661_p2 }
  0x79   : > { %p668_p0 = por %p667_p13, %p666_p6 }
  0x7a   : > { %282 = vperm.xlu1 %572, %v272_v5   ;;  %277 = vperm.xlu0 %571, %v271_v6  }
  0x7b   : > { %p669_p5 = pnand %p668_p0, %p662_p4 }
  0x7e   : > { %292 = vperm.xlu1 %572, %v274_v7   ;;  %287 = vperm.xlu0 %571, %v273_v8  }
  0xf1   : > { %v260_v9 = vpop.permute.xlu1 %259  ;;  %v250_v10 = vpop.permute.xlu0 %249 }
  0xf2   : > { %v267_v18 = vmul.f32 %v474_v12, %v250_v10  ;;  %v269_v25 = vmul.f32 %v478_v17, %v260_v9 }
  0xf5   : > { %v265_v15 = vpop.permute.xlu1 %264  ;;  %v255_v16 = vpop.permute.xlu0 %254 }
  0xf6   : > { %v268_v20 = vmul.f32 %v475_v13, %v255_v16  ;;  %v270_v26 = vmul.f32 %v479_v19, %v265_v15 }
  0xf9   : > { %v283_v21 = vpop.permute.xlu1 %282  ;;  %v278_v22 = vpop.permute.xlu0 %277 }
  0xfa   : > { %v296_v23 = vadd.f32 %v283_v21, %v268_v20  ;;  %v295_v24 = vadd.f32 %v278_v22, %v267_v18 }
  0xfc   : > { %v300_v27 = vmax.f32 %v296_v23, 0.0  ;;  %v299_v28 = vmax.f32 %v295_v24, 0.0 }
  0xfd   : > { %v293_v29 = vpop.permute.xlu1 %292  ;;  %v288_v30 = vpop.permute.xlu0 %287 }
  0xfe   : > { %v468_v31 = vpack.c.bf16 %v300_v27, %v300_v27  ;;  %v467_v32 = vpack.c.bf16 %v299_v28, %v299_v28  ;;  %v298_v33 = vadd.f32 %v293_v29, %v270_v26  ;;  %v297_v34 = vadd.f32 %v288_v30, %v269_v25 }
 0x100   : > { %321 = vst.msk [vmem:[%s234_s20 + $0x4] sm:$0xf] %vm319_vm0, %v468_v31  ;;  %320 = vst.msk [vmem:[%s234_s20] sm:$0xf] %vm319_vm0, %v467_v32  ;;  %v302_v35 = vmax.f32 %v298_v33, 0.0  ;;  %v301_v36 = vmax.f32 %v297_v34, 0.0 }
 0x102   : > { %v470_v37 = vpack.c.bf16 %v302_v35, %v302_v35  ;;  %v469_v38 = vpack.c.bf16 %v301_v36, %v301_v36 }
 0x104   : > { %323 = vst.msk [vmem:[%s234_s20 + $0xc] sm:$0xf] %vm319_vm0, %v470_v37  ;;  %322 = vst.msk [vmem:[%s234_s20 + $0x8] sm:$0xf] %vm319_vm0, %v469_v38 }
 0x105   : > { %672 = shalt.err (!%p669_p5)
}
 0x106   : > { %s673_s21 = scalar_lea.hbm %s982_s8, 256  ;;  %s677_s28 = scalar_lea.hbm %s1035_s3, 1024 }
 0x107   : > { %p674_p9 = scmp.ne.s32.totalorder %s982_s8, %s673_s21  ;;  %p678_p3 = scmp.lt.u32.totalorder %s982_s8, %s1035_s3 }
 0x108   : > { %p679_p7 = scmp.lt.u32.totalorder %s677_s28, %s673_s21  ;;  %p681_p1 = scmp.lt.u32.totalorder %s673_s21, %s982_s8 }
 0x109   : > { %p675_p12 = pnand %p674_p9, %p903_p8 }
 0x10a   : > { %p680_p10 = por %p679_p7, %p678_p3 }
 0x10b   : > { %p676_p11 = pneg %p675_p12 }
 0x10c   : > { %p682_p2 = por %p681_p1, %p680_p10 }
 0x10e   : > { %p683_p4 = pnand %p682_p2, %p676_p11 }
 0x110   : > { %686 = shalt.err (!%p683_p4)
}
 0x111   : > { %s756_s20 = smov 64   ;;  %s757_s24 = smov 4  }
 0x112   : > { %491 = dma.vmem_to_hbm [thread:$0]  (%p903_p8), %s975_s22, 256, %s982_s8, %s325_s15, %s756_s20, %s756_s20, %s757_s24  }
 0x113 PF: > { %p513_p6 = scmp.ge.s32.totalorder %s745_s17, 2  ;;  %s354_s6 = sand.u32 1, %s725_s12  }
 0x114   : > { %p1052_p13 = scmp.ne.s32.totalorder %s1043_s23, 0  ;;  %s355_s7 = scalar_lea.sflag [#allocation4], %s354_s6 }
 0x116   : > { %p505_p0 = pnand %p513_p6, %p1052_p13 }
 0x118   : > { %720 = dma.done.wait (!%p505_p0), %s355_s7, 256  }
 0x119   : > { %722 = vsyncadd (!%p505_p0), %s355_s7, 4294967040  ;;  %s20_s17 = sadd.s32 1, %s745_s17   ;;  %s1053_s12 = smov %s729_s13 }
 0x11a   : > { %p17_p5 = scmp.ge.s32.totalorder %s20_s17, 6   ;;  %s1054_s13 = smov %s733_s14 }
 0x11b   : > { %s1055_s14 = smov %s912_s18  ;;  %s1056_s15 = smov %s741_s16 }
 0x11c   : > { %s1057_s16 = smov %s1059_s19  ;;  %19 = sbr.rel (!%p17_p5) target bundleno = 7 (0x7), region = 85 }
 0x123   :  { %360 = vsyncpa [#allocation3], 1 }
 0x124   :  { %362 = vsyncpa [#allocation3 + $0x1], 1 }
 0x125   :  { %363 = vsyncpa [#allocation6], 1 }
 0x126   :  { %364 = vsyncpa [#allocation4], 1 }
 0x127   :  { %366 = vsyncpa [#allocation4 + $0x1], 1 }

// kernel: generator_forward.12
= control target key start
LH: loop header
LB: loop body
LE: loop exit
PB: predicated region body
PF: predicated region fallthrough
CT: control target
= control target key end

     0   :  { %9 = vsyncpa [#allocation3], 0  ;;  %s1417_s0 = inlined_call_operand.hbm [shape: bf16[4,32,256], index: 0, kind: input, shape index: {}]   ;;  %s1418_s1 = inlined_call_operand.hbm [shape: bf16[4,256,32], index: 1, kind: input, shape index: {}]   ;;  %s1419_s2 = inlined_call_operand.hbm [shape: bf16[4,32,32], index: 2, kind: output, shape index: {0}]   ;;  %s1420_s3 = inlined_call_operand.hbm [shape: f32[4,32,2], index: 3, kind: output, shape index: {1}]  }
   0x1   :  { %11 = vsyncpa [#allocation3 + $0x1], 0 }
   0x2   :  { %12 = vsyncpa [#allocation6], 0 }
   0x3   :  { %14 = vsyncpa [#allocation6 + $0x1], 0 }
   0x4   :  { %15 = vsyncpa [#allocation4], 0 }
   0x5   :  { %17 = vsyncpa [#allocation4 + $0x1], 0 }
   0x6   :  { %18 = vsyncpa [#allocation9], 0 }
   0x7   :  { %20 = vsyncpa [#allocation9 + $0x1], 0  ;;  %s1113_s12 = smov 0   ;;  %s1115_s13 = smov 0  }
   0x8   :  { %s1117_s14 = smov 0   ;;  %s1119_s15 = smov 0  }
   0x9   :  { %s1121_s16 = smov 0   ;;  %s1123_s17 = smov 0  }
   0xa LB: > { %s700_s18 = sadd.s32 4294967295, %s1079_s17   ;;  %s701_s19 = sadd.s32 4294967294, %s1079_s17   ;;  %s1079_s17 = sphi %s1123_s17, %s26_s17   ;;  %s1075_s16 = sphi %s1121_s16, %s1437_s16   ;;  %s1071_s15 = sphi %s1119_s15, %s1436_s15   ;;  %s1067_s14 = sphi %s1117_s14, %s1435_s14   ;;  %s1063_s13 = sphi %s1115_s13, %s1434_s13   ;;  %s1059_s12 = sphi %s1113_s12, %s1433_s12  }
   0xb   : > { %s38_s20 = sadd.s32 1, %s1075_s16  ;;  %s45_s21 = sadd.s32 1, %s1067_s14 }
   0xc   : > { %p40_p0 = scmp.ge.s32.totalorder %s38_s20, 4  ;;  %p52_p1 = scmp.ne.s32.totalorder %s1067_s14, %s1063_s13 }
   0xd   : > { %p53_p2 = scmp.eq.s32.totalorder %s1079_s17, 0  ;;  %p58_p3 = scmp.ne.s32.totalorder %s1063_s13, %s1059_s12 }
   0xe   : > { %s1439_s20 = smov (%p40_p0, %s38_s20), 0  ;;  %p59_p5 = scmp.eq.s32.totalorder %s700_s18, 0 }
   0xf   : > { %p1154_p4 = por %p53_p2, %p52_p1  ;;  %s42_s23 = ssub.s32 %s1075_s16, %s1439_s20 }
  0x10   : > { %p112_p6 = scmp.eq.s32.totalorder %s700_s18, 3  ;;  %p43_p7 = scmp.eq.s32.totalorder %s42_s23, 0 }
  0x11   : > { %p1160_p8 = por %p59_p5, %p58_p3  ;;  %p118_p10 = scmp.eq.s32.totalorder %s701_s19, 3 }
  0x12   : > { %p1164_p9 = por %p112_p6, %p52_p1  ;;  %p821_p12 = scmp.lt.s32.totalorder %s1079_s17, 4 }
  0x13   : > { %s1424_s24 = scalar_select %p1160_p8, 1, 0 }
  0x14   : > { %s1425_s25 = scalar_select %p1164_p9, 1, 0 }
  0x15   : > { %s1169_s26 = scalar_select %p43_p7, %s1067_s14, %s45_s21  }
  0x16   : > { %p1171_p11 = por %p118_p10, %p58_p3  ;;  %s1177_s28 = sand.u32 1, %s1067_s14  }
  0x17   : > { %s704_s29 = sshll.u32 %s1177_s28, 5  ;;  %s747_s30 = sshll.u32 %s1075_s16, 9 }
  0x18   : > { %s1426_s27 = scalar_select %p1171_p11, 1, 0 }
  0x19   : > { %s1184_s6 = scalar_lea.hbm %s1417_s0, %s747_s30  ;;  %s170_s7 = scalar_lea.vmem [#allocation2], %s704_s29 }
  0x1a   : > { %s177_s8 = sshll.u32 %s170_s7, 4  ;;  %p1190_p13 = pnand %p821_p12, %p1154_p4  ;;  %s1186_s8 = int_to_ptr.vmem [resolvable:$true] %s177_s8 }
  0x1b   : > { %s167_s10 = scalar_lea.sflag [#allocation3], %s1177_s28  ;;  %s901_s11 = scalar_lea.hbm %s1184_s6, 512 }
  0x1c   : > { %p902_p1 = scmp.ne.s32.totalorder %s1184_s6, %s901_s11  ;;  %p903_p2 = pneg %p1190_p13 }
  0x1d   : > { %s906_s21 = scalar_lea.hbm %s1417_s0, 2048  ;;  %p907_p4 = scmp.lt.u32.totalorder %s1184_s6, %s1417_s0 }
  0x1e   : > { %p904_p3 = pnand %p903_p2, %p902_p1  ;;  %p908_p6 = scmp.lt.u32.totalorder %s906_s21, %s901_s11 }
  0x1f   : > { %p910_p10 = scmp.lt.u32.totalorder %s901_s11, %s1184_s6 }
  0x20   : > { %p905_p5 = pneg %p904_p3  ;;  %p909_p7 = por %p908_p6, %p907_p4 }
  0x22   : > { %p911_p12 = por %p910_p10, %p909_p7 }
  0x24   : > { %p912_p0 = pnand %p911_p12, %p905_p5 }
  0x26   : > { %915 = shalt.err (!%p912_p0)
}
  0x27   : > { %s916_s29 = scalar_lea.vmem %s1186_s8, 512  ;;  %s1081_s30 = smov [#allocation2]  }
  0x28   : > { %p917_p1 = scmp.ne.s32.totalorder %s1186_s8, %s916_s29  ;;  %s921_s4 = sshll.u32 %s1081_s30, 4  ;;  %s922_s4 = int_to_ptr.vmem [resolvable:$false] %s921_s4 }
  0x29   : > { %s923_s5 = scalar_lea.vmem %s922_s4, 1024  ;;  %p924_p9 = scmp.lt.s32.totalorder %s1186_s8, %s922_s4 }
  0x2a   : > { %p919_p3 = pnand %p917_p1, %p903_p2  ;;  %p925_p4 = scmp.lt.s32.totalorder %s923_s5, %s916_s29 }
  0x2c   : > { %p920_p11 = pneg %p919_p3  ;;  %p926_p6 = por %p925_p4, %p924_p9 }
  0x2e   : > { %p927_p7 = pnand %p926_p6, %p920_p11 }
  0x30   : > { %930 = shalt.err (!%p927_p7)
}
  0x31   : > { %s1082_s7 = smov 128   ;;  %s1083_s11 = smov 8  }
  0x32   : > { %810 = dma.hbm_to_vmem [thread:$0]  (!%p1190_p13), %s1184_s6, 512, %s1186_s8, %s167_s10, %s1082_s7, %s1082_s7, %s1083_s11  }
  0x33   : > { %p207_p0 = scmp.lt.s32.totalorder %s1079_s17, 5  ;;  %s707_s18 = sshll.u32 %s1177_s28, 7 }
  0x34   : > { %s748_s19 = sshll.u32 %s1075_s16, 11  ;;  %p1428_p9 = scmp.ge.s32.totalorder %s1079_s17, 1 }
  0x35   : > { %s1235_s29 = scalar_lea.hbm %s1418_s1, %s748_s19  ;;  %s191_s30 = scalar_lea.vmem [#allocation5], %s707_s18 }
  0x36   : > { %p1228_p11 = pnand %p1428_p9, %p207_p0  ;;  %s199_s4 = sshll.u32 %s191_s30, 4  ;;  %s1237_s4 = int_to_ptr.vmem [resolvable:$true] %s199_s4 }
  0x37   : > { %s188_s6 = scalar_lea.sflag [#allocation6], %s1177_s28  ;;  %s931_s8 = scalar_lea.hbm %s1235_s29, 2048 }
  0x38   : > { %p932_p5 = scmp.ne.s32.totalorder %s1235_s29, %s931_s8  ;;  %s936_s7 = scalar_lea.hbm %s1418_s1, 8192 }
  0x39   : > { %p937_p1 = scmp.lt.u32.totalorder %s1235_s29, %s1418_s1  ;;  %p938_p3 = scmp.lt.u32.totalorder %s936_s7, %s931_s8 }
  0x3a   : > { %p934_p10 = pnand %p932_p5, %p903_p2  ;;  %p940_p6 = scmp.lt.u32.totalorder %s931_s8, %s1235_s29 }
  0x3b   : > { %p939_p4 = por %p938_p3, %p937_p1 }
  0x3c   : > { %p935_p12 = pneg %p934_p10 }
  0x3d   : > { %p941_p7 = por %p940_p6, %p939_p4 }
  0x3f   : > { %p942_p0 = pnand %p941_p7, %p935_p12 }
  0x41   : > { %945 = shalt.err (!%p942_p0)
}
  0x42   : > { %s946_s18 = scalar_lea.vmem %s1237_s4, 2048  ;;  %s1084_s22 = smov [#allocation5]  }
  0x43   : > { %p947_p9 = scmp.ne.s32.totalorder %s1237_s4, %s946_s18  ;;  %s951_s23 = sshll.u32 %s1084_s22, 4  ;;  %s952_s23 = int_to_ptr.vmem [resolvable:$false] %s951_s23 }
  0x44   : > { %s953_s30 = scalar_lea.vmem %s952_s23, 4096  ;;  %p954_p8 = scmp.lt.s32.totalorder %s1237_s4, %s952_s23 }
  0x45   : > { %p949_p5 = pnand %p947_p9, %p903_p2  ;;  %p955_p1 = scmp.lt.s32.totalorder %s953_s30, %s946_s18 }
  0x47   : > { %p950_p10 = pneg %p949_p5  ;;  %p956_p3 = por %p955_p1, %p954_p8 }
  0x49   : > { %p957_p4 = pnand %p956_p3, %p950_p10 }
  0x4b   : > { %960 = shalt.err (!%p957_p4)
}
  0x4c   : > { %s1085_s8 = smov 64   ;;  %s1086_s10 = smov 4  }
  0x4d   : > { %813 = dma.hbm_to_vmem [thread:$0]  (!%p1190_p13), %s1235_s29, 2048, %s1237_s4, %s188_s6, %s1085_s8, %s1085_s8, %s1086_s10  }
  0x4e   : > { %211 = sbr.rel (%p1228_p11) target bundleno = 509 (0x1fd), region = 28  ;;  %s1268_s5 = sand.u32 (!%p1228_p11), 1, %s1063_s13  }
  0x4f   : > { %s711_s7 = sshll.u32 (!%p1228_p11), %s1268_s5, 5  ;;  %s214_s11 = scalar_lea.sflag (!%p1228_p11), [#allocation3], %s1268_s5 }
  0x50   : > { %s1274_s19 = scalar_lea.vmem (!%p1228_p11), [#allocation2], %s711_s7  ;;  %p1430_p8 = scmp.ne.s32.totalorder (!%p1228_p11), %s1424_s24, 0 }
  0x55   : > { %1042 = dma.done.wait (%p1430_p8), %s214_s11, 512  }
  0x56   : > { %1044 = vsyncadd (%p1430_p8), %s214_s11, 4294966784  ;;  %s712_s28 = sshll.u32 %s1268_s5, 7  ;;  %s223_s9 = scalar_lea.sflag [#allocation6], %s1268_s5 }
  0x57   : > { %s1282_s21 = scalar_lea.vmem [#allocation5], %s712_s28 }
  0x58   : > { %1046 = dma.done.wait (%p1430_p8), %s223_s9, 2048  }
  0x59   : > { %1048 = vsyncadd (%p1430_p8), %s223_s9, 4294965248  ;;  %v879_v0 = vld [vmem:[%s1282_s21 + $0x40] sm:$0xff]   ;;  %v881_v2 = vld [vmem:[%s1282_s21 + $0x48] sm:$0xff]   ;;  %s713_s24 = sshll.u32 %s1268_s5, 4  ;;  %vm483_vm0 = vcmask 261120   ;;  %vm478_vm1 = vcmask 257024  }
  0x5a   : > { %v880_v1 = vld [vmem:[%s1282_s21] sm:$0xff]   ;;  %755 = vmatprep.subr.bf16.mxu0 %v879_v0  ;;  %783 = vmatprep.subr.bf16.mxu1 %v879_v0  ;;  %v882_v3 = vld [vmem:[%s1282_s21 + $0x8] sm:$0xff]   ;;  %v883_v4 = vld [vmem:[%s1282_s21 + $0x50] sm:$0xff]   ;;  %s251_s29 = scalar_lea.vmem [#allocation7], %s713_s24  ;;  %s753_s4 = sshll.u32 %s1071_s15, 8 }
  0x5b   : > { %756 = vmatpush3.bf16.msra.mxu0 %v880_v1  ;;  %791 = vmatpush3.bf16.msra.mxu1 %v880_v1  ;;  %v884_v5 = vld [vmem:[%s1282_s21 + $0x10] sm:$0xff]   ;;  %v885_v6 = vld [vmem:[%s1282_s21 + $0x58] sm:$0xff]   ;;  %v887_v8 = vld [vmem:[%s1282_s21 + $0x60] sm:$0xff]   ;;  %s542_s6 = sshll.u32 %s251_s29, 4  ;;  %s1325_s23 = scalar_lea.hbm %s1419_s2, %s753_s4  ;;  %s1327_s6 = int_to_ptr.vmem [resolvable:$true] %s542_s6 }
  0x5c   : > { %757 = vmatprep.subr.bf16.mxu0 %v881_v2  ;;  %784 = vmatprep.subr.bf16.mxu1 %v881_v2  ;;  %v886_v7 = vld [vmem:[%s1282_s21 + $0x18] sm:$0xff]   ;;  %v888_v9 = vld [vmem:[%s1282_s21 + $0x20] sm:$0xff]   ;;  %v889_v10 = vld [vmem:[%s1282_s21 + $0x68] sm:$0xff]   ;;  %s523_s30 = scalar_lea.sflag [#allocation4], %s1268_s5  ;;  %s961_s8 = scalar_lea.vmem %s1327_s6, 256 }
  0x5d   : > { %v897_v11 = vld [vmem:[%s1274_s19 + $0x4] ss:$8 sps:$4 sm:$0xff]   ;;  %v900_v12 = vld [vmem:[%s1274_s19 + $0x14] ss:$8 sps:$4 sm:$0xff]   ;;  %v895_v18 = vld [vmem:[%s1274_s19] ss:$8 sps:$4 sm:$0xff]   ;;  %p962_p13 = scmp.ne.s32.totalorder %s1327_s6, %s961_s8 }
  0x5e   : > { %v890_v13 = vld [vmem:[%s1282_s21 + $0x28] sm:$0xff]   ;;  %v891_v14 = vld [vmem:[%s1282_s21 + $0x70] sm:$0xff]   ;;  %445 = vmatprep.mubr.bf16.mxu0 %v897_v11  ;;  %453 = vmatprep.mubr.bf16.mxu1 %v900_v12  ;;  %v893_v16 = vld [vmem:[%s1282_s21 + $0x78] sm:$0xff]   ;;  %p1431_p2 = scmp.ne.s32.totalorder %s1425_s25, 0  ;;  %s1087_s10 = smov [#allocation7]  }
  0x5f   : > { %758 = vmatpush3.bf16.msra.mxu0 %v882_v3  ;;  %792 = vmatpush3.bf16.msra.mxu1 %v882_v3  ;;  %v892_v15 = vld [vmem:[%s1282_s21 + $0x30] sm:$0xff]   ;;  %v894_v17 = vld [vmem:[%s1282_s21 + $0x38] sm:$0xff]   ;;  %s965_s11 = sshll.u32 %s1087_s10, 4  ;;  %s966_s11 = int_to_ptr.vmem [resolvable:$false] %s965_s11 }
  0x60   : > { %759 = vmatprep.subr.bf16.mxu0 %v883_v4  ;;  %785 = vmatprep.subr.bf16.mxu1 %v883_v4  ;;  %v898_v19 = vld [vmem:[%s1274_s19 + $0x10] ss:$8 sps:$4 sm:$0xff]   ;;  %p963_p11 = pnand %p962_p13, %p1431_p2  ;;  %s967_s19 = scalar_lea.vmem %s966_s11, 512 }
  0x61   : > { %p968_p6 = scmp.lt.s32.totalorder %s1327_s6, %s966_s11  ;;  %p969_p7 = scmp.lt.s32.totalorder %s967_s19, %s961_s8 }
  0x62   : > { %p964_p12 = pneg %p963_p11 }
  0x63   : > { %760 = vmatpush3.bf16.msra.mxu0 %v884_v5  ;;  %793 = vmatpush3.bf16.msra.mxu1 %v884_v5  ;;  %p970_p0 = por %p969_p7, %p968_p6 }
  0x64   : > { %761 = vmatprep.subr.bf16.mxu0 %v885_v6  ;;  %786 = vmatprep.subr.bf16.mxu1 %v885_v6 }
  0x65   : > { %p971_p9 = pnand %p970_p0, %p964_p12 }
  0x67   : > { %762 = vmatpush3.bf16.msra.mxu0 %v886_v7  ;;  %794 = vmatpush3.bf16.msra.mxu1 %v886_v7 }
  0x68   : > { %763 = vmatprep.subr.bf16.mxu0 %v887_v8  ;;  %787 = vmatprep.subr.bf16.mxu1 %v887_v8 }
  0x6b   : > { %764 = vmatpush3.bf16.msra.mxu0 %v888_v9  ;;  %795 = vmatpush3.bf16.msra.mxu1 %v888_v9 }
  0x6c   : > { %765 = vmatprep.subr.bf16.mxu0 %v889_v10  ;;  %788 = vmatprep.subr.bf16.mxu1 %v889_v10 }
  0x6f   : > { %766 = vmatpush3.bf16.msra.mxu0 %v890_v13  ;;  %796 = vmatpush3.bf16.msra.mxu1 %v890_v13 }
  0x70   : > { %767 = vmatprep.subr.bf16.mxu0 %v891_v14  ;;  %789 = vmatprep.subr.bf16.mxu1 %v891_v14 }
  0x73   : > { %768 = vmatpush3.bf16.msra.mxu0 %v892_v15  ;;  %797 = vmatpush3.bf16.msra.mxu1 %v892_v15 }
  0x74   : > { %769 = vmatprep.subr.bf16.mxu0 %v893_v16  ;;  %790 = vmatprep.subr.bf16.mxu1 %v893_v16 }
  0x77   : > { %770 = vmatpush3.bf16.msra.mxu0 %v894_v17  ;;  %798 = vmatpush3.bf16.msra.mxu1 %v894_v17 }
  0x7a   : > { %446 = vmatmul.mubr.bf16.vlgmr.msra.gmra.mrb[0].mxu0 %v895_v18  ;;  %454 = vmatmul.mubr.bf16.vlgmr.msra.gmra.mrb[0].mxu1 %v898_v19 }
 0x14d   : > { %v771_v20 = vpop.f32.mrb[0].mxu0  ;;  %v777_v21 = vpop.f32.mrb[0].mxu1 }
 0x14e   : > { %v772_v22 = vpop.f32.mrb[1].mxu0  ;;  %v778_v23 = vpop.f32.mrb[1].mxu1 }
 0x14f   : > { %v773_v24 = vadd.f32 %v772_v22, %v771_v20  ;;  %v779_v25 = vadd.f32 %v778_v23, %v777_v21  ;;  %v774_v26 = vpop.f32.mrb[2].mxu0  ;;  %v780_v27 = vpop.f32.mrb[2].mxu1 }
 0x150   : > { %v775_v28 = vpop.f32.mrb[3].mxu0  ;;  %v781_v29 = vpop.f32.mrb[3].mxu1 }
 0x151   : > { %v749_v30 = vpack.c.bf16 %v773_v24, %v773_v24  ;;  %v751_v31 = vpack.c.bf16 %v779_v25, %v779_v25  ;;  %v776_v32 = vadd.f32 %v775_v28, %v774_v26  ;;  %v782_v33 = vadd.f32 %v781_v29, %v780_v27 }
 0x152   : > { %v490_v34 = vsel %vm483_vm0, %v779_v25, 0.0  ;;  %v484_v35 = vsel %vm483_vm0, %v773_v24, 0.0  ;;  %v496_v41 = vmul.f32 %v773_v24, %v773_v24  ;;  %v498_v45 = vmul.f32 %v779_v25, %v779_v25 }
 0x153   : > { %479 = vst.msk [vmem:[%s251_s29] sm:$0xf] %vm478_vm1, %v749_v30  ;;  %481 = vst.msk [vmem:[%s251_s29 + $0x8] sm:$0xf] %vm478_vm1, %v751_v31  ;;  %v750_v36 = vpack.c.bf16 %v776_v32, %v776_v32  ;;  %v752_v37 = vpack.c.bf16 %v782_v33, %v782_v33  ;;  %491 = vadd.xlane.f32.xlu1 %v490_v34  ;;  %485 = vadd.xlane.f32.xlu0 %v484_v35  ;;  %v493_v38 = vsel %vm483_vm0, %v782_v33, 0.0 }
 0x154   : > { %v487_v39 = vsel %vm483_vm0, %v776_v32, 0.0  ;;  %v497_v40 = vmul.f32 %v776_v32, %v776_v32  ;;  %v500_v43 = vsel %vm483_vm0, %v496_v41, 0.0  ;;  %v499_v44 = vmul.f32 %v782_v33, %v782_v33 }
 0x155   : > { %480 = vst.msk [vmem:[%s251_s29 + $0x4] sm:$0xf] %vm478_vm1, %v750_v36  ;;  %482 = vst.msk [vmem:[%s251_s29 + $0xc] sm:$0xf] %vm478_vm1, %v752_v37  ;;  %v506_v47 = vsel %vm483_vm0, %v498_v45, 0.0 }
 0x156   : > { %v503_v42 = vsel %vm483_vm0, %v497_v40, 0.0  ;;  %v509_v46 = vsel %vm483_vm0, %v499_v44, 0.0 }
 0x157   : > { %494 = vadd.xlane.f32.xlu1 %v493_v38  ;;  %488 = vadd.xlane.f32.xlu0 %v487_v39 }
 0x15b   : > { %504 = vadd.xlane.f32.xlu1 %v503_v42  ;;  %501 = vadd.xlane.f32.xlu0 %v500_v43 }
 0x15f   : > { %510 = vadd.xlane.f32.xlu1 %v509_v46  ;;  %507 = vadd.xlane.f32.xlu0 %v506_v47 }
 0x160   : > { %974 = shalt.err (!%p971_p9)
}
 0x161   : > { %s975_s28 = scalar_lea.hbm %s1325_s23, 256  ;;  %s979_s24 = scalar_lea.hbm %s1419_s2, 1024 }
 0x162   : > { %p976_p5 = scmp.ne.s32.totalorder %s1325_s23, %s975_s28  ;;  %p980_p3 = scmp.lt.u32.totalorder %s1325_s23, %s1419_s2 }
 0x163   : > { %p981_p4 = scmp.lt.u32.totalorder %s979_s24, %s975_s28  ;;  %p983_p13 = scmp.lt.u32.totalorder %s975_s28, %s1325_s23 }
 0x164   : > { %p977_p10 = pnand %p976_p5, %p1431_p2 }
 0x165   : > { %p982_p8 = por %p981_p4, %p980_p3 }
 0x166   : > { %p978_p1 = pneg %p977_p10 }
 0x167   : > { %p984_p11 = por %p983_p13, %p982_p8 }
 0x169   : > { %p985_p12 = pnand %p984_p11, %p978_p1 }
 0x16b   : > { %988 = shalt.err (!%p985_p12)
}
 0x16c   : > { %s1088_s18 = smov 64   ;;  %s1089_s22 = smov 4   ;;  %vm512_vm2 = vcmask 7168   ;;  %vm517_vm3 = vcmask 15360  }
 0x16d   : > { %803 = dma.vmem_to_hbm [thread:$0]  (%p1431_p2), %s1327_s6, 256, %s1325_s23, %s523_s30, %s1088_s18, %s1088_s18, %s1089_s22  }
 0x16e   : > { %s258_s8 = scalar_lea.vmem [#allocation8], %s711_s7  ;;  %s754_s11 = sshll.u32 %s1071_s15, 9 }
 0x16f   : > { %s559_s10 = sshll.u32 %s258_s8, 4  ;;  %s1365_s23 = scalar_lea.hbm %s1420_s3, %s754_s11  ;;  %s1358_s10 = int_to_ptr.vmem [resolvable:$true] %s559_s10 }
 0x170   : > { %s528_s15 = scalar_lea.sflag [#allocation9], %s1268_s5  ;;  %s989_s30 = scalar_lea.vmem %s1358_s10, 512 }
 0x171   : > { %p990_p6 = scmp.ne.s32.totalorder %s1358_s10, %s989_s30  ;;  %s1090_s19 = smov [#allocation8]  }
 0x172   : > { %s993_s28 = sshll.u32 %s1090_s19, 4  ;;  %s994_s28 = int_to_ptr.vmem [resolvable:$false] %s993_s28 }
 0x173   : > { %p991_p7 = pnand %p990_p6, %p1431_p2  ;;  %s995_s9 = scalar_lea.vmem %s994_s28, 1024 }
 0x174   : > { %p996_p9 = scmp.lt.s32.totalorder %s1358_s10, %s994_s28  ;;  %p997_p5 = scmp.lt.s32.totalorder %s995_s9, %s989_s30 }
 0x175   : > { %p992_p0 = pneg %p991_p7 }
 0x176   : > { %p998_p10 = por %p997_p5, %p996_p9 }
 0x178   : > { %p999_p1 = pnand %p998_p10, %p992_p0 }
 0x1e0   : > { %v492_v48 = vpop.xlane.xlu1 %491  ;;  %v486_v49 = vpop.xlane.xlu0 %485 }
 0x1e4   : > { %v495_v50 = vpop.xlane.xlu1 %494  ;;  %v489_v51 = vpop.xlane.xlu0 %488 }
 0x1e8   : > { %v505_v52 = vpop.xlane.xlu1 %504  ;;  %v502_v53 = vpop.xlane.xlu0 %501 }
 0x1e9   : > { %v514_v54 = vsel %vm512_vm2, %v489_v51, %v505_v52  ;;  %v513_v55 = vsel %vm512_vm2, %v486_v49, %v502_v53 }
 0x1ea   : > { %519 = vst.msk [vmem:[%s258_s8 + $0x8] sm:$0xff] %vm517_vm3, %v514_v54  ;;  %518 = vst.msk [vmem:[%s258_s8] sm:$0xff] %vm517_vm3, %v513_v55 }
 0x1ec   : > { %v511_v56 = vpop.xlane.xlu1 %510  ;;  %v508_v57 = vpop.xlane.xlu0 %507 }
 0x1ed   : > { %v516_v58 = vsel %vm512_vm2, %v495_v50, %v511_v56  ;;  %v515_v59 = vsel %vm512_vm2, %v492_v48, %v508_v57 }
 0x1ee   : > { %521 = vst.msk [vmem:[%s258_s8 + $0x18] sm:$0xff] %vm517_vm3, %v516_v58  ;;  %520 = vst.msk [vmem:[%s258_s8 + $0x10] sm:$0xff] %vm517_vm3, %v515_v59 }
 0x1ef   : > { %1002 = shalt.err (!%p999_p1)
}
 0x1f0   : > { %s1003_s21 = scalar_lea.hbm %s1365_s23, 512  ;;  %s1007_s4 = scalar_lea.hbm %s1420_s3, 2048 }
 0x1f1   : > { %p1004_p3 = scmp.ne.s32.totalorder %s1365_s23, %s1003_s21  ;;  %p1008_p13 = scmp.lt.u32.totalorder %s1365_s23, %s1420_s3 }
 0x1f2   : > { %p1009_p11 = scmp.lt.u32.totalorder %s1007_s4, %s1003_s21  ;;  %p1011_p6 = scmp.lt.u32.totalorder %s1003_s21, %s1365_s23 }
 0x1f3   : > { %p1005_p4 = pnand %p1004_p3, %p1431_p2 }
 0x1f4   : > { %p1010_p12 = por %p1009_p11, %p1008_p13 }
 0x1f5   : > { %p1006_p8 = pneg %p1005_p4 }
 0x1f6   : > { %p1012_p7 = por %p1011_p6, %p1010_p12 }
 0x1f8   : > { %p1013_p0 = pnand %p1012_p7, %p1006_p8 }
 0x1fa   : > { %1016 = shalt.err (!%p1013_p0)
}
 0x1fb   : > { %s1091_s8 = smov 128   ;;  %s1092_s11 = smov 8  }
 0x1fc   : > { %804 = dma.vmem_to_hbm [thread:$0]  (%p1431_p2), %s1358_s10, 512, %s1365_s23, %s528_s15, %s1091_s8, %s1091_s8, %s1092_s11  }
 0x1fd PF: > { %p822_p9 = scmp.ge.s32.totalorder %s1079_s17, 2  ;;  %s574_s7 = sand.u32 1, %s1059_s12  }
 0x1fe   : > { %p1432_p5 = scmp.ne.s32.totalorder %s1426_s27, 0  ;;  %s575_s6 = scalar_lea.sflag [#allocation4], %s574_s7 }
 0x200   : > { %p815_p10 = pnand %p822_p9, %p1432_p5 }
 0x202   : > { %1050 = dma.done.wait (!%p815_p10), %s575_s6, 256  }
 0x203   : > { %1052 = vsyncadd (!%p815_p10), %s575_s6, 4294967040  ;;  %s584_s30 = scalar_lea.sflag [#allocation9], %s574_s7 }
 0x204   : > { %1054 = dma.done.wait (!%p815_p10), %s584_s30, 512  }
 0x205   : > { %1056 = vsyncadd (!%p815_p10), %s584_s30, 4294966784  ;;  %s26_s17 = sadd.s32 1, %s1079_s17   ;;  %s1433_s12 = smov %s1063_s13 }
 0x206   : > { %p23_p1 = scmp.ge.s32.totalorder %s26_s17, 6   ;;  %s1434_s13 = smov %s1067_s14 }
 0x207   : > { %s1435_s14 = smov %s1169_s26  ;;  %s1436_s15 = smov %s1075_s16 }
 0x208   : > { %s1437_s16 = smov %s1439_s20  ;;  %25 = sbr.rel (!%p23_p1) target bundleno = 10 (0xa), region = 103 }
 0x20f   :  { %589 = vsyncpa [#allocation3], 1 }
 0x210   :  { %591 = vsyncpa [#allocation3 + $0x1], 1 }
 0x211   :  { %592 = vsyncpa [#allocation6], 1 }
 0x212   :  { %594 = vsyncpa [#allocation6 + $0x1], 1 }
 0x213   :  { %595 = vsyncpa [#allocation4], 1 }
 0x214   :  { %597 = vsyncpa [#allocation4 + $0x1], 1 }
 0x215   :  { %598 = vsyncpa [#allocation9], 1 }
 0x216   :  { %600 = vsyncpa [#allocation9 + $0x1], 1 }

// kernel: generator_forward.14
= control target key start
LH: loop header
LB: loop body
LE: loop exit
PB: predicated region body
PF: predicated region fallthrough
CT: control target
= control target key end

     0   :  { %9 = vsyncpa [#allocation3], 0  ;;  %s1222_s0 = inlined_call_operand.hbm [shape: bf16[4,16,128], index: 0, kind: input, shape index: {}]   ;;  %s1223_s1 = inlined_call_operand.hbm [shape: bf16[4,128,128], index: 1, kind: input, shape index: {}]   ;;  %s1224_s2 = inlined_call_operand.hbm [shape: bf16[4,16,128], index: 2, kind: output, shape index: {0}]   ;;  %s1225_s3 = inlined_call_operand.hbm [shape: f32[4,16,2], index: 3, kind: output, shape index: {1}]  }
   0x1   :  { %11 = vsyncpa [#allocation3 + $0x1], 0 }
   0x2   :  { %12 = vsyncpa [#allocation6], 0 }
   0x3   :  { %14 = vsyncpa [#allocation6 + $0x1], 0 }
   0x4   :  { %15 = vsyncpa [#allocation4], 0 }
   0x5   :  { %17 = vsyncpa [#allocation4 + $0x1], 0 }
   0x6   :  { %18 = vsyncpa [#allocation9], 0 }
   0x7   :  { %20 = vsyncpa [#allocation9 + $0x1], 0  ;;  %s953_s12 = smov 0   ;;  %s955_s13 = smov 0  }
   0x8   :  { %s957_s14 = smov 0   ;;  %s959_s15 = smov 0  }
   0x9   :  { %s961_s16 = smov 0   ;;  %s963_s17 = smov 0  }
   0xa LB: > { %s578_s18 = sadd.s32 4294967295, %s919_s17   ;;  %s579_s19 = sadd.s32 4294967294, %s919_s17   ;;  %s919_s17 = sphi %s963_s17, %s26_s17   ;;  %s915_s16 = sphi %s961_s16, %s1242_s16   ;;  %s911_s15 = sphi %s959_s15, %s1241_s15   ;;  %s907_s14 = sphi %s957_s14, %s1240_s14   ;;  %s903_s13 = sphi %s955_s13, %s1239_s13   ;;  %s899_s12 = sphi %s953_s12, %s1238_s12  }
   0xb   : > { %s38_s20 = sadd.s32 1, %s915_s16  ;;  %s45_s21 = sadd.s32 1, %s907_s14 }
   0xc   : > { %p40_p0 = scmp.ge.s32.totalorder %s38_s20, 4  ;;  %p52_p1 = scmp.ne.s32.totalorder %s907_s14, %s903_s13 }
   0xd   : > { %p53_p2 = scmp.eq.s32.totalorder %s919_s17, 0  ;;  %p58_p3 = scmp.ne.s32.totalorder %s903_s13, %s899_s12 }
   0xe   : > { %s1244_s20 = smov (%p40_p0, %s38_s20), 0  ;;  %p59_p5 = scmp.eq.s32.totalorder %s578_s18, 0 }
   0xf   : > { %p994_p4 = por %p53_p2, %p52_p1  ;;  %s42_s23 = ssub.s32 %s915_s16, %s1244_s20 }
  0x10   : > { %p112_p6 = scmp.eq.s32.totalorder %s578_s18, 3  ;;  %p43_p7 = scmp.eq.s32.totalorder %s42_s23, 0 }
  0x11   : > { %p1000_p8 = por %p59_p5, %p58_p3  ;;  %p118_p10 = scmp.eq.s32.totalorder %s579_s19, 3 }
  0x12   : > { %p1004_p9 = por %p112_p6, %p52_p1  ;;  %p674_p12 = scmp.lt.s32.totalorder %s919_s17, 4 }
  0x13   : > { %s1229_s24 = scalar_select %p1000_p8, 1, 0 }
  0x14   : > { %s1230_s25 = scalar_select %p1004_p9, 1, 0 }
  0x15   : > { %s1009_s26 = scalar_select %p43_p7, %s907_s14, %s45_s21  }
  0x16   : > { %p1011_p11 = por %p118_p10, %p58_p3  ;;  %s1017_s28 = sand.u32 1, %s907_s14  }
  0x17   : > { %s582_s29 = sshll.u32 %s1017_s28, 3  ;;  %s612_s30 = sshll.u32 %s915_s16, 7 }
  0x18   : > { %s1231_s27 = scalar_select %p1011_p11, 1, 0 }
  0x19   : > { %s1024_s6 = scalar_lea.hbm %s1222_s0, %s612_s30  ;;  %s170_s7 = scalar_lea.vmem [#allocation2], %s582_s29 }
  0x1a   : > { %s177_s8 = sshll.u32 %s170_s7, 4  ;;  %p1030_p13 = pnand %p674_p12, %p994_p4  ;;  %s1026_s8 = int_to_ptr.vmem [resolvable:$true] %s177_s8 }
  0x1b   : > { %s167_s10 = scalar_lea.sflag [#allocation3], %s1017_s28  ;;  %s741_s11 = scalar_lea.hbm %s1024_s6, 128 }
  0x1c   : > { %p742_p1 = scmp.ne.s32.totalorder %s1024_s6, %s741_s11  ;;  %p743_p2 = pneg %p1030_p13 }
  0x1d   : > { %s746_s21 = scalar_lea.hbm %s1222_s0, 512  ;;  %p747_p4 = scmp.lt.u32.totalorder %s1024_s6, %s1222_s0 }
  0x1e   : > { %p744_p3 = pnand %p743_p2, %p742_p1  ;;  %p748_p6 = scmp.lt.u32.totalorder %s746_s21, %s741_s11 }
  0x1f   : > { %p750_p10 = scmp.lt.u32.totalorder %s741_s11, %s1024_s6 }
  0x20   : > { %p745_p5 = pneg %p744_p3  ;;  %p749_p7 = por %p748_p6, %p747_p4 }
  0x22   : > { %p751_p12 = por %p750_p10, %p749_p7 }
  0x24   : > { %p752_p0 = pnand %p751_p12, %p745_p5 }
  0x26   : > { %755 = shalt.err (!%p752_p0)
}
  0x27   : > { %s756_s29 = scalar_lea.vmem %s1026_s8, 128  ;;  %s921_s30 = smov [#allocation2]  }
  0x28   : > { %p757_p1 = scmp.ne.s32.totalorder %s1026_s8, %s756_s29  ;;  %s761_s4 = sshll.u32 %s921_s30, 4  ;;  %s762_s4 = int_to_ptr.vmem [resolvable:$false] %s761_s4 }
  0x29   : > { %s763_s5 = scalar_lea.vmem %s762_s4, 256  ;;  %p764_p9 = scmp.lt.s32.totalorder %s1026_s8, %s762_s4 }
  0x2a   : > { %p759_p3 = pnand %p757_p1, %p743_p2  ;;  %p765_p4 = scmp.lt.s32.totalorder %s763_s5, %s756_s29 }
  0x2c   : > { %p760_p11 = pneg %p759_p3  ;;  %p766_p6 = por %p765_p4, %p764_p9 }
  0x2e   : > { %p767_p7 = pnand %p766_p6, %p760_p11 }
  0x30   : > { %770 = shalt.err (!%p767_p7)
}
  0x31   : > { %s922_s7 = smov 64   ;;  %s923_s11 = smov 4  }
  0x32   : > { %663 = dma.hbm_to_vmem [thread:$0]  (!%p1030_p13), %s1024_s6, 128, %s1026_s8, %s167_s10, %s922_s7, %s922_s7, %s923_s11  }
  0x33   : > { %p207_p9 = scmp.lt.s32.totalorder %s919_s17, 5  ;;  %s585_s18 = sshll.u32 %s1017_s28, 6 }
  0x34   : > { %s613_s19 = sshll.u32 %s915_s16, 10  ;;  %p1233_p11 = scmp.ge.s32.totalorder %s919_s17, 1 }
  0x35   : > { %s1078_s29 = scalar_lea.hbm %s1223_s1, %s613_s19  ;;  %s191_s30 = scalar_lea.vmem [#allocation5], %s585_s18 }
  0x36   : > { %p1071_p0 = pnand %p1233_p11, %p207_p9  ;;  %s199_s4 = sshll.u32 %s191_s30, 4  ;;  %s1080_s4 = int_to_ptr.vmem [resolvable:$true] %s199_s4 }
  0x37   : > { %s188_s6 = scalar_lea.sflag [#allocation6], %s1017_s28  ;;  %s771_s8 = scalar_lea.hbm %s1078_s29, 1024 }
  0x38   : > { %p772_p5 = scmp.ne.s32.totalorder %s1078_s29, %s771_s8  ;;  %s776_s19 = scalar_lea.hbm %s1223_s1, 4096 }
  0x39   : > { %p777_p1 = scmp.lt.u32.totalorder %s1078_s29, %s1223_s1  ;;  %p778_p3 = scmp.lt.u32.totalorder %s776_s19, %s771_s8 }
  0x3a   : > { %p774_p10 = pnand %p772_p5, %p743_p2  ;;  %p780_p6 = scmp.lt.u32.totalorder %s771_s8, %s1078_s29 }
  0x3b   : > { %p779_p4 = por %p778_p3, %p777_p1 }
  0x3c   : > { %p775_p12 = pneg %p774_p10 }
  0x3d   : > { %p781_p7 = por %p780_p6, %p779_p4 }
  0x3f   : > { %p782_p9 = pnand %p781_p7, %p775_p12 }
  0x41   : > { %785 = shalt.err (!%p782_p9)
}
  0x42   : > { %s786_s18 = scalar_lea.vmem %s1080_s4, 1024  ;;  %s924_s30 = smov [#allocation5]  }
  0x43   : > { %p787_p11 = scmp.ne.s32.totalorder %s1080_s4, %s786_s18  ;;  %s791_s10 = sshll.u32 %s924_s30, 4  ;;  %s792_s10 = int_to_ptr.vmem [resolvable:$false] %s791_s10 }
  0x44   : > { %s793_s5 = scalar_lea.vmem %s792_s10, 2048  ;;  %p794_p8 = scmp.lt.s32.totalorder %s1080_s4, %s792_s10 }
  0x45   : > { %p789_p5 = pnand %p787_p11, %p743_p2  ;;  %p795_p1 = scmp.lt.s32.totalorder %s793_s5, %s786_s18 }
  0x47   : > { %p790_p10 = pneg %p789_p5  ;;  %p796_p3 = por %p795_p1, %p794_p8 }
  0x49   : > { %p797_p4 = pnand %p796_p3, %p790_p10 }
  0x4b   : > { %800 = shalt.err (!%p797_p4)
}
  0x4c   : > { %666 = dma.hbm_to_vmem [thread:$0]  (!%p1030_p13), %s1078_s29, 1024, %s1080_s4, %s188_s6, %s922_s7, %s922_s7, %s923_s11  }
  0x4d   : > { %211 = sbr.rel (%p1071_p0) target bundleno = 497 (0x1f1), region = 28  ;;  %s1114_s8 = sand.u32 (!%p1071_p0), 1, %s903_s13  }
  0x4e   : > { %s589_s19 = sshll.u32 (!%p1071_p0), %s1114_s8, 3  ;;  %s214_s9 = scalar_lea.sflag (!%p1071_p0), [#allocation3], %s1114_s8 }
  0x4f   : > { %s1120_s22 = scalar_lea.vmem (!%p1071_p0), [#allocation2], %s589_s19  ;;  %p1235_p8 = scmp.ne.s32.totalorder (!%p1071_p0), %s1229_s24, 0 }
  0x54   : > { %882 = dma.done.wait (%p1235_p8), %s214_s9, 128  }
  0x55   : > { %884 = vsyncadd (%p1235_p8), %s214_s9, 4294967168  ;;  %s590_s28 = sshll.u32 %s1114_s8, 6  ;;  %s223_s7 = scalar_lea.sflag [#allocation6], %s1114_s8 }
  0x56   : > { %s226_s11 = scalar_lea.vmem [#allocation5], %s590_s28 }
  0x57   : > { %886 = dma.done.wait (%p1235_p8), %s223_s7, 1024  }
  0x58   : > { %888 = vsyncadd (%p1235_p8), %s223_s7, 4294966272  ;;  %v925_v0 = vmov 0.0   ;;  %vm926_vm0 = vmmov 0   ;;  %v732_v1 = vld [vmem:[%s226_s11] sm:$0xff]   ;;  %v733_v2 = vld [vmem:[%s226_s11 + $0x8] sm:$0xff]   ;;  %s251_s24 = scalar_lea.vmem [#allocation7], %s589_s19 }
  0x59   : > { %632 = vmatprep.subr.bf16.mxu0 %v925_v0  ;;  %648 = vmatprep.mubr.msk.bf16.mxu0 %vm926_vm0, %v925_v0  ;;  %v734_v3 = vld [vmem:[%s226_s11 + $0x10] sm:$0xff]   ;;  %v735_v4 = vld [vmem:[%s226_s11 + $0x18] sm:$0xff]   ;;  %v736_v5 = vld [vmem:[%s226_s11 + $0x20] sm:$0xff]   ;;  %s420_s21 = sshll.u32 %s251_s24, 4  ;;  %s616_s29 = sshll.u32 %s911_s15, 7  ;;  %s1135_s21 = int_to_ptr.vmem [resolvable:$true] %s420_s21 }
  0x5a   : > { %633 = vmatpush3.bf16.msra.mxu0 %v732_v1  ;;  %v737_v6 = vld [vmem:[%s226_s11 + $0x28] sm:$0xff]   ;;  %v738_v7 = vld [vmem:[%s226_s11 + $0x30] sm:$0xff]   ;;  %v739_v8 = vld [vmem:[%s226_s11 + $0x38] sm:$0xff]   ;;  %s1141_s23 = scalar_lea.hbm %s1224_s2, %s616_s29  ;;  %s401_s18 = scalar_lea.sflag [#allocation4], %s1114_s8 }
  0x5b   : > { %634 = vmatprep.subr.bf16.mxu0 %v925_v0  ;;  %v740_v9 = vld [vmem:[%s1120_s22] sm:$0xff]   ;;  %s801_s30 = scalar_lea.vmem %s1135_s21, 128  ;;  %p1236_p2 = scmp.ne.s32.totalorder %s1230_s25, 0 }
  0x5c   : > { %p802_p13 = scmp.ne.s32.totalorder %s1135_s21, %s801_s30  ;;  %s927_s10 = smov [#allocation7]  }
  0x5d   : > { %s805_s5 = sshll.u32 %s927_s10, 4  ;;  %s806_s5 = int_to_ptr.vmem [resolvable:$false] %s805_s5 }
  0x5e   : > { %635 = vmatpush3.bf16.msra.mxu0 %v733_v2  ;;  %p803_p0 = pnand %p802_p13, %p1236_p2  ;;  %s807_s19 = scalar_lea.vmem %s806_s5, 256 }
  0x5f   : > { %636 = vmatprep.subr.bf16.mxu0 %v925_v0  ;;  %p808_p6 = scmp.lt.s32.totalorder %s1135_s21, %s806_s5  ;;  %p809_p7 = scmp.lt.s32.totalorder %s807_s19, %s801_s30 }
  0x60   : > { %p804_p12 = pneg %p803_p0 }
  0x61   : > { %p810_p9 = por %p809_p7, %p808_p6 }
  0x62   : > { %637 = vmatpush3.bf16.msra.mxu0 %v734_v3 }
  0x63   : > { %638 = vmatprep.subr.bf16.mxu0 %v925_v0  ;;  %p811_p11 = pnand %p810_p9, %p804_p12 }
  0x66   : > { %639 = vmatpush3.bf16.msra.mxu0 %v735_v4 }
  0x67   : > { %640 = vmatprep.subr.bf16.mxu0 %v925_v0 }
  0x6a   : > { %641 = vmatpush3.bf16.msra.mxu0 %v736_v5 }
  0x6b   : > { %642 = vmatprep.subr.bf16.mxu0 %v925_v0 }
  0x6e   : > { %643 = vmatpush3.bf16.msra.mxu0 %v737_v6 }
  0x6f   : > { %644 = vmatprep.subr.bf16.mxu0 %v925_v0 }
  0x72   : > { %645 = vmatpush3.bf16.msra.mxu0 %v738_v7 }
  0x73   : > { %646 = vmatprep.subr.bf16.mxu0 %v925_v0 }
  0x76   : > { %647 = vmatpush3.bf16.msra.mxu0 %v739_v8 }
  0x79   : > { %649 = vmatmul.mubr.bf16.vlgmr.msra.gmra.mrb[0].mxu0 %v740_v9 }
 0x14c   : > { %v367_v10 = vpop.f32.mrb[0].mxu0 }
 0x14d   : > { %384 = vadd.xlane.f32.xlu0 %v367_v10  ;;  %v650_v11 = vpop.f32.mrb[1].mxu0  ;;  %v388_v12 = vmul.f32 %v367_v10, %v367_v10 }
 0x14e   : > { %v370_v13 = vpop.f32.mrb[2].mxu0 }
 0x14f   : > { %v621_v14 = vpack.c.bf16 %v370_v13, %v367_v10  ;;  %390 = vadd.xlane.f32.xlu1 %v388_v12  ;;  %v651_v15 = vpop.f32.mrb[3].mxu0  ;;  %v389_v16 = vmul.f32 %v370_v13, %v370_v13 }
 0x151   : > { %622 = vst [vmem:[%s251_s24] sm:$0xff] %v621_v14   ;;  %386 = vadd.xlane.f32.xlu0 %v370_v13 }
 0x153   : > { %392 = vadd.xlane.f32.xlu1 %v389_v16 }
 0x154   : > { %814 = shalt.err (!%p811_p11)
}
 0x155   : > { %s815_s9 = scalar_lea.hbm %s1141_s23, 128  ;;  %s819_s7 = scalar_lea.hbm %s1224_s2, 512 }
 0x156   : > { %p816_p5 = scmp.ne.s32.totalorder %s1141_s23, %s815_s9  ;;  %p820_p3 = scmp.lt.u32.totalorder %s1141_s23, %s1224_s2 }
 0x157   : > { %p821_p4 = scmp.lt.u32.totalorder %s819_s7, %s815_s9  ;;  %p823_p13 = scmp.lt.u32.totalorder %s815_s9, %s1141_s23 }
 0x158   : > { %p817_p10 = pnand %p816_p5, %p1236_p2 }
 0x159   : > { %p822_p8 = por %p821_p4, %p820_p3 }
 0x15a   : > { %p818_p1 = pneg %p817_p10 }
 0x15b   : > { %p824_p0 = por %p823_p13, %p822_p8 }
 0x15d   : > { %p825_p12 = pnand %p824_p0, %p818_p1 }
 0x15f   : > { %828 = shalt.err (!%p825_p12)
}
 0x160   : > { %s928_s29 = smov 64   ;;  %s929_s4 = smov 4   ;;  %vm394_vm1 = vcmask 7168   ;;  %vm397_vm2 = vcmask 15360  }
 0x161   : > { %656 = dma.vmem_to_hbm [thread:$0]  (%p1236_p2), %s1135_s21, 128, %s1141_s23, %s401_s18, %s928_s29, %s928_s29, %s929_s4  }
 0x162   : > { %s592_s6 = sshll.u32 %s1114_s8, 4  ;;  %s617_s5 = sshll.u32 %s911_s15, 8 }
 0x163   : > { %s258_s30 = scalar_lea.vmem [#allocation8], %s592_s6  ;;  %s1174_s21 = scalar_lea.hbm %s1225_s3, %s617_s5 }
 0x164   : > { %s437_s10 = sshll.u32 %s258_s30, 4  ;;  %s406_s23 = scalar_lea.sflag [#allocation9], %s1114_s8  ;;  %s1169_s10 = int_to_ptr.vmem [resolvable:$true] %s437_s10 }
 0x165   : > { %s829_s18 = scalar_lea.vmem %s1169_s10, 256  ;;  %s930_s15 = smov [#allocation8]  }
 0x166   : > { %p830_p6 = scmp.ne.s32.totalorder %s1169_s10, %s829_s18  ;;  %s833_s22 = sshll.u32 %s930_s15, 4  ;;  %s834_s22 = int_to_ptr.vmem [resolvable:$false] %s833_s22 }
 0x167   : > { %s835_s28 = scalar_lea.vmem %s834_s22, 512  ;;  %p836_p11 = scmp.lt.s32.totalorder %s1169_s10, %s834_s22 }
 0x168   : > { %p831_p7 = pnand %p830_p6, %p1236_p2  ;;  %p837_p5 = scmp.lt.s32.totalorder %s835_s28, %s829_s18 }
 0x16a   : > { %p832_p9 = pneg %p831_p7  ;;  %p838_p10 = por %p837_p5, %p836_p11 }
 0x16c   : > { %p839_p1 = pnand %p838_p10, %p832_p9 }
 0x1da   : > { %v385_v17 = vpop.xlane.xlu0 %384 }
 0x1dc   : > { %v391_v18 = vpop.xlane.xlu1 %390 }
 0x1dd   : > { %v395_v19 = vsel %vm394_vm1, %v385_v17, %v391_v18 }
 0x1de   : > { %398 = vst.msk [vmem:[%s258_s30] sm:$0xff] %vm397_vm2, %v395_v19  ;;  %v387_v20 = vpop.xlane.xlu0 %386 }
 0x1e0   : > { %v393_v21 = vpop.xlane.xlu1 %392 }
 0x1e1   : > { %v396_v22 = vsel %vm394_vm1, %v387_v20, %v393_v21 }
 0x1e2   : > { %399 = vst.msk [vmem:[%s258_s30 + $0x8] sm:$0xff] %vm397_vm2, %v396_v22 }
 0x1e3   : > { %842 = shalt.err (!%p839_p1)
}
 0x1e4   : > { %s843_s7 = scalar_lea.hbm %s1174_s21, 256  ;;  %s847_s29 = scalar_lea.hbm %s1225_s3, 1024 }
 0x1e5   : > { %p844_p3 = scmp.ne.s32.totalorder %s1174_s21, %s843_s7  ;;  %p848_p13 = scmp.lt.u32.totalorder %s1174_s21, %s1225_s3 }
 0x1e6   : > { %p849_p0 = scmp.lt.u32.totalorder %s847_s29, %s843_s7  ;;  %p851_p6 = scmp.lt.u32.totalorder %s843_s7, %s1174_s21 }
 0x1e7   : > { %p845_p4 = pnand %p844_p3, %p1236_p2 }
 0x1e8   : > { %p850_p12 = por %p849_p0, %p848_p13 }
 0x1e9   : > { %p846_p8 = pneg %p845_p4 }
 0x1ea   : > { %p852_p7 = por %p851_p6, %p850_p12 }
 0x1ec   : > { %p853_p9 = pnand %p852_p7, %p846_p8 }
 0x1ee   : > { %856 = shalt.err (!%p853_p9)
}
 0x1ef   : > { %s931_s30 = smov 128   ;;  %s932_s5 = smov 8  }
 0x1f0   : > { %657 = dma.vmem_to_hbm [thread:$0]  (%p1236_p2), %s1169_s10, 256, %s1174_s21, %s406_s23, %s931_s30, %s931_s30, %s932_s5  }
 0x1f1 PF: > { %p675_p11 = scmp.ge.s32.totalorder %s919_s17, 2  ;;  %s452_s19 = sand.u32 1, %s899_s12  }
 0x1f2   : > { %p1237_p5 = scmp.ne.s32.totalorder %s1231_s27, 0  ;;  %s453_s9 = scalar_lea.sflag [#allocation4], %s452_s19 }
 0x1f4   : > { %p668_p10 = pnand %p675_p11, %p1237_p5 }
 0x1f6   : > { %890 = dma.done.wait (!%p668_p10), %s453_s9, 128  }
 0x1f7   : > { %892 = vsyncadd (!%p668_p10), %s453_s9, 4294967168  ;;  %s462_s18 = scalar_lea.sflag [#allocation9], %s452_s19 }
 0x1f8   : > { %894 = dma.done.wait (!%p668_p10), %s462_s18, 256  }
 0x1f9   : > { %896 = vsyncadd (!%p668_p10), %s462_s18, 4294967040  ;;  %s26_s17 = sadd.s32 1, %s919_s17   ;;  %s1238_s12 = smov %s903_s13 }
 0x1fa   : > { %p23_p1 = scmp.ge.s32.totalorder %s26_s17, 6   ;;  %s1239_s13 = smov %s907_s14 }
 0x1fb   : > { %s1240_s14 = smov %s1009_s26  ;;  %s1241_s15 = smov %s915_s16 }
 0x1fc   : > { %s1242_s16 = smov %s1244_s20  ;;  %25 = sbr.rel (!%p23_p1) target bundleno = 10 (0xa), region = 103 }
 0x203   :  { %467 = vsyncpa [#allocation3], 1 }
 0x204   :  { %469 = vsyncpa [#allocation3 + $0x1], 1 }
 0x205   :  { %470 = vsyncpa [#allocation6], 1 }
 0x206   :  { %472 = vsyncpa [#allocation6 + $0x1], 1 }
 0x207   :  { %473 = vsyncpa [#allocation4], 1 }
 0x208   :  { %475 = vsyncpa [#allocation4 + $0x1], 1 }
 0x209   :  { %476 = vsyncpa [#allocation9], 1 }
 0x20a   :  { %478 = vsyncpa [#allocation9 + $0x1], 1 }

// kernel: generator_forward.15
= control target key start
LH: loop header
LB: loop body
LE: loop exit
PB: predicated region body
PF: predicated region fallthrough
CT: control target
= control target key end

     0   :  { %8 = vsyncpa [#allocation3], 0  ;;  %s979_s0 = inlined_call_operand.hbm [shape: bf16[4,16,128], index: 0, kind: input, shape index: {}]   ;;  %s980_s1 = inlined_call_operand.hbm [shape: f32[16,1], index: 1, kind: input, shape index: {}]   ;;  %s981_s2 = inlined_call_operand.hbm [shape: f32[16,1], index: 2, kind: input, shape index: {}]   ;;  %s982_s3 = inlined_call_operand.hbm [shape: bf16[4,16,128], index: 3, kind: output, shape index: {}]  }
   0x1   :  { %10 = vsyncpa [#allocation3 + $0x1], 0 }
   0x2   :  { %11 = vsyncpa [#allocation6], 0 }
   0x3   :  { %12 = vsyncpa [#allocation4], 0 }
   0x4   :  { %14 = vsyncpa [#allocation4 + $0x1], 0  ;;  %s729_s12 = smov 0   ;;  %s731_s13 = smov 0  }
   0x5   :  { %s733_s14 = smov 0   ;;  %s735_s15 = smov 0  }
   0x6   :  { %s737_s16 = smov 0   ;;  %s739_s17 = smov 0  }
   0x7 LB: > { %s398_s18 = sadd.s32 4294967295, %s696_s17   ;;  %s399_s19 = sadd.s32 4294967294, %s696_s17   ;;  %s696_s17 = sphi %s739_s17, %s20_s17   ;;  %s692_s16 = sphi %s737_s16, %s1004_s16   ;;  %s688_s15 = sphi %s735_s15, %s1003_s15   ;;  %s684_s14 = sphi %s733_s14, %s1002_s14   ;;  %s680_s13 = sphi %s731_s13, %s1001_s13   ;;  %s676_s12 = sphi %s729_s12, %s1000_s12  }
   0x8   : > { %p54_p0 = scmp.ne.s32.totalorder %s680_s13, %s676_s12  ;;  %p763_p1 = scmp.eq.s32.totalorder %s398_s18, 0 }
   0x9   : > { %p767_p2 = scmp.eq.s32.totalorder %s398_s18, 3  ;;  %p128_p3 = scmp.eq.s32.totalorder %s399_s19, 3 }
   0xa   : > { %s987_s20 = scalar_select %p763_p1, 1, 0 }
   0xb   : > { %s988_s21 = scalar_select %p767_p2, 1, 0 }
   0xc   : > { %p773_p4 = por %p763_p1, %p54_p0  ;;  %p400_p5 = scmp.ge.s32.totalorder %s696_s17, 1 }
   0xd   : > { %p778_p6 = por %p128_p3, %p54_p0  ;;  %p135_p7 = scmp.lt.s32.totalorder %s696_s17, 5 }
   0xe   : > { %s989_s22 = scalar_select %p773_p4, 1, 0 }
   0xf   : > { %s990_s23 = scalar_select %p778_p6, 1, 0 }
  0x10   : > { %p783_p8 = pnand %p400_p5, %p135_p7  ;;  %s698_s25 = smov [#allocation5]  }
  0x11   : > { %s147_s26 = sshll.u32 %s698_s25, 4  ;;  %s699_s28 = smov [#allocation7]   ;;  %s148_s26 = int_to_ptr.vmem [resolvable:$true] %s147_s26 }
  0x12   : > { %s991_s24 = scalar_select %p783_p8, 1, 0 }
  0x13   : > { %p444_p9 = pneg %p783_p8  ;;  %s160_s29 = sshll.u32 %s699_s28, 4  ;;  %s795_s29 = int_to_ptr.vmem [resolvable:$true] %s160_s29 }
  0x14   : > { %s524_s5 = scalar_lea.hbm %s980_s1, 256 }
  0x15   : > { %p791_p10 = pnand %p444_p9, %p763_p1  ;;  %p525_p11 = scmp.ne.s32.totalorder %s980_s1, %s524_s5 }
  0x16   : > { %p531_p3 = scmp.lt.u32.totalorder %s524_s5, %s980_s1 }
  0x17   : > { %p526_p12 = pneg %p791_p10 }
  0x19   : > { %p527_p13 = pnand %p526_p12, %p525_p11 }
  0x1b   : > { %p528_p0 = pneg %p527_p13 }
  0x1d   : > { %p533_p5 = pnand %p531_p3, %p528_p0 }
  0x1f   : > { %536 = shalt.err (!%p533_p5)
}
  0x20   : > { %s537_s10 = scalar_lea.vmem %s148_s26, 256  ;;  %p545_p1 = scmp.lt.s32.totalorder %s148_s26, %s148_s26 }
  0x21   : > { %p538_p7 = scmp.ne.s32.totalorder %s148_s26, %s537_s10  ;;  %p546_p4 = scmp.lt.s32.totalorder %s537_s10, %s537_s10 }
  0x23   : > { %p540_p9 = pnand %p538_p7, %p526_p12  ;;  %p547_p8 = por %p546_p4, %p545_p1 }
  0x25   : > { %p541_p6 = pneg %p540_p9 }
  0x27   : > { %p548_p2 = pnand %p547_p8, %p541_p6 }
  0x29   : > { %551 = shalt.err (!%p548_p2)
}
  0x2a   : > { %s700_s11 = smov 128   ;;  %s701_s18 = smov 8  }
  0x2b   : > { %447 = dma.hbm_to_vmem [thread:$0]  (!%p791_p10), %s980_s1, 256, %s148_s26, [#allocation6], %s700_s11, %s700_s11, %s701_s18  }
  0x2c   : > { %s552_s4 = scalar_lea.hbm %s981_s2, 256 }
  0x2d   : > { %p553_p11 = scmp.ne.s32.totalorder %s981_s2, %s552_s4  ;;  %p559_p4 = scmp.lt.u32.totalorder %s552_s4, %s981_s2 }
  0x2f   : > { %p555_p1 = pnand %p553_p11, %p526_p12 }
  0x31   : > { %p556_p2 = pneg %p555_p1 }
  0x33   : > { %p561_p6 = pnand %p559_p4, %p556_p2 }
  0x35   : > { %564 = shalt.err (!%p561_p6)
}
  0x36   : > { %s565_s26 = scalar_lea.vmem %s795_s29, 256  ;;  %p573_p3 = scmp.lt.s32.totalorder %s795_s29, %s795_s29 }
  0x37   : > { %p566_p8 = scmp.ne.s32.totalorder %s795_s29, %s565_s26  ;;  %p574_p5 = scmp.lt.s32.totalorder %s565_s26, %s565_s26 }
  0x39   : > { %p568_p13 = pnand %p566_p8, %p526_p12  ;;  %p575_p7 = por %p574_p5, %p573_p3 }
  0x3b   : > { %p569_p0 = pneg %p568_p13 }
  0x3d   : > { %p576_p9 = pnand %p575_p7, %p569_p0 }
  0x3f   : > { %579 = shalt.err (!%p576_p9)
}
  0x40   : > { %450 = dma.hbm_to_vmem [thread:$0]  (!%p791_p10), %s981_s2, 256, %s795_s29, [#allocation6], %s700_s11, %s700_s11, %s701_s18  }
  0x41   : > { %s32_s19 = sadd.s32 1, %s692_s16  ;;  %s41_s25 = sadd.s32 1, %s684_s14 }
  0x42   : > { %p34_p12 = scmp.ge.s32.totalorder %s32_s19, 4  ;;  %p48_p11 = scmp.ne.s32.totalorder %s684_s14, %s680_s13 }
  0x43   : > { %p49_p1 = scmp.eq.s32.totalorder %s696_s17, 0  ;;  %p461_p2 = scmp.lt.s32.totalorder %s696_s17, 4 }
  0x44   : > { %s1006_s19 = smov (%p34_p12, %s32_s19), 0  ;;  %p993_p6 = scmp.ne.s32.totalorder %s988_s21, 0 }
  0x45   : > { %p50_p4 = por %p49_p1, %p48_p11  ;;  %s36_s28 = ssub.s32 %s692_s16, %s1006_s19 }
  0x46   : > { %p854_p8 = por %p993_p6, %p48_p11  ;;  %s174_s30 = sand.u32 1, %s684_s14  }
  0x47   : > { %p39_p13 = scmp.eq.s32.totalorder %s36_s28, 0  ;;  %s404_s29 = sshll.u32 %s174_s30, 3 }
  0x48   : > { %s419_s11 = sshll.u32 %s692_s16, 7  ;;  %s178_s21 = scalar_lea.vmem [#allocation2], %s404_s29 }
  0x49   : > { %s863_s18 = scalar_select %p39_p13, %s684_s14, %s41_s25  }
  0x4a   : > { %s868_s6 = scalar_lea.hbm %s979_s0, %s419_s11  ;;  %s186_s7 = sshll.u32 %s178_s21, 4  ;;  %s876_s7 = int_to_ptr.vmem [resolvable:$true] %s186_s7 }
  0x4b   : > { %p872_p10 = pnand %p461_p2, %p50_p4  ;;  %s878_s26 = scalar_lea.sflag [#allocation3], %s174_s30 }
  0x4c   : > { %s580_s9 = scalar_lea.hbm %s868_s6, 128  ;;  %s585_s28 = scalar_lea.hbm %s979_s0, 512 }
  0x4d   : > { %p581_p0 = scmp.ne.s32.totalorder %s868_s6, %s580_s9  ;;  %p582_p3 = pneg %p872_p10 }
  0x4e   : > { %p586_p9 = scmp.lt.u32.totalorder %s868_s6, %s979_s0  ;;  %p587_p12 = scmp.lt.u32.totalorder %s585_s28, %s580_s9 }
  0x4f   : > { %p583_p5 = pnand %p582_p3, %p581_p0  ;;  %p589_p1 = scmp.lt.u32.totalorder %s580_s9, %s868_s6 }
  0x50   : > { %p588_p11 = por %p587_p12, %p586_p9 }
  0x51   : > { %p584_p7 = pneg %p583_p5 }
  0x52   : > { %p590_p2 = por %p589_p1, %p588_p11 }
  0x54   : > { %p591_p4 = pnand %p590_p2, %p584_p7 }
  0x56   : > { %594 = shalt.err (!%p591_p4)
}
  0x57   : > { %s595_s30 = scalar_lea.vmem %s876_s7, 128  ;;  %s702_s4 = smov [#allocation2]  }
  0x58   : > { %p596_p6 = scmp.ne.s32.totalorder %s876_s7, %s595_s30  ;;  %s600_s5 = sshll.u32 %s702_s4, 4  ;;  %s601_s5 = int_to_ptr.vmem [resolvable:$false] %s600_s5 }
  0x59   : > { %s602_s21 = scalar_lea.vmem %s601_s5, 256  ;;  %p603_p5 = scmp.lt.s32.totalorder %s876_s7, %s601_s5 }
  0x5a   : > { %p598_p13 = pnand %p596_p6, %p582_p3  ;;  %p604_p9 = scmp.lt.s32.totalorder %s602_s21, %s595_s30 }
  0x5c   : > { %p599_p0 = pneg %p598_p13  ;;  %p605_p12 = por %p604_p9, %p603_p5 }
  0x5e   : > { %p606_p11 = pnand %p605_p12, %p599_p0 }
  0x60   : > { %609 = shalt.err (!%p606_p11)
}
  0x61   : > { %s703_s9 = smov 64   ;;  %s704_s10 = smov 4  }
  0x62   : > { %454 = dma.hbm_to_vmem [thread:$0]  (!%p872_p10), %s868_s6, 128, %s876_s7, %s878_s26, %s703_s9, %s703_s9, %s704_s10  }
  0x63   : > { %p996_p3 = scmp.ne.s32.totalorder %s991_s24, 0 }
  0x64   : > { %s909_s25 = sand.u32 (!%p996_p3), 1, %s680_s13   ;;  %p997_p7 = scmp.ne.s32.totalorder (!%p996_p3), %s989_s22, 0 }
  0x65   : > { %198 = sbr.rel (%p996_p3) target bundleno = 269 (0x10d), region = 32  ;;  %s408_s28 = sshll.u32 (!%p996_p3), %s909_s25, 3 }
  0x66   : > { %s201_s29 = scalar_lea.sflag (!%p996_p3), [#allocation3], %s909_s25  ;;  %s204_s11 = scalar_lea.vmem (!%p996_p3), [#allocation2], %s408_s28 }
  0x6c   : > { %663 = dma.done.wait (%p997_p7), %s201_s29, 128  }
  0x6d   : > { %665 = vsyncadd (%p997_p7), %s201_s29, 4294967168  ;;  %p998_p10 = scmp.ne.s32.totalorder %s987_s20, 0 }
  0x6f   : > { %667 = dma.done.wait (%p998_p10), [#allocation6], 512  }
  0x70   : > { %669 = vsyncadd (%p998_p10), [#allocation6], 4294966784  ;;  %v705_v0 = vmov 0   ;;  %v253_v1 = vld [vmem:[#allocation7] sm:$0xff]  ;;  %v239_v2 = vld [vmem:[#allocation5] sm:$0xff]  ;;  %s422_s20 = sshll.u32 %s688_s15, 7 }
  0x71   : > { %523 = vset.pattern.permute.xlu1 %v705_v0  ;;  %522 = vset.pattern.permute.xlu0 %v705_v0  ;;  %v254_v3 = vld [vmem:[#allocation7 + $0x8] sm:$0xff]  ;;  %v240_v4 = vld [vmem:[#allocation5 + $0x8] sm:$0xff]  ;;  %s234_s22 = scalar_lea.vmem [#allocation8], %s408_s28  ;;  %s929_s8 = scalar_lea.hbm %s982_s3, %s422_s20 }
  0x72   : > { %257 = vperm.xlu1 %523, %v253_v1   ;;  %243 = vperm.xlu0 %522, %v239_v2   ;;  %v424_v5 = vld [vmem:[%s204_s11] sm:$0xff]   ;;  %s294_s24 = sshll.u32 %s234_s22, 4  ;;  %s280_s26 = scalar_lea.sflag [#allocation4], %s909_s25  ;;  %s931_s24 = int_to_ptr.vmem [resolvable:$true] %s294_s24 }
  0x73   : > { %v425_v6 = vunpack.c.l.bf16 %v424_v5  ;;  %v426_v10 = vunpack.c.h.bf16 %v424_v5  ;;  %s610_s30 = scalar_lea.vmem %s931_s24, 128  ;;  %s706_s15 = smov [#allocation8]  }
  0x74   : > { %p611_p1 = scmp.ne.s32.totalorder %s931_s24, %s610_s30  ;;  %s614_s4 = sshll.u32 %s706_s15, 4  ;;  %s615_s4 = int_to_ptr.vmem [resolvable:$false] %s614_s4 }
  0x75   : > { %s616_s5 = scalar_lea.vmem %s615_s4, 256  ;;  %p617_p6 = scmp.lt.s32.totalorder %s931_s24, %s615_s4 }
  0x76   : > { %262 = vperm.xlu1 %523, %v254_v3   ;;  %248 = vperm.xlu0 %522, %v240_v4   ;;  %p612_p2 = pnand %p611_p1, %p854_p8  ;;  %p618_p13 = scmp.lt.s32.totalorder %s616_s5, %s610_s30 }
  0x78   : > { %p613_p4 = pneg %p612_p2  ;;  %p619_p0 = por %p618_p13, %p617_p6 }
  0x7a   : > { %p620_p5 = pnand %p619_p0, %p613_p4 }
  0xf1   : > { %v258_v7 = vpop.permute.xlu1 %257  ;;  %v244_v8 = vpop.permute.xlu0 %243 }
  0xf2   : > { %v251_v9 = vmul.f32 %v425_v6, %v244_v8 }
  0xf4   : > { %v265_v12 = vadd.f32 %v258_v7, %v251_v9 }
  0xf5   : > { %v249_v11 = vpop.permute.xlu0 %248  ;;  %v263_v14 = vpop.permute.xlu1 %262 }
  0xf6   : > { %v252_v13 = vmul.f32 %v426_v10, %v249_v11  ;;  %v267_v16 = vmax.f32 %v265_v12, 0.0 }
  0xf8   : > { %v266_v15 = vadd.f32 %v263_v14, %v252_v13 }
  0xfa   : > { %v268_v17 = vmax.f32 %v266_v15, 0.0 }
  0xfc   : > { %v430_v18 = vpack.c.bf16 %v268_v17, %v267_v16 }
  0xfe   : > { %431 = vst [vmem:[%s234_s22] sm:$0xff] %v430_v18  }
  0xff   : > { %623 = shalt.err (!%p620_p5)
}
 0x100   : > { %s624_s21 = scalar_lea.hbm %s929_s8, 128  ;;  %s628_s28 = scalar_lea.hbm %s982_s3, 512 }
 0x101   : > { %p625_p9 = scmp.ne.s32.totalorder %s929_s8, %s624_s21  ;;  %p629_p3 = scmp.lt.u32.totalorder %s929_s8, %s982_s3 }
 0x102   : > { %p630_p7 = scmp.lt.u32.totalorder %s628_s28, %s624_s21  ;;  %p632_p1 = scmp.lt.u32.totalorder %s624_s21, %s929_s8 }
 0x103   : > { %p626_p12 = pnand %p625_p9, %p854_p8 }
 0x104   : > { %p631_p10 = por %p630_p7, %p629_p3 }
 0x105   : > { %p627_p11 = pneg %p626_p12 }
 0x106   : > { %p633_p2 = por %p632_p1, %p631_p10 }
 0x108   : > { %p634_p4 = pnand %p633_p2, %p627_p11 }
 0x10a   : > { %637 = shalt.err (!%p634_p4)
}
 0x10b   : > { %s707_s20 = smov 64   ;;  %s708_s22 = smov 4  }
 0x10c   : > { %442 = dma.vmem_to_hbm [thread:$0]  (%p854_p8), %s931_s24, 128, %s929_s8, %s280_s26, %s707_s20, %s707_s20, %s708_s22  }
 0x10d PF: > { %p464_p6 = scmp.ge.s32.totalorder %s696_s17, 2  ;;  %s309_s6 = sand.u32 1, %s676_s12  }
 0x10e   : > { %p999_p13 = scmp.ne.s32.totalorder %s990_s23, 0  ;;  %s310_s7 = scalar_lea.sflag [#allocation4], %s309_s6 }
 0x110   : > { %p456_p0 = pnand %p464_p6, %p999_p13 }
 0x112   : > { %671 = dma.done.wait (!%p456_p0), %s310_s7, 128  }
 0x113   : > { %673 = vsyncadd (!%p456_p0), %s310_s7, 4294967168  ;;  %s20_s17 = sadd.s32 1, %s696_s17   ;;  %s1000_s12 = smov %s680_s13 }
 0x114   : > { %p17_p5 = scmp.ge.s32.totalorder %s20_s17, 6   ;;  %s1001_s13 = smov %s684_s14 }
 0x115   : > { %s1002_s14 = smov %s863_s18  ;;  %s1003_s15 = smov %s692_s16 }
 0x116   : > { %s1004_s16 = smov %s1006_s19  ;;  %19 = sbr.rel (!%p17_p5) target bundleno = 7 (0x7), region = 85 }
 0x11d   :  { %315 = vsyncpa [#allocation3], 1 }
 0x11e   :  { %317 = vsyncpa [#allocation3 + $0x1], 1 }
 0x11f   :  { %318 = vsyncpa [#allocation6], 1 }
 0x120   :  { %319 = vsyncpa [#allocation4], 1 }
 0x121   :  { %321 = vsyncpa [#allocation4 + $0x1], 1 }

// kernel: generator_forward.16
= control target key start
LH: loop header
LB: loop body
LE: loop exit
PB: predicated region body
PF: predicated region fallthrough
CT: control target
= control target key end

     0   :  { %s2700_s0 = inlined_call_operand.hbm [shape: bf16[16,512], index: 0, kind: input, shape index: {}]   ;;  %s2701_s1 = inlined_call_operand.hbm [shape: bf16[20,16], index: 1, kind: input, shape index: {}]   ;;  %s2702_s2 = inlined_call_operand.hbm [shape: f32[20,1], index: 2, kind: input, shape index: {}]   ;;  %s2703_s3 = inlined_call_operand.<no memory space> [shape: f32[1,1], index: 3, kind: input, shape index: {}]   ;;  %s2704_s4 = inlined_call_operand.hbm [shape: bf16[16,512], index: 4, kind: output, shape index: {}]  }
   0x1   :  { %9 = sst [smem:[#allocation2]] %s2703_s3 }
   0x2   :  { %10 = vsyncpa [#allocation4], 0 }
   0x3   :  { %12 = vsyncpa [#allocation4 + $0x1], 0 }
   0x4   :  { %13 = vsyncpa [#allocation7], 0 }
   0x5   :  { %14 = vsyncpa [#allocation5], 0 }
   0x6   :  { %16 = vsyncpa [#allocation5 + $0x1], 0  ;;  %s1863_s17 = smov 0   ;;  %s1865_s18 = smov 0  }
   0x7   :  { %s1867_s19 = smov 0   ;;  %s1869_s20 = smov 0  }
   0x8 LB: > { %s1884_s3 = sadd.s32 4294967295, %s1820_s20   ;;  %s1341_s21 = sadd.s32 4294967294, %s1820_s20   ;;  %s1820_s20 = sphi %s1869_s20, %s2829_s20   ;;  %s1816_s19 = sphi %s1867_s19, %s2828_s19   ;;  %s1812_s18 = sphi %s1865_s18, %s2827_s18   ;;  %s1808_s17 = sphi %s1863_s17, %s2826_s17  }
   0x9   : > { %s1888_s22 = sadd.s32 1, %s1820_s20   ;;  %s29_s23 = sadd.s32 1, %s1816_s19 }
   0xa   : > { %s26_s24 = ssub.s32 %s1820_s20, %s1888_s22  ;;  %p36_p0 = scmp.ne.s32.totalorder %s1816_s19, %s1812_s18 }
   0xb   : > { %p27_p1 = scmp.eq.s32.totalorder %s26_s24, 0  ;;  %p37_p2 = scmp.eq.s32.totalorder %s1820_s20, 0 }
   0xc   : > { %p42_p3 = scmp.ne.s32.totalorder %s1812_s18, %s1808_s17  ;;  %p2705_p4 = scmp.eq.s32.totalorder %s1884_s3, 0 }
   0xd   : > { %s1900_s25 = scalar_select %p27_p1, %s1816_s19, %s29_s23  }
   0xe   : > { %p1902_p5 = por %p37_p2, %p36_p0  ;;  %p1908_p6 = por %p2705_p4, %p42_p3 }
   0xf   : > { %p129_p7 = scmp.eq.s32.totalorder %s1884_s3, 1  ;;  %p135_p8 = scmp.eq.s32.totalorder %s1341_s21, 1 }
  0x10   : > { %s2739_s26 = scalar_select %p1902_p5, 1, 0 }
  0x11   : > { %s2740_s27 = scalar_select %p1908_p6, 1, 0 }
  0x12   : > { %p1342_p9 = scmp.ge.s32.totalorder %s1820_s20, 1  ;;  %p142_p10 = scmp.lt.s32.totalorder %s1820_s20, 3 }
  0x13   : > { %p1915_p11 = por %p129_p7, %p36_p0  ;;  %p1919_p12 = por %p135_p8, %p42_p3 }
  0x14   : > { %p1923_p13 = pnand %p1342_p9, %p142_p10  ;;  %s1822_s5 = smov [#allocation6]  }
  0x15   : > { %s2741_s28 = scalar_select %p1915_p11, 1, 0 }
  0x16   : > { %s2742_s29 = scalar_select %p1919_p12, 1, 0 }
  0x17   : > { %s2743_s30 = scalar_select %p1923_p13, 1, 0 }
  0x18   : > { %p1400_p1 = pneg %p1923_p13  ;;  %s154_s6 = sshll.u32 %s1822_s5, 4  ;;  %s155_s6 = int_to_ptr.vmem [resolvable:$true] %s154_s6 }
  0x19   : > { %s1823_s8 = smov [#allocation8]   ;;  %s1664_s12 = scalar_lea.hbm %s2701_s1, 192 }
  0x1a   : > { %p1931_p2 = pnand %p1400_p1, %p2705_p4  ;;  %s167_s9 = sshll.u32 %s1823_s8, 4  ;;  %s168_s9 = int_to_ptr.vmem [resolvable:$true] %s167_s9 }
  0x1b   : > { %p1665_p7 = scmp.ne.s32.totalorder %s2701_s1, %s1664_s12  ;;  %p1671_p1 = scmp.lt.u32.totalorder %s1664_s12, %s2701_s1 }
  0x1c   : > { %p1666_p8 = pneg %p1931_p2 }
  0x1e   : > { %p1667_p9 = pnand %p1666_p8, %p1665_p7 }
  0x20   : > { %p1668_p10 = pneg %p1667_p9 }
  0x22   : > { %p1673_p0 = pnand %p1671_p1, %p1668_p10 }
  0x24   : > { %1676 = shalt.err (!%p1673_p0)
}
  0x25   : > { %s1677_s21 = scalar_lea.vmem %s155_s6, 192  ;;  %p1685_p11 = scmp.lt.s32.totalorder %s155_s6, %s155_s6 }
  0x26   : > { %p1678_p4 = scmp.ne.s32.totalorder %s155_s6, %s1677_s21  ;;  %p1686_p6 = scmp.lt.s32.totalorder %s1677_s21, %s1677_s21 }
  0x28   : > { %p1680_p3 = pnand %p1678_p4, %p1666_p8  ;;  %p1687_p13 = por %p1686_p6, %p1685_p11 }
  0x2a   : > { %p1681_p12 = pneg %p1680_p3 }
  0x2c   : > { %p1688_p5 = pnand %p1687_p13, %p1681_p12 }
  0x2e   : > { %1691 = shalt.err (!%p1688_p5)
}
  0x2f   : > { %s1824_s23 = smov 64   ;;  %s1825_s24 = smov 4  }
  0x30   : > { %1403 = dma.hbm_to_vmem [thread:$0]  (!%p1931_p2), %s2701_s1, 192, %s155_s6, [#allocation7], %s1824_s23, %s1824_s23, %s1825_s24  }
  0x31   : > { %p2745_p0 = scmp.ne.s32.totalorder %s2739_s26, 0  ;;  %p2746_p4 = scmp.lt.s32.totalorder %s1820_s20, 2 }
  0x32   : > { %s184_s11 = sand.u32 1, %s1816_s19   ;;  %s1692_s14 = scalar_lea.hbm %s2702_s2, 384 }
  0x33   : > { %p1963_p3 = pnand %p2746_p4, %p2745_p0  ;;  %p1693_p5 = scmp.ne.s32.totalorder %s2702_s2, %s1692_s14 }
  0x34   : > { %p1699_p12 = scmp.lt.u32.totalorder %s1692_s14, %s2702_s2 }
  0x35   : > { %s2747_s10 = scalar_select %p1963_p3, 1, 0 }
  0x36   : > { %p1695_p6 = pnand %p1693_p5, %p1666_p8 }
  0x38   : > { %p1696_p11 = pneg %p1695_p6 }
  0x3a   : > { %p1701_p13 = pnand %p1699_p12, %p1696_p11 }
  0x3c   : > { %1704 = shalt.err (!%p1701_p13)
}
  0x3d   : > { %s1705_s21 = scalar_lea.vmem %s168_s9, 384  ;;  %p1713_p1 = scmp.lt.s32.totalorder %s168_s9, %s168_s9 }
  0x3e   : > { %p1706_p7 = scmp.ne.s32.totalorder %s168_s9, %s1705_s21  ;;  %p1714_p0 = scmp.lt.s32.totalorder %s1705_s21, %s1705_s21 }
  0x40   : > { %p1708_p9 = pnand %p1706_p7, %p1666_p8  ;;  %p1715_p4 = por %p1714_p0, %p1713_p1 }
  0x42   : > { %p1709_p10 = pneg %p1708_p9 }
  0x44   : > { %p1716_p3 = pnand %p1715_p4, %p1709_p10 }
  0x46   : > { %1719 = shalt.err (!%p1716_p3)
}
  0x47   : > { %s1826_s23 = smov 128   ;;  %s1827_s24 = smov 8  }
  0x48   : > { %1406 = dma.hbm_to_vmem [thread:$0]  (!%p1931_p2), %s2702_s2, 384, %s168_s9, [#allocation7], %s1826_s23, %s1826_s23, %s1827_s24  }
  0x49   : > { %s1346_s12 = sshll.u32 %s184_s11, 4  ;;  %s1384_s13 = sshll.u32 %s1820_s20, 7 }
  0x4a   : > { %s1995_s16 = scalar_lea.hbm %s2700_s0, %s1384_s13  ;;  %s188_s26 = scalar_lea.vmem [#allocation3], %s1346_s12 }
  0x4b   : > { %s195_s7 = sshll.u32 %s188_s26, 4  ;;  %s1999_s6 = scalar_lea.sflag [#allocation4], %s184_s11  ;;  %s1997_s7 = int_to_ptr.vmem [resolvable:$true] %s195_s7 }
  0x4c   : > { %s1720_s21 = scalar_lea.hbm %s1995_s16, 256  ;;  %p2748_p2 = scmp.ne.s32.totalorder %s2747_s10, 0 }
  0x4d   : > { %p1721_p8 = scmp.ne.s32.totalorder %s1995_s16, %s1720_s21  ;;  %s1725_s8 = scalar_lea.hbm %s2700_s0, 512 }
  0x4e   : > { %p1722_p3 = pneg %p2748_p2  ;;  %p1726_p11 = scmp.lt.u32.totalorder %s1995_s16, %s2700_s0 }
  0x4f   : > { %p1727_p12 = scmp.lt.u32.totalorder %s1725_s8, %s1720_s21  ;;  %p1729_p7 = scmp.lt.u32.totalorder %s1720_s21, %s1995_s16 }
  0x50   : > { %p1723_p5 = pnand %p1722_p3, %p1721_p8 }
  0x51   : > { %p1728_p13 = por %p1727_p12, %p1726_p11 }
  0x52   : > { %p1724_p6 = pneg %p1723_p5 }
  0x53   : > { %p1730_p9 = por %p1729_p7, %p1728_p13 }
  0x55   : > { %p1731_p10 = pnand %p1730_p9, %p1724_p6 }
  0x57   : > { %1734 = shalt.err (!%p1731_p10)
}
  0x58   : > { %s1735_s11 = scalar_lea.vmem %s1997_s7, 256  ;;  %s1828_s12 = smov [#allocation3]  }
  0x59   : > { %p1736_p1 = scmp.ne.s32.totalorder %s1997_s7, %s1735_s11  ;;  %s1740_s15 = sshll.u32 %s1828_s12, 4  ;;  %s1741_s15 = int_to_ptr.vmem [resolvable:$false] %s1740_s15 }
  0x5a   : > { %s1742_s26 = scalar_lea.vmem %s1741_s15, 512  ;;  %p1743_p8 = scmp.lt.s32.totalorder %s1997_s7, %s1741_s15 }
  0x5b   : > { %p1738_p0 = pnand %p1736_p1, %p1722_p3  ;;  %p1744_p5 = scmp.lt.s32.totalorder %s1742_s26, %s1735_s11 }
  0x5d   : > { %p1739_p4 = pneg %p1738_p0  ;;  %p1745_p11 = por %p1744_p5, %p1743_p8 }
  0x5f   : > { %p1746_p12 = pnand %p1745_p11, %p1739_p4 }
  0x61   : > { %1749 = shalt.err (!%p1746_p12)
}
  0x62   : > { %s1829_s21 = smov 256   ;;  %p2749_p3 = scmp.ne.s32.totalorder %s2743_s30, 0 }
  0x63   : > { %1410 = dma.hbm_to_vmem [thread:$0]  (!%p2748_p2), %s1995_s16, 256, %s1997_s7, %s1999_s6, %s1829_s21, %s1826_s23, %s1827_s24  }
  0x64   : > { %207 = sbr.rel (%p2749_p3) target bundleno = 1409 (0x581), region = 36 }
  0x6b   : > { %s2032_s9 = sand.u32 1, %s1812_s18   ;;  %p2750_p6 = scmp.ne.s32.totalorder %s2740_s27, 0 }
  0x6c   : > { %s1350_s5 = sshll.u32 %s2032_s9, 4  ;;  %s210_s8 = scalar_lea.sflag [#allocation4], %s2032_s9 }
  0x6d   : > { %s2038_s10 = scalar_lea.vmem [#allocation3], %s1350_s5 }
  0x6e   : > { %1795 = dma.done.wait (%p2750_p6), %s210_s8, 256  }
  0x6f   : > { %1797 = vsyncadd (%p2750_p6), %s210_s8, 4294967040  ;;  %p2751_p2 = scmp.eq.s32.totalorder %s1884_s3, 0 }
  0x71   : > { %1799 = dma.done.wait (%p2751_p2), [#allocation7], 576   ;;  %p2752_p13 = pmov %p2751_p2 }
  0x72   : > { %v1830_v0 = vmov 0   ;;  %v249_v1 = vld [vmem:[%s2038_s10] sm:$0xff]  ;;  %v250_v2 = vld [vmem:[%s2038_s10 + $0x8] sm:$0xff]  ;;  %vm290_vm0 = vcmask 130048   ;;  %vm439_vm1 = vcmask 1040384   ;;  %vm390_vm2 = vcmask 15360  }
  0x73   : > { %1801 = vsyncadd (%p2752_p13), [#allocation7], 4294966720  ;;  %329 = vmatprep.mubr.bf16.mxu0 %v1830_v0  ;;  %1464 = vset.pattern.permute.xlu0 %v1830_v0  ;;  %v1357_v3 = vcombine.high %v249_v1, %v250_v2  ;;  %v1356_v4 = vcombine.low %v249_v1, %v250_v2  ;;  %v254_v5 = vld [vmem:[#allocation8] sm:$0xff]  ;;  %v1468_v6 = vld [vmem:[#allocation6] sm:$0xff]   ;;  %vm1155_vm3 = vcmask 1045504   ;;  %s1207_s27 = sld [smem:[#allocation2]] }
  0x74   : > { %478 = vmatprep.mubr.bf16.mxu1 %v1830_v0  ;;  %259 = vperm.xlu0 %1464, %v254_v5   ;;  %s245_s30 = scalar_lea.vmem [#allocation9], %s1350_s5  ;;  %s1387_s24 = sshll.u32 %s1884_s3, 7 }
  0x75   : > { %297 = vmatprep.subr.bf16.mxu0 %v1357_v3  ;;  %s1249_s23 = sshll.u32 %s245_s30, 4  ;;  %s2656_s6 = scalar_lea.hbm %s2704_s4, %s1387_s24  ;;  %s2651_s23 = int_to_ptr.vmem [resolvable:$true] %s1249_s23 }
  0x76   : > { %298 = vmatpush1.bf16.msra.mxu0 %v1356_v4  ;;  %s1236_s13 = scalar_lea.sflag [#allocation5], %s2032_s9  ;;  %s1750_s14 = scalar_lea.vmem %s2651_s23, 256 }
  0x77   : > { %p1751_p7 = scmp.ne.s32.totalorder %s2651_s23, %s1750_s14  ;;  %p2823_p9 = scmp.ne.s32.totalorder %s2741_s28, 0 }
  0x78   : > { %s1831_s3 = smov [#allocation9]  }
  0x79   : > { %1358 = vmatmul.mubr.msk.bf16.vlgmr.msra.gmra.mrb[0].mxu0 %vm290_vm0, %v1468_v6  ;;  %p1752_p10 = pnand %p1751_p7, %p2823_p9  ;;  %s1754_s11 = sshll.u32 %s1831_s3, 4  ;;  %s1755_s11 = int_to_ptr.vmem [resolvable:$false] %s1754_s11 }
  0x7a   : > { %339 = vmatprep.mubr.bf16.mxu0 %v1830_v0  ;;  %s1756_s12 = scalar_lea.vmem %s1755_s11, 512  ;;  %p1757_p0 = scmp.lt.s32.totalorder %s2651_s23, %s1755_s11 }
  0x7b   : > { %p1753_p1 = pneg %p1752_p10  ;;  %p1758_p4 = scmp.lt.s32.totalorder %s1756_s12, %s1750_s14 }
  0x7d   : > { %p1759_p8 = por %p1758_p4, %p1757_p0 }
  0x7f   : > { %p1760_p5 = pnand %p1759_p8, %p1753_p1 }
  0xf3   : > { %v260_v7 = vpop.permute.xlu0 %259 }
 0x14c   : > { %v331_v8 = vpop.f32.mrb[0].mxu0 }
 0x14d   : > { %v2055_v9 = vadd.f32 %v331_v8, %v260_v7  ;;  %v333_v10 = vpop.f32.mrb[1].mxu0 }
 0x14e   : > { %v2057_v11 = vadd.f32 %v333_v10, %v260_v7  ;;  %v2059_v12 = vpop.f32.mrb[2].mxu0 }
 0x14f   : > { %2753 = vst [vmem:[#allocation13_spill] sm:$0xff] %v2055_v9  ;;  %2755 = vst [vmem:[#allocation15_spill] sm:$0xff] %v2059_v12  ;;  %v348_v13 = vpack.c.bf16 %v2055_v9, %v2055_v9  ;;  %v2063_v14 = vpop.f32.mrb[3].mxu0 }
 0x150   : > { %2754 = vst [vmem:[#allocation14_spill] sm:$0xff] %v2057_v11  ;;  %2756 = vst [vmem:[#allocation16_spill] sm:$0xff] %v2063_v14  ;;  %v349_v15 = vpack.c.bf16 %v2057_v11, %v2057_v11 }
 0x151   : > { %354 = vxpose.xlu0.c.b16.start.end [1/1] (short) %v348_v13, 128  ;;  %v388_v16 = vrot.slane %v348_v13, 1 }
 0x152   : > { %370 = vxpose.xlu1.c.b16.start.end [1/1] (short) %v349_v15, 128  ;;  %v389_v17 = vrot.slane %v349_v15, 1 }
 0x153   : > { %v441_v18 = vsel %vm439_vm1, %v388_v16, 0 }
 0x154   : > { %1360 = vmatprep.subr.msk.bf16.mxu1 %vm439_vm1, %v389_v17 }
 0x155   : > { %447 = vmatpush1.bf16.msra.mxu1 %v441_v18 }
 0x156   : > { %1465 = vset.pattern.permute.xlu1 %v1830_v0 }
 0x1b7   : > { %v362_v19 = vpop.trf.xlu0 }
 0x1b8   : > { %1361 = vmatmul.mubr.msk.bf16.vlgmr.msra.gmra.mrb[0].mxu1 %vm390_vm2, %v362_v19  ;;  %v378_v27 = vpop.trf.xlu1 }
 0x1b9   : > { %488 = vmatprep.mubr.bf16.mxu1 %v1830_v0 }
 0x1bb   : > { %v363_v20 = vpop.trf.xlu0 }
 0x1bc   : > { %v379_v28 = vpop.trf.xlu1 }
 0x1bf   : > { %v364_v21 = vpop.trf.xlu0 }
 0x1c0   : > { %1362 = vmatmul.mubr.msk.bf16.gmra.mrb[4].mxu1 %vm390_vm2, %v363_v20  ;;  %v380_v29 = vpop.trf.xlu1 }
 0x1c1   : > { %498 = vmatprep.mubr.bf16.mxu1 %v1830_v0 }
 0x1c3   : > { %v365_v22 = vpop.trf.xlu0 }
 0x1c4   : > { %v381_v30 = vpop.trf.xlu1 }
 0x1c7   : > { %v366_v23 = vpop.trf.xlu0 }
 0x1c8   : > { %1363 = vmatmul.mubr.msk.bf16.gmra.mrb[8].mxu1 %vm390_vm2, %v364_v21  ;;  %v382_v31 = vpop.trf.xlu1 }
 0x1c9   : > { %508 = vmatprep.mubr.bf16.mxu1 %v1830_v0 }
 0x1cb   : > { %v367_v24 = vpop.trf.xlu0 }
 0x1cc   : > { %v383_v32 = vpop.trf.xlu1 }
 0x1cf   : > { %v368_v25 = vpop.trf.xlu0 }
 0x1d0   : > { %1364 = vmatmul.mubr.msk.bf16.gmra.mrb[12].mxu1 %vm390_vm2, %v365_v22  ;;  %v384_v33 = vpop.trf.xlu1 }
 0x1d1   : > { %518 = vmatprep.mubr.bf16.mxu1 %v1830_v0 }
 0x1d3   : > { %v369_v26 = vpop.trf.xlu0 }
 0x1d4   : > { %v385_v34 = vpop.trf.xlu1 }
 0x1d8   : > { %1365 = vmatmul.mubr.msk.bf16.gmra.mrb[16].mxu1 %vm390_vm2, %v366_v23 }
 0x1d9   : > { %528 = vmatprep.mubr.bf16.mxu1 %v1830_v0 }
 0x1e0   : > { %1366 = vmatmul.mubr.msk.bf16.gmra.mrb[20].mxu1 %vm390_vm2, %v367_v24 }
 0x1e1   : > { %538 = vmatprep.mubr.bf16.mxu1 %v1830_v0 }
 0x1e8   : > { %1367 = vmatmul.mubr.msk.bf16.gmra.mrb[24].mxu1 %vm390_vm2, %v368_v25 }
 0x1e9   : > { %548 = vmatprep.mubr.bf16.mxu1 %v1830_v0 }
 0x1f0   : > { %1368 = vmatmul.mubr.msk.bf16.gmra.mrb[28].mxu1 %vm390_vm2, %v369_v26 }
 0x1f1   : > { %558 = vmatprep.mubr.bf16.mxu1 %v1830_v0 }
 0x1f8   : > { %1369 = vmatmul.mubr.msk.bf16.gmra.mrb[32].mxu1 %vm390_vm2, %v378_v27 }
 0x1f9   : > { %568 = vmatprep.mubr.bf16.mxu1 %v1830_v0 }
 0x200   : > { %1370 = vmatmul.mubr.msk.bf16.gmra.mrb[36].mxu1 %vm390_vm2, %v379_v28 }
 0x201   : > { %578 = vmatprep.mubr.bf16.mxu1 %v1830_v0 }
 0x208   : > { %1371 = vmatmul.mubr.msk.bf16.gmra.mrb[40].mxu1 %vm390_vm2, %v380_v29 }
 0x209   : > { %588 = vmatprep.mubr.bf16.mxu1 %v1830_v0 }
 0x210   : > { %1372 = vmatmul.mubr.msk.bf16.gmra.mrb[44].mxu1 %vm390_vm2, %v381_v30 }
 0x211   : > { %598 = vmatprep.mubr.bf16.mxu1 %v1830_v0 }
 0x218   : > { %1373 = vmatmul.mubr.msk.bf16.gmra.mrb[48].mxu1 %vm390_vm2, %v382_v31 }
 0x219   : > { %608 = vmatprep.mubr.bf16.mxu1 %v1830_v0 }
 0x220   : > { %1374 = vmatmul.mubr.msk.bf16.gmra.mrb[52].mxu1 %vm390_vm2, %v383_v32 }
 0x221   : > { %618 = vmatprep.mubr.bf16.mxu1 %v1830_v0 }
 0x228   : > { %1375 = vmatmul.mubr.msk.bf16.gmra.mrb[56].mxu1 %vm390_vm2, %v384_v33 }
 0x229   : > { %628 = vmatprep.mubr.bf16.mxu1 %v1830_v0 }
 0x230   : > { %1376 = vmatmul.mubr.msk.bf16.gmra.mrb[60].mxu1 %vm390_vm2, %v385_v34 }
 0x28b   : > { %v2099_v35 = vpop.f32.mrb[0].mxu1 }
 0x28c   : > { %v2101_v36 = vpop.f32.mrb[1].mxu1 }
 0x28d   : > { %v2103_v37 = vpop.f32.mrb[2].mxu1  ;;  %v639_v38 = vmax.f32 %v2099_v35, %v2101_v36 }
 0x28e   : > { %v2107_v39 = vpop.f32.mrb[3].mxu1 }
 0x28f   : > { %640 = vmax.xlane.f32.xlu1 %v639_v38  ;;  %v642_v40 = vmax.f32 %v2103_v37, %v2107_v39 }
 0x291   : > { %643 = vmax.xlane.f32.xlu0 %v642_v40 }
 0x293   : > { %v2111_v41 = vpop.f32.mrb[4].mxu1 }
 0x294   : > { %v2113_v42 = vpop.f32.mrb[5].mxu1 }
 0x295   : > { %v2115_v43 = vpop.f32.mrb[6].mxu1  ;;  %v645_v44 = vmax.f32 %v2111_v41, %v2113_v42 }
 0x296   : > { %v2119_v45 = vpop.f32.mrb[7].mxu1 }
 0x297   : > { %646 = vmax.xlane.f32.xlu1 %v645_v44  ;;  %v648_v46 = vmax.f32 %v2115_v43, %v2119_v45 }
 0x29b   : > { %649 = vmax.xlane.f32.xlu1 %v648_v46  ;;  %v2123_v47 = vpop.f32.mrb[8].mxu1 }
 0x29c   : > { %v2125_v48 = vpop.f32.mrb[9].mxu1 }
 0x29d   : > { %v2127_v49 = vpop.f32.mrb[10].mxu1  ;;  %v651_v50 = vmax.f32 %v2123_v47, %v2125_v48 }
 0x29e   : > { %v2131_v51 = vpop.f32.mrb[11].mxu1 }
 0x29f   : > { %652 = vmax.xlane.f32.xlu1 %v651_v50  ;;  %v654_v52 = vmax.f32 %v2127_v49, %v2131_v51 }
 0x2a3   : > { %655 = vmax.xlane.f32.xlu1 %v654_v52  ;;  %v2135_v53 = vpop.f32.mrb[12].mxu1 }
 0x2a4   : > { %v2137_v54 = vpop.f32.mrb[13].mxu1 }
 0x2a5   : > { %v2139_v55 = vpop.f32.mrb[14].mxu1  ;;  %v657_v56 = vmax.f32 %v2135_v53, %v2137_v54 }
 0x2a6   : > { %v2143_v57 = vpop.f32.mrb[15].mxu1 }
 0x2a7   : > { %658 = vmax.xlane.f32.xlu1 %v657_v56  ;;  %v660_v58 = vmax.f32 %v2139_v55, %v2143_v57 }
 0x2ab   : > { %661 = vmax.xlane.f32.xlu1 %v660_v58  ;;  %v2147_v59 = vpop.f32.mrb[16].mxu1 }
 0x2ac   : > { %v2149_v60 = vpop.f32.mrb[17].mxu1 }
 0x2ad   : > { %v663_v61 = vmax.f32 %v2147_v59, %v2149_v60  ;;  %v2153_v62 = vpop.f32.mrb[18].mxu1 }
 0x2ae   : > { %v2155_v63 = vpop.f32.mrb[19].mxu1 }
 0x2af   : > { %664 = vmax.xlane.f32.xlu1 %v663_v61  ;;  %v666_v0 = vmax.f32 %v2153_v62, %v2155_v63 }
 0x2b3   : > { %667 = vmax.xlane.f32.xlu1 %v666_v0  ;;  %v2159_v1 = vpop.f32.mrb[20].mxu1 }
 0x2b4   : > { %v2161_v2 = vpop.f32.mrb[21].mxu1 }
 0x2b5   : > { %v2163_v3 = vpop.f32.mrb[22].mxu1  ;;  %v669_v4 = vmax.f32 %v2159_v1, %v2161_v2 }
 0x2b6   : > { %v2167_v5 = vpop.f32.mrb[23].mxu1 }
 0x2b7   : > { %670 = vmax.xlane.f32.xlu0 %v669_v4  ;;  %v672_v6 = vmax.f32 %v2163_v3, %v2167_v5 }
 0x2b9   : > { %673 = vmax.xlane.f32.xlu1 %v672_v6 }
 0x2bb   : > { %v2171_v7 = vpop.f32.mrb[24].mxu1 }
 0x2bc   : > { %v2173_v8 = vpop.f32.mrb[25].mxu1 }
 0x2bd   : > { %v2175_v10 = vpop.f32.mrb[26].mxu1  ;;  %v675_v13 = vmax.f32 %v2171_v7, %v2173_v8 }
 0x2be   : > { %v2179_v15 = vpop.f32.mrb[27].mxu1 }
 0x2bf   : > { %676 = vmax.xlane.f32.xlu0 %v675_v13  ;;  %v678_v16 = vmax.f32 %v2175_v10, %v2179_v15 }
 0x2c1   : > { %679 = vmax.xlane.f32.xlu1 %v678_v16 }
 0x2c3   : > { %v2183_v17 = vpop.f32.mrb[28].mxu1 }
 0x2c4   : > { %v2185_v18 = vpop.f32.mrb[29].mxu1 }
 0x2c5   : > { %v2187_v19 = vpop.f32.mrb[30].mxu1  ;;  %v681_v20 = vmax.f32 %v2183_v17, %v2185_v18 }
 0x2c6   : > { %v2191_v21 = vpop.f32.mrb[31].mxu1 }
 0x2c7   : > { %682 = vmax.xlane.f32.xlu0 %v681_v20  ;;  %v684_v22 = vmax.f32 %v2187_v19, %v2191_v21 }
 0x2c9   : > { %685 = vmax.xlane.f32.xlu1 %v684_v22 }
 0x2cb   : > { %v2195_v23 = vpop.f32.mrb[32].mxu1 }
 0x2cc   : > { %v2197_v24 = vpop.f32.mrb[33].mxu1 }
 0x2cd   : > { %v2199_v25 = vpop.f32.mrb[34].mxu1  ;;  %v687_v26 = vmax.f32 %v2195_v23, %v2197_v24 }
 0x2ce   : > { %v2203_v27 = vpop.f32.mrb[35].mxu1 }
 0x2cf   : > { %2757 = vst [vmem:[#allocation17_spill] sm:$0xff] %v2203_v27  ;;  %688 = vmax.xlane.f32.xlu0 %v687_v26  ;;  %v690_v28 = vmax.f32 %v2199_v25, %v2203_v27 }
 0x2d1   : > { %691 = vmax.xlane.f32.xlu1 %v690_v28  ;;  %v1469_v28 = vld [vmem:[#allocation6 + $0x8] ss:$0 sps:$4 sm:$0x33]  }
 0x2d2   : > { %1359 = vmatmul.mubr.msk.bf16.gmra.mrb[4].mxu0 %vm290_vm0, %v1469_v28 }
 0x2d3   : > { %v2207_v29 = vpop.f32.mrb[36].mxu1 }
 0x2d4   : > { %2758 = vst [vmem:[#allocation18_spill] sm:$0xff] %v2207_v29  ;;  %v2209_v30 = vpop.f32.mrb[37].mxu1 }
 0x2d5   : > { %2759 = vst [vmem:[#allocation19_spill] sm:$0xff] %v2209_v30  ;;  %v2211_v31 = vpop.f32.mrb[38].mxu1  ;;  %v693_v32 = vmax.f32 %v2207_v29, %v2209_v30 }
 0x2d6   : > { %2760 = vst [vmem:[#allocation20_spill] sm:$0xff] %v2211_v31  ;;  %v2215_v33 = vpop.f32.mrb[39].mxu1 }
 0x2d7   : > { %2761 = vst [vmem:[#allocation21_spill] sm:$0xff] %v2215_v33  ;;  %694 = vmax.xlane.f32.xlu0 %v693_v32  ;;  %v696_v34 = vmax.f32 %v2211_v31, %v2215_v33 }
 0x2d9   : > { %697 = vmax.xlane.f32.xlu1 %v696_v34 }
 0x2db   : > { %v2219_v38 = vpop.f32.mrb[40].mxu1 }
 0x2dc   : > { %2762 = vst [vmem:[#allocation22_spill] sm:$0xff] %v2219_v38  ;;  %v2221_v40 = vpop.f32.mrb[41].mxu1 }
 0x2dd   : > { %2763 = vst [vmem:[#allocation23_spill] sm:$0xff] %v2221_v40  ;;  %v2223_v44 = vpop.f32.mrb[42].mxu1  ;;  %v699_v46 = vmax.f32 %v2219_v38, %v2221_v40 }
 0x2de   : > { %2764 = vst [vmem:[#allocation24_spill] sm:$0xff] %v2223_v44  ;;  %v2227_v50 = vpop.f32.mrb[43].mxu1 }
 0x2df   : > { %2765 = vst [vmem:[#allocation25_spill] sm:$0xff] %v2227_v50  ;;  %700 = vmax.xlane.f32.xlu0 %v699_v46  ;;  %v702_v52 = vmax.f32 %v2223_v44, %v2227_v50 }
 0x2e1   : > { %703 = vmax.xlane.f32.xlu1 %v702_v52 }
 0x2e3   : > { %v2231_v56 = vpop.f32.mrb[44].mxu1 }
 0x2e4   : > { %2766 = vst [vmem:[#allocation26_spill] sm:$0xff] %v2231_v56  ;;  %v2233_v58 = vpop.f32.mrb[45].mxu1 }
 0x2e5   : > { %2767 = vst [vmem:[#allocation27_spill] sm:$0xff] %v2233_v58  ;;  %v2235_v61 = vpop.f32.mrb[46].mxu1  ;;  %v705_v0 = vmax.f32 %v2231_v56, %v2233_v58 }
 0x2e6   : > { %2768 = vst [vmem:[#allocation28_spill] sm:$0xff] %v2235_v61  ;;  %v2239_v4 = vpop.f32.mrb[47].mxu1 }
 0x2e7   : > { %2769 = vst [vmem:[#allocation29_spill] sm:$0xff] %v2239_v4  ;;  %706 = vmax.xlane.f32.xlu0 %v705_v0  ;;  %v708_v6 = vmax.f32 %v2235_v61, %v2239_v4 }
 0x2e9   : > { %709 = vmax.xlane.f32.xlu1 %v708_v6 }
 0x2eb   : > { %v2243_v13 = vpop.f32.mrb[48].mxu1 }
 0x2ec   : > { %v2245_v16 = vpop.f32.mrb[49].mxu1 }
 0x2ed   : > { %v2247_v20 = vpop.f32.mrb[50].mxu1 }
 0x2ee   : > { %v2251_v26 = vpop.f32.mrb[51].mxu1 }
 0x2f3   : > { %v2255_v32 = vpop.f32.mrb[52].mxu1 }
 0x2f4   : > { %v2257_v34 = vpop.f32.mrb[53].mxu1 }
 0x2f5   : > { %v2259_v46 = vpop.f32.mrb[54].mxu1 }
 0x2f6   : > { %v2263_v0 = vpop.f32.mrb[55].mxu1 }
 0x2fb   : > { %v2267_v22 = vpop.f32.mrb[56].mxu1 }
 0x2fc   : > { %v2269_v11 = vpop.f32.mrb[57].mxu1 }
 0x2fd   : > { %v2271_v9 = vpop.f32.mrb[58].mxu1 }
 0x2fe   : > { %v2275_v14 = vpop.f32.mrb[59].mxu1 }
 0x303   : > { %v2279_v52 = vpop.f32.mrb[60].mxu1 }
 0x304   : > { %v2281_v4 = vpop.f32.mrb[61].mxu1 }
 0x305   : > { %v2283_v61 = vpop.f32.mrb[62].mxu1 }
 0x306   : > { %v2287_v58 = vpop.f32.mrb[63].mxu1 }
 0x31c   : > { %v641_v50 = vpop.xlane.xlu1 %640 }
 0x31d   : > { %v735_v12 = vsub.f32 %v2099_v35, %v641_v50  ;;  %v736_v44 = vsub.f32 %v2101_v36, %v641_v50 }
 0x31e   : > { %v644_v40 = vpop.xlane.xlu0 %643 }
 0x31f   : > { %v799_v38 = vmul.f32 1.442695, %v735_v12  ;;  %v801_v33 = vmul.f32 1.442695, %v736_v44  ;;  %v737_v31 = vsub.f32 %v2103_v37, %v644_v40  ;;  %v738_v6 = vsub.f32 %v2107_v39, %v644_v40 }
 0x321   : > { %1470 = vpow2.f32 %v799_v38  ;;  %v803_v30 = vmul.f32 1.442695, %v737_v31  ;;  %v805_v29 = vmul.f32 1.442695, %v738_v6 }
 0x322   : > { %1472 = vpow2.f32 %v801_v33 }
 0x323   : > { %1474 = vpow2.f32 %v803_v30 }
 0x324   : > { %1476 = vpow2.f32 %v805_v29  ;;  %v647_v56 = vpop.xlane.xlu1 %646 }
 0x325   : > { %v739_v28 = vsub.f32 %v2111_v41, %v647_v56  ;;  %v740_v35 = vsub.f32 %v2113_v42, %v647_v56 }
 0x327   : > { %v807_v27 = vmul.f32 1.442695, %v739_v28  ;;  %v809_v36 = vmul.f32 1.442695, %v740_v35 }
 0x328   : > { %v650_v50 = vpop.xlane.xlu1 %649 }
 0x329   : > { %1478 = vpow2.f32 %v807_v27  ;;  %v741_v12 = vsub.f32 %v2115_v43, %v650_v50  ;;  %v742_v37 = vsub.f32 %v2119_v45, %v650_v50 }
 0x32a   : > { %1480 = vpow2.f32 %v809_v36  ;;  %v2770_v36 = vmax.f32 %v2243_v13, %v2245_v16 }
 0x32b   : > { %v2300_v39 = vpop.eup %1470  ;;  %v811_v31 = vmul.f32 1.442695, %v741_v12  ;;  %v813_v33 = vmul.f32 1.442695, %v742_v37 }
 0x32c   : > { %v2302_v30 = vpop.eup %1472  ;;  %v653_v29 = vpop.xlane.xlu1 %652 }
 0x32d   : > { %v2304_v38 = vpop.eup %1474  ;;  %1482 = vpow2.f32 %v811_v31  ;;  %v743_v41 = vsub.f32 %v2123_v47, %v653_v29  ;;  %v744_v42 = vsub.f32 %v2125_v48, %v653_v29  ;;  %v927_v43 = vadd.f32 %v2302_v30, %v2300_v39 }
 0x32e   : > { %v2310_v27 = vpop.eup %1476  ;;  %1484 = vpow2.f32 %v813_v33 }
 0x32f   : > { %v815_v45 = vmul.f32 1.442695, %v743_v41  ;;  %v817_v40 = vmul.f32 1.442695, %v744_v42  ;;  %928 = vadd.xlane.f32.xlu0 %v927_v43  ;;  %v930_v44 = vadd.f32 %v2310_v27, %v2304_v38 }
 0x330   : > { %v656_v56 = vpop.xlane.xlu1 %655 }
 0x331   : > { %1486 = vpow2.f32 %v815_v45  ;;  %v745_v6 = vsub.f32 %v2127_v49, %v656_v56  ;;  %v746_v47 = vsub.f32 %v2131_v51, %v656_v56  ;;  %931 = vadd.xlane.f32.xlu1 %v930_v44  ;;  %v2771_v51 = vmax.f32 %v2247_v20, %v2251_v26 }
 0x332   : > { %1488 = vpow2.f32 %v817_v40 }
 0x333   : > { %v2316_v48 = vpop.eup %1478  ;;  %v819_v28 = vmul.f32 1.442695, %v745_v6  ;;  %v821_v35 = vmul.f32 1.442695, %v746_v47  ;;  %712 = vmax.xlane.f32.xlu0 %v2770_v36  ;;  %v2772_v6 = vmax.f32 %v2255_v32, %v2257_v34 }
 0x334   : > { %v2321_v50 = vpop.eup %1480  ;;  %v659_v12 = vpop.xlane.xlu1 %658 }
 0x335   : > { %1490 = vpow2.f32 %v819_v28  ;;  %v747_v37 = vsub.f32 %v2135_v53, %v659_v12  ;;  %v748_v49 = vsub.f32 %v2137_v54, %v659_v12  ;;  %715 = vmax.xlane.f32.xlu1 %v2771_v51  ;;  %v933_v31 = vadd.f32 %v2321_v50, %v2316_v48 }
 0x336   : > { %1492 = vpow2.f32 %v821_v35 }
 0x337   : > { %v2330_v33 = vpop.eup %1482  ;;  %v823_v29 = vmul.f32 1.442695, %v747_v37  ;;  %v825_v41 = vmul.f32 1.442695, %v748_v49  ;;  %934 = vadd.xlane.f32.xlu0 %v933_v31  ;;  %v2773_v49 = vmax.f32 %v2259_v46, %v2263_v0 }
 0x338   : > { %v2332_v42 = vpop.eup %1484  ;;  %v662_v43 = vpop.xlane.xlu1 %661 }
 0x339   : > { %1494 = vpow2.f32 %v823_v29  ;;  %v749_v53 = vsub.f32 %v2139_v55, %v662_v43  ;;  %v750_v54 = vsub.f32 %v2143_v57, %v662_v43  ;;  %v936_v45 = vadd.f32 %v2332_v42, %v2330_v33 }
 0x33a   : > { %1496 = vpow2.f32 %v825_v41 }
 0x33b   : > { %v2338_v40 = vpop.eup %1486  ;;  %v827_v44 = vmul.f32 1.442695, %v749_v53  ;;  %v829_v56 = vmul.f32 1.442695, %v750_v54  ;;  %937 = vadd.xlane.f32.xlu1 %v936_v45  ;;  %718 = vmax.xlane.f32.xlu0 %v2772_v6  ;;  %v2774_v54 = vmax.f32 %v2267_v22, %v2269_v11 }
 0x33c   : > { %v2343_v47 = vpop.eup %1488  ;;  %v665_v28 = vpop.xlane.xlu1 %664 }
 0x33d   : > { %1498 = vpow2.f32 %v827_v44  ;;  %v751_v55 = vsub.f32 %v2147_v59, %v665_v28  ;;  %v752_v57 = vsub.f32 %v2149_v60, %v665_v28  ;;  %v939_v35 = vadd.f32 %v2343_v47, %v2338_v40 }
 0x33e   : > { %1500 = vpow2.f32 %v829_v56 }
 0x33f   : > { %v2349_v36 = vpop.eup %1490  ;;  %v831_v12 = vmul.f32 1.442695, %v751_v55  ;;  %v833_v37 = vmul.f32 1.442695, %v752_v57  ;;  %940 = vadd.xlane.f32.xlu0 %v939_v35  ;;  %721 = vmax.xlane.f32.xlu1 %v2773_v49 }
 0x340   : > { %v2354_v51 = vpop.eup %1492  ;;  %v668_v31 = vpop.xlane.xlu1 %667 }
 0x341   : > { %1502 = vpow2.f32 %v831_v12  ;;  %v753_v59 = vsub.f32 %v2153_v62, %v668_v31  ;;  %v754_v60 = vsub.f32 %v2155_v63, %v668_v31  ;;  %v942_v29 = vadd.f32 %v2354_v51, %v2349_v36 }
 0x342   : > { %1504 = vpow2.f32 %v833_v37  ;;  %v2775_v37 = vmax.f32 %v2271_v9, %v2275_v14 }
 0x343   : > { %v2360_v41 = vpop.eup %1494  ;;  %v835_v43 = vmul.f32 1.442695, %v753_v59  ;;  %v837_v53 = vmul.f32 1.442695, %v754_v60  ;;  %943 = vadd.xlane.f32.xlu1 %v942_v29  ;;  %724 = vmax.xlane.f32.xlu0 %v2774_v54 }
 0x344   : > { %v2365_v45 = vpop.eup %1496  ;;  %v671_v44 = vpop.xlane.xlu0 %670 }
 0x345   : > { %1506 = vpow2.f32 %v835_v43  ;;  %v755_v62 = vsub.f32 %v2159_v1, %v671_v44  ;;  %v756_v63 = vsub.f32 %v2161_v2, %v671_v44  ;;  %v945_v56 = vadd.f32 %v2365_v45, %v2360_v41 }
 0x346   : > { %1508 = vpow2.f32 %v837_v53  ;;  %v674_v6 = vpop.xlane.xlu1 %673 }
 0x347   : > { %v2371_v28 = vpop.eup %1498  ;;  %v839_v55 = vmul.f32 1.442695, %v755_v62  ;;  %v841_v57 = vmul.f32 1.442695, %v756_v63  ;;  %v757_v35 = vsub.f32 %v2163_v3, %v674_v6  ;;  %v758_v12 = vsub.f32 %v2167_v5, %v674_v6  ;;  %946 = vadd.xlane.f32.xlu0 %v945_v56  ;;  %727 = vmax.xlane.f32.xlu1 %v2775_v37 }
 0x348   : > { %v2378_v1 = vpop.eup %1500  ;;  %v2776_v3 = vmax.f32 %v2279_v52, %v2281_v4 }
 0x349   : > { %1510 = vpow2.f32 %v839_v55  ;;  %v843_v2 = vmul.f32 1.442695, %v757_v35  ;;  %v845_v49 = vmul.f32 1.442695, %v758_v12  ;;  %v948_v31 = vadd.f32 %v2378_v1, %v2371_v28 }
 0x34a   : > { %1512 = vpow2.f32 %v841_v57  ;;  %v2777_v55 = vmax.f32 %v2283_v61, %v2287_v58 }
 0x34b   : > { %v2382_v59 = vpop.eup %1502  ;;  %1514 = vpow2.f32 %v843_v2  ;;  %949 = vadd.xlane.f32.xlu1 %v948_v31  ;;  %730 = vmax.xlane.f32.xlu0 %v2776_v3 }
 0x34c   : > { %v2387_v5 = vpop.eup %1504  ;;  %1516 = vpow2.f32 %v845_v49  ;;  %v677_v60 = vpop.xlane.xlu0 %676 }
 0x34d   : > { %v759_v29 = vsub.f32 %v2171_v7, %v677_v60  ;;  %v760_v43 = vsub.f32 %v2173_v8, %v677_v60  ;;  %v951_v53 = vadd.f32 %v2387_v5, %v2382_v59 }
 0x34e   : > { %v680_v54 = vpop.xlane.xlu1 %679 }
 0x34f   : > { %v2393_v44 = vpop.eup %1506  ;;  %v847_v62 = vmul.f32 1.442695, %v759_v29  ;;  %v849_v63 = vmul.f32 1.442695, %v760_v43  ;;  %v761_v56 = vsub.f32 %v2175_v10, %v680_v54  ;;  %v762_v6 = vsub.f32 %v2179_v15, %v680_v54  ;;  %952 = vadd.xlane.f32.xlu0 %v951_v53  ;;  %733 = vmax.xlane.f32.xlu1 %v2777_v55 }
 0x350   : > { %v2400_v7 = vpop.eup %1508 }
 0x351   : > { %1518 = vpow2.f32 %v847_v62  ;;  %v851_v8 = vmul.f32 1.442695, %v761_v56  ;;  %v853_v57 = vmul.f32 1.442695, %v762_v6  ;;  %v954_v35 = vadd.f32 %v2400_v7, %v2393_v44 }
 0x352   : > { %1520 = vpow2.f32 %v849_v63 }
 0x353   : > { %v2404_v12 = vpop.eup %1510  ;;  %1522 = vpow2.f32 %v851_v8  ;;  %955 = vadd.xlane.f32.xlu1 %v954_v35 }
 0x354   : > { %v2406_v10 = vpop.eup %1512  ;;  %1524 = vpow2.f32 %v853_v57  ;;  %v683_v15 = vpop.xlane.xlu0 %682 }
 0x355   : > { %v2408_v37 = vpop.eup %1514  ;;  %v763_v2 = vsub.f32 %v2183_v17, %v683_v15  ;;  %v764_v49 = vsub.f32 %v2185_v18, %v683_v15  ;;  %v957_v31 = vadd.f32 %v2406_v10, %v2404_v12 }
 0x356   : > { %v2414_v3 = vpop.eup %1516  ;;  %v686_v60 = vpop.xlane.xlu1 %685 }
 0x357   : > { %v855_v29 = vmul.f32 1.442695, %v763_v2  ;;  %v857_v43 = vmul.f32 1.442695, %v764_v49  ;;  %v765_v53 = vsub.f32 %v2187_v19, %v686_v60  ;;  %v766_v54 = vsub.f32 %v2191_v21, %v686_v60  ;;  %958 = vadd.xlane.f32.xlu0 %v957_v31  ;;  %v2778_v31 = vld [vmem:[#allocation17_spill] sm:$0xff] }
 0x358   : > { %v960_v62 = vadd.f32 %v2414_v3, %v2408_v37 }
 0x359   : > { %1526 = vpow2.f32 %v855_v29  ;;  %v859_v17 = vmul.f32 1.442695, %v765_v53  ;;  %v861_v63 = vmul.f32 1.442695, %v766_v54 }
 0x35a   : > { %1528 = vpow2.f32 %v857_v43  ;;  %961 = vadd.xlane.f32.xlu1 %v960_v62 }
 0x35b   : > { %v2420_v18 = vpop.eup %1518  ;;  %1530 = vpow2.f32 %v859_v17 }
 0x35c   : > { %v2422_v56 = vpop.eup %1520  ;;  %1532 = vpow2.f32 %v861_v63  ;;  %v689_v6 = vpop.xlane.xlu0 %688  ;;  %v2782_v63 = vld [vmem:[#allocation19_spill] sm:$0xff] }
 0x35d   : > { %v2424_v55 = vpop.eup %1522  ;;  %v767_v19 = vsub.f32 %v2195_v23, %v689_v6  ;;  %v768_v21 = vsub.f32 %v2197_v24, %v689_v6  ;;  %v963_v8 = vadd.f32 %v2422_v56, %v2420_v18 }
 0x35e   : > { %v2430_v57 = vpop.eup %1524  ;;  %v692_v35 = vpop.xlane.xlu1 %691 }
 0x35f   : > { %v863_v15 = vmul.f32 1.442695, %v767_v19  ;;  %v865_v2 = vmul.f32 1.442695, %v768_v21  ;;  %v769_v49 = vsub.f32 %v2199_v25, %v692_v35  ;;  %v770_v60 = vsub.f32 %v2778_v31, %v692_v35  ;;  %964 = vadd.xlane.f32.xlu0 %v963_v8  ;;  %v2781_v25 = vld [vmem:[#allocation18_spill] sm:$0xff]  ;;  %v2785_v31 = vld [vmem:[#allocation21_spill] sm:$0xff] }
 0x360   : > { %v966_v29 = vadd.f32 %v2430_v57, %v2424_v55 }
 0x361   : > { %1534 = vpow2.f32 %v863_v15  ;;  %v867_v23 = vmul.f32 1.442695, %v769_v49  ;;  %v869_v43 = vmul.f32 1.442695, %v770_v60 }
 0x362   : > { %1536 = vpow2.f32 %v865_v2  ;;  %967 = vadd.xlane.f32.xlu1 %v966_v29  ;;  %v2784_v2 = vld [vmem:[#allocation20_spill] sm:$0xff] }
 0x363   : > { %v2436_v24 = vpop.eup %1526  ;;  %1538 = vpow2.f32 %v867_v23 }
 0x364   : > { %2779 = vst [vmem:[#allocation17_spill] sm:$0xff] %v2436_v24  ;;  %v2438_v53 = vpop.eup %1528  ;;  %1540 = vpow2.f32 %v869_v43  ;;  %v695_v54 = vpop.xlane.xlu0 %694 }
 0x365   : > { %v2440_v62 = vpop.eup %1530  ;;  %v771_v17 = vsub.f32 %v2781_v25, %v695_v54  ;;  %v772_v6 = vsub.f32 %v2782_v63, %v695_v54  ;;  %v969_v19 = vadd.f32 %v2438_v53, %v2436_v24  ;;  %v2793_v24 = vld [vmem:[#allocation25_spill] sm:$0xff] }
 0x366   : > { %2780 = vst [vmem:[#allocation30_spill] sm:$0xff] %v2440_v62  ;;  %v2446_v21 = vpop.eup %1532  ;;  %v698_v8 = vpop.xlane.xlu1 %697 }
 0x367   : > { %2783 = vst [vmem:[#allocation18_spill] sm:$0xff] %v2446_v21  ;;  %v871_v35 = vmul.f32 1.442695, %v771_v17  ;;  %v873_v15 = vmul.f32 1.442695, %v772_v6  ;;  %v773_v49 = vsub.f32 %v2784_v2, %v698_v8  ;;  %v774_v60 = vsub.f32 %v2785_v31, %v698_v8  ;;  %970 = vadd.xlane.f32.xlu0 %v969_v19  ;;  %v2789_v6 = vld [vmem:[#allocation22_spill] sm:$0xff] }
 0x368   : > { %v972_v29 = vadd.f32 %v2446_v21, %v2440_v62  ;;  %v2790_v19 = vld [vmem:[#allocation23_spill] sm:$0xff] }
 0x369   : > { %1542 = vpow2.f32 %v871_v35  ;;  %v875_v23 = vmul.f32 1.442695, %v773_v49  ;;  %v877_v43 = vmul.f32 1.442695, %v774_v60 }
 0x36a   : > { %1544 = vpow2.f32 %v873_v15  ;;  %973 = vadd.xlane.f32.xlu1 %v972_v29  ;;  %v2792_v29 = vld [vmem:[#allocation24_spill] sm:$0xff] }
 0x36b   : > { %v2452_v54 = vpop.eup %1534  ;;  %1546 = vpow2.f32 %v875_v23 }
 0x36c   : > { %2786 = vst [vmem:[#allocation19_spill] sm:$0xff] %v2452_v54  ;;  %v2454_v25 = vpop.eup %1536  ;;  %1548 = vpow2.f32 %v877_v43  ;;  %v701_v17 = vpop.xlane.xlu0 %700 }
 0x36d   : > { %2787 = vst [vmem:[#allocation20_spill] sm:$0xff] %v2454_v25  ;;  %v2456_v63 = vpop.eup %1538  ;;  %v775_v8 = vsub.f32 %v2789_v6, %v701_v17  ;;  %v776_v2 = vsub.f32 %v2790_v19, %v701_v17  ;;  %v975_v35 = vadd.f32 %v2454_v25, %v2452_v54  ;;  %v2796_v54 = vld [vmem:[#allocation28_spill] sm:$0xff] }
 0x36e   : > { %2788 = vst [vmem:[#allocation21_spill] sm:$0xff] %v2456_v63  ;;  %v2462_v49 = vpop.eup %1540  ;;  %v704_v15 = vpop.xlane.xlu1 %703 }
 0x36f   : > { %2791 = vst [vmem:[#allocation22_spill] sm:$0xff] %v2462_v49  ;;  %v879_v31 = vmul.f32 1.442695, %v775_v8  ;;  %v881_v60 = vmul.f32 1.442695, %v776_v2  ;;  %v777_v23 = vsub.f32 %v2792_v29, %v704_v15  ;;  %v778_v62 = vsub.f32 %v2793_v24, %v704_v15  ;;  %976 = vadd.xlane.f32.xlu0 %v975_v35  ;;  %v2794_v29 = vld [vmem:[#allocation26_spill] sm:$0xff] }
 0x370   : > { %v978_v43 = vadd.f32 %v2462_v49, %v2456_v63  ;;  %v2795_v35 = vld [vmem:[#allocation27_spill] sm:$0xff]  ;;  %v2797_v63 = vld [vmem:[#allocation29_spill] sm:$0xff] }
 0x371   : > { %1550 = vpow2.f32 %v879_v31  ;;  %v883_v6 = vmul.f32 1.442695, %v777_v23  ;;  %v885_v21 = vmul.f32 1.442695, %v778_v62 }
 0x372   : > { %1552 = vpow2.f32 %v881_v60  ;;  %979 = vadd.xlane.f32.xlu1 %v978_v43 }
 0x373   : > { %v2468_v17 = vpop.eup %1542  ;;  %1554 = vpow2.f32 %v883_v6 }
 0x374   : > { %v2470_v19 = vpop.eup %1544  ;;  %1556 = vpow2.f32 %v885_v21  ;;  %v707_v8 = vpop.xlane.xlu0 %706 }
 0x375   : > { %v2472_v2 = vpop.eup %1546  ;;  %v779_v24 = vsub.f32 %v2794_v29, %v707_v8  ;;  %v780_v15 = vsub.f32 %v2795_v35, %v707_v8  ;;  %v981_v31 = vadd.f32 %v2470_v19, %v2468_v17 }
 0x376   : > { %v2478_v23 = vpop.eup %1548  ;;  %v710_v62 = vpop.xlane.xlu1 %709 }
 0x377   : > { %v887_v60 = vmul.f32 1.442695, %v779_v24  ;;  %v889_v43 = vmul.f32 1.442695, %v780_v15  ;;  %v781_v6 = vsub.f32 %v2796_v54, %v710_v62  ;;  %v782_v49 = vsub.f32 %v2797_v63, %v710_v62  ;;  %982 = vadd.xlane.f32.xlu0 %v981_v31 }
 0x378   : > { %v984_v21 = vadd.f32 %v2478_v23, %v2472_v2 }
 0x379   : > { %1558 = vpow2.f32 %v887_v60  ;;  %v891_v29 = vmul.f32 1.442695, %v781_v6  ;;  %v893_v25 = vmul.f32 1.442695, %v782_v49 }
 0x37a   : > { %1560 = vpow2.f32 %v889_v43  ;;  %985 = vadd.xlane.f32.xlu1 %v984_v21 }
 0x37b   : > { %v2484_v8 = vpop.eup %1550  ;;  %1562 = vpow2.f32 %v891_v29 }
 0x37c   : > { %2798 = vst [vmem:[#allocation23_spill] sm:$0xff] %v2484_v8  ;;  %v2486_v35 = vpop.eup %1552  ;;  %1564 = vpow2.f32 %v893_v25 }
 0x37d   : > { %v2488_v24 = vpop.eup %1554  ;;  %v987_v54 = vadd.f32 %v2486_v35, %v2484_v8 }
 0x37e   : > { %2799 = vst [vmem:[#allocation24_spill] sm:$0xff] %v2488_v24  ;;  %v2492_v63 = vpop.eup %1556 }
 0x37f   : > { %2800 = vst [vmem:[#allocation25_spill] sm:$0xff] %v2492_v63  ;;  %988 = vadd.xlane.f32.xlu0 %v987_v54  ;;  %v990_v15 = vadd.f32 %v2492_v63, %v2488_v24 }
 0x381   : > { %991 = vadd.xlane.f32.xlu1 %v990_v15 }
 0x383   : > { %v2496_v49 = vpop.eup %1558 }
 0x384   : > { %2801 = vst [vmem:[#allocation26_spill] sm:$0xff] %v2496_v49  ;;  %v2498_v31 = vpop.eup %1560 }
 0x385   : > { %2802 = vst [vmem:[#allocation27_spill] sm:$0xff] %v2498_v31  ;;  %v2500_v62 = vpop.eup %1562  ;;  %v993_v25 = vadd.f32 %v2498_v31, %v2496_v49 }
 0x386   : > { %2803 = vst [vmem:[#allocation28_spill] sm:$0xff] %v2500_v62  ;;  %v2504_v60 = vpop.eup %1564 }
 0x387   : > { %2804 = vst [vmem:[#allocation29_spill] sm:$0xff] %v2504_v60  ;;  %994 = vadd.xlane.f32.xlu0 %v993_v25  ;;  %v996_v43 = vadd.f32 %v2504_v60, %v2500_v62 }
 0x389   : > { %997 = vadd.xlane.f32.xlu1 %v996_v43 }
 0x3bc   : > { %v929_v6 = vpop.xlane.xlu0 %928 }
 0x3bd   : > { %1566 = vrcp.f32 %v929_v6 }
 0x3be   : > { %v932_v21 = vpop.xlane.xlu1 %931 }
 0x3bf   : > { %1568 = vrcp.f32 %v932_v21 }
 0x3c0   : > { %v713_v29 = vpop.xlane.xlu0 %712 }
 0x3c1   : > { %v783_v54 = vsub.f32 %v2243_v13, %v713_v29  ;;  %v784_v15 = vsub.f32 %v2245_v16, %v713_v29 }
 0x3c2   : > { %v716_v8 = vpop.xlane.xlu1 %715 }
 0x3c3   : > { %v895_v24 = vmul.f32 1.442695, %v783_v54  ;;  %v897_v63 = vmul.f32 1.442695, %v784_v15  ;;  %v785_v49 = vsub.f32 %v2247_v20, %v716_v8  ;;  %v786_v25 = vsub.f32 %v2251_v26, %v716_v8 }
 0x3c4   : > { %v935_v31 = vpop.xlane.xlu0 %934 }
 0x3c5   : > { %1570 = vpow2.f32 %v895_v24  ;;  %v899_v62 = vmul.f32 1.442695, %v785_v49  ;;  %v901_v43 = vmul.f32 1.442695, %v786_v25 }
 0x3c6   : > { %1572 = vpow2.f32 %v897_v63 }
 0x3c7   : > { %v1567_v6 = vpop.eup %1566  ;;  %1574 = vpow2.f32 %v899_v62 }
 0x3c8   : > { %1576 = vpow2.f32 %v901_v43  ;;  %v938_v21 = vpop.xlane.xlu1 %937  ;;  %v719_v60 = vpop.xlane.xlu0 %718  ;;  %v1056_v20 = vmul.f32 %v1567_v6, %v2302_v30  ;;  %v1055_v8 = vmul.f32 %v1567_v6, %v2300_v39 }
 0x3c9   : > { %v1569_v13 = vpop.eup %1568  ;;  %1578 = vrcp.f32 %v935_v31  ;;  %v787_v16 = vsub.f32 %v2255_v32, %v719_v60  ;;  %v788_v29 = vsub.f32 %v2257_v34, %v719_v60 }
 0x3ca   : > { %1580 = vrcp.f32 %v938_v21  ;;  %v1058_v26 = vmul.f32 %v1569_v13, %v2310_v27  ;;  %v1057_v24 = vmul.f32 %v1569_v13, %v2304_v38 }
 0x3cb   : > { %v903_v63 = vmul.f32 1.442695, %v787_v16  ;;  %v905_v49 = vmul.f32 1.442695, %v788_v29 }
 0x3cc   : > { %v941_v62 = vpop.xlane.xlu0 %940  ;;  %v722_v54 = vpop.xlane.xlu1 %721  ;;  %v1120_v15 = vpack.c.bf16 %v1058_v26, %v1056_v20  ;;  %v1119_v25 = vpack.c.bf16 %v1057_v24, %v1055_v8 }
 0x3cd   : > { %1582 = vpow2.f32 %v903_v63  ;;  %v789_v32 = vsub.f32 %v2259_v46, %v722_v54  ;;  %v790_v34 = vsub.f32 %v2263_v0, %v722_v54 }
 0x3ce   : > { %1584 = vpow2.f32 %v905_v49  ;;  %1164 = vmatprep.subr.bf16.mxu0 %v1120_v15 }
 0x3cf   : > { %v2520_v30 = vpop.eup %1570  ;;  %1586 = vrcp.f32 %v941_v62  ;;  %v907_v27 = vmul.f32 1.442695, %v789_v32  ;;  %v909_v39 = vmul.f32 1.442695, %v790_v34  ;;  %1165 = vmatpush1.bf16.xpose.msra.mxu0 %v1119_v25 }
 0x3d0   : > { %v2522_v38 = vpop.eup %1572  ;;  %v944_v31 = vpop.xlane.xlu1 %943 }
 0x3d1   : > { %v725_v60 = vpop.xlane.xlu0 %724  ;;  %v2524_v43 = vpop.eup %1574  ;;  %1588 = vpow2.f32 %v907_v27  ;;  %v999_v0 = vadd.f32 %v2522_v38, %v2520_v30 }
 0x3d2   : > { %v791_v6 = vsub.f32 %v2267_v22, %v725_v60  ;;  %v792_v46 = vsub.f32 %v2269_v11, %v725_v60  ;;  %v2530_v21 = vpop.eup %1576  ;;  %1590 = vpow2.f32 %v909_v39 }
 0x3d3   : > { %v1579_v13 = vpop.eup %1578  ;;  %1592 = vrcp.f32 %v944_v31  ;;  %1000 = vadd.xlane.f32.xlu0 %v999_v0  ;;  %v1002_v20 = vadd.f32 %v2530_v21, %v2524_v43 }
 0x3d4   : > { %v911_v16 = vmul.f32 1.442695, %v791_v6  ;;  %v913_v29 = vmul.f32 1.442695, %v792_v46  ;;  %v1581_v26 = vpop.eup %1580  ;;  %v728_v24 = vpop.xlane.xlu1 %727  ;;  %v1060_v22 = vmul.f32 %v1579_v13, %v2321_v50  ;;  %v1059_v62 = vmul.f32 %v1579_v13, %v2316_v48 }
 0x3d5   : > { %v947_v8 = vpop.xlane.xlu0 %946  ;;  %v793_v11 = vsub.f32 %v2271_v9, %v728_v24  ;;  %v794_v63 = vsub.f32 %v2275_v14, %v728_v24  ;;  %1003 = vadd.xlane.f32.xlu1 %v1002_v20  ;;  %v1062_v49 = vmul.f32 %v1581_v26, %v2332_v42  ;;  %v1061_v54 = vmul.f32 %v1581_v26, %v2330_v33 }
 0x3d6   : > { %1594 = vpow2.f32 %v911_v16 }
 0x3d7   : > { %1596 = vpow2.f32 %v913_v29  ;;  %v2540_v15 = vpop.eup %1582  ;;  %v915_v25 = vmul.f32 1.442695, %v793_v11  ;;  %v917_v32 = vmul.f32 1.442695, %v794_v63  ;;  %v1122_v34 = vpack.c.bf16 %v1062_v49, %v1060_v22 }
 0x3d8   : > { %v2542_v27 = vpop.eup %1584  ;;  %1598 = vrcp.f32 %v947_v8  ;;  %v950_v50 = vpop.xlane.xlu1 %949  ;;  %v1121_v39 = vpack.c.bf16 %v1061_v54, %v1059_v62 }
 0x3d9   : > { %v731_v9 = vpop.xlane.xlu0 %730  ;;  %v1587_v14 = vpop.eup %1586  ;;  %1600 = vpow2.f32 %v915_v25  ;;  %1166 = vmatprep.subr.bf16.mxu0 %v1122_v34  ;;  %v1005_v33 = vadd.f32 %v2542_v27, %v2540_v15 }
 0x3da   : > { %v795_v42 = vsub.f32 %v2279_v52, %v731_v9  ;;  %v796_v48 = vsub.f32 %v2281_v4, %v731_v9  ;;  %1602 = vpow2.f32 %v917_v32  ;;  %1167 = vmatpush1.bf16.xpose.msra.mxu0 %v1121_v39  ;;  %v1064_v13 = vmul.f32 %v1587_v14, %v2343_v47 }
 0x3db   : > { %v2548_v31 = vpop.eup %1588  ;;  %1604 = vrcp.f32 %v950_v50  ;;  %1006 = vadd.xlane.f32.xlu0 %v1005_v33  ;;  %v1063_v8 = vmul.f32 %v1587_v14, %v2338_v40 }
 0x3dc   : > { %v919_v60 = vmul.f32 1.442695, %v795_v42  ;;  %v921_v6 = vmul.f32 1.442695, %v796_v48  ;;  %v2550_v46 = vpop.eup %1590  ;;  %v734_v0 = vpop.xlane.xlu1 %733 }
 0x3dd   : > { %v1593_v16 = vpop.eup %1592  ;;  %v953_v52 = vpop.xlane.xlu0 %952  ;;  %v797_v4 = vsub.f32 %v2283_v61, %v734_v0  ;;  %v798_v29 = vsub.f32 %v2287_v58, %v734_v0  ;;  %v1008_v20 = vadd.f32 %v2550_v46, %v2548_v31 }
 0x3de   : > { %1606 = vpow2.f32 %v919_v60  ;;  %v1066_v26 = vmul.f32 %v1593_v16, %v2354_v51  ;;  %v1065_v24 = vmul.f32 %v1593_v16, %v2349_v36 }
 0x3df   : > { %1608 = vpow2.f32 %v921_v6  ;;  %v923_v47 = vmul.f32 1.442695, %v797_v4  ;;  %v925_v11 = vmul.f32 1.442695, %v798_v29  ;;  %1009 = vadd.xlane.f32.xlu1 %v1008_v20 }
 0x3e0   : > { %v2560_v22 = vpop.eup %1594  ;;  %1610 = vrcp.f32 %v953_v52  ;;  %v1124_v61 = vpack.c.bf16 %v1066_v26, %v1064_v13  ;;  %v956_v58 = vpop.xlane.xlu1 %955  ;;  %v1123_v49 = vpack.c.bf16 %v1065_v24, %v1063_v8 }
 0x3e1   : > { %v2562_v63 = vpop.eup %1596  ;;  %1612 = vpow2.f32 %v923_v47 }
 0x3e2   : > { %v1011_v62 = vadd.f32 %v2562_v63, %v2560_v22  ;;  %v1599_v51 = vpop.eup %1598  ;;  %1614 = vpow2.f32 %v925_v11  ;;  %1168 = vmatprep.subr.bf16.mxu0 %v1124_v61 }
 0x3e3   : > { %v2566_v40 = vpop.eup %1600  ;;  %1616 = vrcp.f32 %v956_v58  ;;  %1169 = vmatpush1.bf16.xpose.msra.mxu0 %v1123_v49  ;;  %v1068_v34 = vmul.f32 %v1599_v51, %v2365_v45  ;;  %v1067_v9 = vmul.f32 %v1599_v51, %v2360_v41 }
 0x3e4   : > { %1012 = vadd.xlane.f32.xlu0 %v1011_v62  ;;  %v2568_v36 = vpop.eup %1602  ;;  %v959_v54 = vpop.xlane.xlu0 %958 }
 0x3e5   : > { %v1605_v25 = vpop.eup %1604  ;;  %v1014_v32 = vadd.f32 %v2568_v36, %v2566_v40  ;;  %1618 = vrcp.f32 %v959_v54 }
 0x3e6   : > { %v1070_v50 = vmul.f32 %v1605_v25, %v2378_v1  ;;  %v1069_v39 = vmul.f32 %v1605_v25, %v2371_v28 }
 0x3e7   : > { %1015 = vadd.xlane.f32.xlu1 %v1014_v32  ;;  %v962_v42 = vpop.xlane.xlu1 %961  ;;  %v256_v32 = vld [vmem:[#allocation8 + $0x10] sm:$0xf] }
 0x3e8   : > { %v2576_v14 = vpop.eup %1606  ;;  %1620 = vrcp.f32 %v962_v42  ;;  %v1126_v33 = vpack.c.bf16 %v1070_v50, %v1068_v34  ;;  %v1125_v60 = vpack.c.bf16 %v1069_v39, %v1067_v9  ;;  %v255_v50 = vld [vmem:[#allocation8 + $0x8] sm:$0xff] }
 0x3e9   : > { %v2578_v48 = vpop.eup %1608 }
 0x3ea   : > { %v1017_v6 = vadd.f32 %v2578_v48, %v2576_v14  ;;  %v1611_v45 = vpop.eup %1610  ;;  %1170 = vmatprep.subr.bf16.mxu0 %v1126_v33 }
 0x3eb   : > { %v2582_v0 = vpop.eup %1612  ;;  %1171 = vmatpush1.bf16.xpose.msra.mxu0 %v1125_v60  ;;  %v1072_v16 = vmul.f32 %v1611_v45, %v2387_v5  ;;  %v1071_v4 = vmul.f32 %v1611_v45, %v2382_v59 }
 0x3ec   : > { %1018 = vadd.xlane.f32.xlu0 %v1017_v6  ;;  %v2584_v41 = vpop.eup %1614  ;;  %v965_v28 = vpop.xlane.xlu0 %964  ;;  %v2805_v6 = vld [vmem:[#allocation18_spill] sm:$0xff] }
 0x3ed   : > { %v1617_v1 = vpop.eup %1616  ;;  %v1020_v13 = vadd.f32 %v2584_v41, %v2582_v0  ;;  %1622 = vrcp.f32 %v965_v28 }
 0x3ee   : > { %v1074_v52 = vmul.f32 %v1617_v1, %v2400_v7  ;;  %v1073_v29 = vmul.f32 %v1617_v1, %v2393_v44 }
 0x3ef   : > { %1021 = vadd.xlane.f32.xlu1 %v1020_v13  ;;  %v968_v20 = vpop.xlane.xlu1 %967  ;;  %v1619_v26 = vpop.eup %1618  ;;  %v2806_v13 = vld [vmem:[#allocation30_spill] sm:$0xff] }
 0x3f0   : > { %1624 = vrcp.f32 %v968_v20  ;;  %v1128_v8 = vpack.c.bf16 %v1074_v52, %v1072_v16  ;;  %v1127_v24 = vpack.c.bf16 %v1073_v29, %v1071_v4  ;;  %v1076_v11 = vmul.f32 %v1619_v26, %v2406_v10  ;;  %v2807_v52 = vld [vmem:[#allocation17_spill] sm:$0xff] }
 0x3f1   : > { %v1075_v44 = vmul.f32 %v1619_v26, %v2404_v12 }
 0x3f2   : > { %v1621_v47 = vpop.eup %1620  ;;  %1172 = vmatprep.subr.bf16.mxu0 %v1128_v8  ;;  %v2808_v8 = vld [vmem:[#allocation20_spill] sm:$0xff] }
 0x3f3   : > { %1173 = vmatpush1.bf16.xpose.msra.mxu0 %v1127_v24  ;;  %v1078_v5 = vmul.f32 %v1621_v47, %v2414_v3  ;;  %v1077_v7 = vmul.f32 %v1621_v47, %v2408_v37  ;;  %v2599_v37 = vpop.f32.mrb[4].mxu0  ;;  %v2809_v47 = vld [vmem:[#allocation22_spill] sm:$0xff] }
 0x3f4   : > { %v971_v61 = vpop.xlane.xlu0 %970  ;;  %v2601_v9 = vpop.f32.mrb[5].mxu0 }
 0x3f5   : > { %v1130_v58 = vpack.c.bf16 %v1078_v5, %v1076_v11  ;;  %1626 = vrcp.f32 %v971_v61  ;;  %v1129_v62 = vpack.c.bf16 %v1077_v7, %v1075_v44  ;;  %v345_v42 = vpop.f32.mrb[6].mxu0  ;;  %v2810_v61 = vld [vmem:[#allocation21_spill] sm:$0xff] }
 0x3f7   : > { %1174 = vmatprep.subr.bf16.mxu0 %v1130_v58  ;;  %v974_v59 = vpop.xlane.xlu1 %973  ;;  %v1623_v49 = vpop.eup %1622 }
 0x3f8   : > { %1628 = vrcp.f32 %v974_v59  ;;  %v1080_v54 = vmul.f32 %v1623_v49, %v2422_v56  ;;  %v1079_v39 = vmul.f32 %v1623_v49, %v2420_v18  ;;  %v346_v56 = vpop.f32.mrb[7].mxu0  ;;  %v2811_v59 = vld [vmem:[#allocation19_spill] sm:$0xff] }
 0x3f9   : > { %v2812_v56 = vld [vmem:[#allocation25_spill] sm:$0xff] }
 0x3fa   : > { %v1625_v51 = vpop.eup %1624 }
 0x3fb   : > { %1175 = vmatpush1.bf16.xpose.msra.mxu0 %v1129_v62  ;;  %v1082_v10 = vmul.f32 %v1625_v51, %v2430_v57  ;;  %v1081_v34 = vmul.f32 %v1625_v51, %v2424_v55 }
 0x3fc   : > { %v977_v25 = vpop.xlane.xlu0 %976 }
 0x3fd   : > { %v1132_v3 = vpack.c.bf16 %v1082_v10, %v1080_v54  ;;  %1630 = vrcp.f32 %v977_v25  ;;  %v1131_v57 = vpack.c.bf16 %v1081_v34, %v1079_v39 }
 0x3ff   : > { %1176 = vmatprep.subr.bf16.mxu0 %v1132_v3  ;;  %v980_v12 = vpop.xlane.xlu1 %979  ;;  %v1627_v33 = vpop.eup %1626 }
 0x400   : > { %1632 = vrcp.f32 %v980_v12  ;;  %269 = vperm.xlu1 %1465, %v256_v32   ;;  %v1084_v55 = vmul.f32 %v1627_v33, %v2438_v53  ;;  %v1083_v4 = vmul.f32 %v1627_v33, %v2807_v52  ;;  %v2817_v52 = vld [vmem:[#allocation28_spill] sm:$0xff] }
 0x402   : > { %264 = vperm.xlu0 %1464, %v255_v50   ;;  %v1629_v60 = vpop.eup %1628 }
 0x403   : > { %1177 = vmatpush1.bf16.xpose.msra.mxu0 %v1131_v57  ;;  %v1086_v45 = vmul.f32 %v1629_v60, %v2805_v6  ;;  %v1085_v16 = vmul.f32 %v1629_v60, %v2806_v13  ;;  %v2814_v6 = vld [vmem:[#allocation23_spill] sm:$0xff] }
 0x404   : > { %v983_v28 = vpop.xlane.xlu0 %982 }
 0x405   : > { %v1134_v1 = vpack.c.bf16 %v1086_v45, %v1084_v55  ;;  %1634 = vrcp.f32 %v983_v28  ;;  %v1133_v20 = vpack.c.bf16 %v1085_v16, %v1083_v4  ;;  %v2816_v16 = vld [vmem:[#allocation29_spill] sm:$0xff]  ;;  %v2818_v4 = vld [vmem:[#allocation26_spill] sm:$0xff] }
 0x407   : > { %1178 = vmatprep.subr.bf16.mxu0 %v1134_v1  ;;  %v986_v18 = vpop.xlane.xlu1 %985  ;;  %v1631_v29 = vpop.eup %1630  ;;  %v2815_v1 = vld [vmem:[#allocation27_spill] sm:$0xff] }
 0x408   : > { %1636 = vrcp.f32 %v986_v18  ;;  %v1088_v24 = vmul.f32 %v1631_v29, %v2808_v8  ;;  %v1087_v44 = vmul.f32 %v1631_v29, %v2811_v59 }
 0x40a   : > { %v1633_v26 = vpop.eup %1632 }
 0x40b   : > { %1179 = vmatpush1.bf16.xpose.msra.mxu0 %v1133_v20  ;;  %v1090_v53 = vmul.f32 %v1633_v26, %v2809_v47  ;;  %v1089_v58 = vmul.f32 %v1633_v26, %v2810_v61 }
 0x40c   : > { %v989_v11 = vpop.xlane.xlu0 %988 }
 0x40d   : > { %1638 = vrcp.f32 %v989_v11  ;;  %v1136_v5 = vpack.c.bf16 %v1090_v53, %v1088_v24  ;;  %v1135_v62 = vpack.c.bf16 %v1089_v58, %v1087_v44 }
 0x40e   : > { %v992_v7 = vpop.xlane.xlu1 %991 }
 0x40f   : > { %1180 = vmatprep.subr.bf16.mxu0 %v1136_v5  ;;  %1640 = vrcp.f32 %v992_v7  ;;  %v1635_v49 = vpop.eup %1634 }
 0x410   : > { %v1092_v54 = vmul.f32 %v1635_v49, %v2470_v19  ;;  %v1091_v12 = vmul.f32 %v1635_v49, %v2468_v17 }
 0x412   : > { %v1637_v51 = vpop.eup %1636 }
 0x413   : > { %1181 = vmatpush1.bf16.xpose.msra.mxu0 %v1135_v62  ;;  %v1094_v10 = vmul.f32 %v1637_v51, %v2478_v23  ;;  %v1093_v32 = vmul.f32 %v1637_v51, %v2472_v2  ;;  %v2813_v23 = vld [vmem:[#allocation24_spill] sm:$0xff] }
 0x414   : > { %v995_v25 = vpop.xlane.xlu0 %994 }
 0x415   : > { %1642 = vrcp.f32 %v995_v25  ;;  %v1138_v3 = vpack.c.bf16 %v1094_v10, %v1092_v54  ;;  %v1137_v42 = vpack.c.bf16 %v1093_v32, %v1091_v12 }
 0x416   : > { %v998_v34 = vpop.xlane.xlu1 %997 }
 0x417   : > { %v1639_v50 = vpop.eup %1638  ;;  %1182 = vmatprep.subr.bf16.mxu0 %v1138_v3  ;;  %1644 = vrcp.f32 %v998_v34 }
 0x418   : > { %v1096_v33 = vmul.f32 %v1639_v50, %v2486_v35  ;;  %v1095_v2 = vmul.f32 %v1639_v50, %v2814_v6  ;;  %v2821_v6 = vld [vmem:[#allocation13_spill] sm:$0xff] }
 0x419   : > { %v1641_v39 = vpop.eup %1640 }
 0x41a   : > { %v1098_v57 = vmul.f32 %v1641_v39, %v2812_v56  ;;  %v1097_v60 = vmul.f32 %v1641_v39, %v2813_v23  ;;  %v2820_v56 = vld [vmem:[#allocation16_spill] sm:$0xff] }
 0x41b   : > { %1183 = vmatpush1.bf16.xpose.msra.mxu0 %v1137_v42 }
 0x41c   : > { %v1140_v19 = vpack.c.bf16 %v1098_v57, %v1096_v33  ;;  %v1139_v28 = vpack.c.bf16 %v1097_v60, %v1095_v2 }
 0x41e   : > { %1184 = vmatprep.subr.bf16.mxu0 %v1140_v19 }
 0x41f   : > { %v1643_v55 = vpop.eup %1642 }
 0x420   : > { %v1100_v13 = vmul.f32 %v1643_v55, %v2815_v1  ;;  %v1099_v29 = vmul.f32 %v1643_v55, %v2818_v4 }
 0x421   : > { %v1645_v45 = vpop.eup %1644 }
 0x422   : > { %v1102_v17 = vmul.f32 %v1645_v45, %v2816_v16  ;;  %v1101_v35 = vmul.f32 %v1645_v45, %v2817_v52  ;;  %v2822_v45 = vld [vmem:[#allocation14_spill] sm:$0xff] }
 0x423   : > { %1185 = vmatpush1.bf16.xpose.msra.mxu0 %v1139_v28 }
 0x424   : > { %v1142_v18 = vpack.c.bf16 %v1102_v17, %v1100_v13  ;;  %v1141_v20 = vpack.c.bf16 %v1101_v35, %v1099_v29 }
 0x426   : > { %1186 = vmatprep.subr.bf16.mxu0 %v1142_v18 }
 0x42b   : > { %1187 = vmatpush1.bf16.xpose.msra.mxu0 %v1141_v20 }
 0x460   : > { %v1001_v26 = vpop.xlane.xlu0 %1000 }
 0x461   : > { %1646 = vrcp.f32 %v1001_v26  ;;  %v1208_v26 = vstv %s1207_s27 }
 0x462   : > { %v1004_v8 = vpop.xlane.xlu1 %1003 }
 0x463   : > { %1648 = vrcp.f32 %v1004_v8  ;;  %v1662_v8 = vld [vmem:[%s2038_s10] sm:$0xff] }
 0x468   : > { %v1007_v24 = vpop.xlane.xlu0 %1006 }
 0x469   : > { %1650 = vrcp.f32 %v1007_v24  ;;  %v1213_v24 = vunpack.c.l.bf16 %v1662_v8 }
 0x46b   : > { %v1647_v47 = vpop.eup %1646 }
 0x46c   : > { %v1010_v53 = vpop.xlane.xlu1 %1009  ;;  %v1104_v5 = vmul.f32 %v1647_v47, %v2522_v38  ;;  %v1103_v58 = vmul.f32 %v1647_v47, %v2520_v30 }
 0x46d   : > { %v1649_v11 = vpop.eup %1648  ;;  %1652 = vrcp.f32 %v1010_v53 }
 0x46e   : > { %v1106_v61 = vmul.f32 %v1649_v11, %v2530_v21  ;;  %v1105_v7 = vmul.f32 %v1649_v11, %v2524_v43  ;;  %v1663_v11 = vld [vmem:[%s2038_s10 + $0x8] sm:$0xff] }
 0x470   : > { %v1144_v44 = vpack.c.bf16 %v1106_v61, %v1104_v5  ;;  %v1143_v49 = vpack.c.bf16 %v1105_v7, %v1103_v58  ;;  %v1215_v5 = vunpack.c.l.bf16 %v1663_v11 }
 0x471   : > { %v1013_v59 = vpop.xlane.xlu0 %1012 }
 0x472   : > { %1188 = vmatprep.subr.bf16.mxu0 %v1144_v44  ;;  %1654 = vrcp.f32 %v1013_v59 }
 0x473   : > { %1189 = vmatpush1.bf16.xpose.msra.mxu0 %v1143_v49  ;;  %v1651_v51 = vpop.eup %1650 }
 0x474   : > { %v1016_v62 = vpop.xlane.xlu1 %1015  ;;  %v1108_v25 = vmul.f32 %v1651_v51, %v2542_v27  ;;  %v1107_v21 = vmul.f32 %v1651_v51, %v2540_v15 }
 0x475   : > { %1656 = vrcp.f32 %v1016_v62 }
 0x477   : > { %v1653_v54 = vpop.eup %1652 }
 0x478   : > { %v1110_v38 = vmul.f32 %v1653_v54, %v2550_v46  ;;  %v1109_v30 = vmul.f32 %v1653_v54, %v2548_v31  ;;  %v2819_v31 = vld [vmem:[#allocation15_spill] sm:$0xff] }
 0x479   : > { %v1019_v10 = vpop.xlane.xlu0 %1018 }
 0x47a   : > { %v1146_v43 = vpack.c.bf16 %v1110_v38, %v1108_v25  ;;  %v1145_v3 = vpack.c.bf16 %v1109_v30, %v1107_v21  ;;  %1658 = vrcp.f32 %v1019_v10 }
 0x47c   : > { %1190 = vmatprep.subr.bf16.mxu0 %v1146_v43  ;;  %v1022_v32 = vpop.xlane.xlu1 %1021  ;;  %v1655_v34 = vpop.eup %1654 }
 0x47d   : > { %1660 = vrcp.f32 %v1022_v32  ;;  %1191 = vmatpush1.bf16.xpose.msra.mxu0 %v1145_v3  ;;  %v1112_v42 = vmul.f32 %v1655_v34, %v2562_v63  ;;  %v1111_v46 = vmul.f32 %v1655_v34, %v2560_v22 }
 0x47f   : > { %v1657_v50 = vpop.eup %1656 }
 0x480   : > { %v270_v39 = vpop.permute.xlu1 %269  ;;  %v1114_v27 = vmul.f32 %v1657_v50, %v2568_v36  ;;  %v1113_v15 = vmul.f32 %v1657_v50, %v2566_v40 }
 0x481   : > { %v265_v12 = vpop.permute.xlu0 %264  ;;  %v342_v19 = vadd.f32 %v2599_v37, %v270_v39  ;;  %v344_v23 = vadd.f32 %v2601_v9, %v270_v39 }
 0x482   : > { %v336_v33 = vadd.f32 %v2819_v31, %v265_v12  ;;  %v338_v57 = vadd.f32 %v2820_v56, %v265_v12  ;;  %v1148_v60 = vpack.c.bf16 %v1114_v27, %v1112_v42  ;;  %v1147_v55 = vpack.c.bf16 %v1113_v15, %v1111_v46 }
 0x483   : > { %v352_v28 = vpack.c.bf16 %v342_v19, %v342_v19  ;;  %v353_v36 = vpack.c.bf16 %v344_v23, %v344_v23 }
 0x484   : > { %v350_v2 = vpack.c.bf16 %v336_v33, %v2821_v6  ;;  %v351_v63 = vpack.c.bf16 %v338_v57, %v2822_v45  ;;  %1192 = vmatprep.subr.bf16.mxu0 %v1148_v60  ;;  %v1659_v22 = vpop.eup %1658 }
 0x485   : > { %v1157_v13 = vrot.slane %v352_v28, 2  ;;  %v1160_v16 = vrot.slane %v353_v36, 2  ;;  %1193 = vmatpush1.bf16.xpose.msra.mxu0 %v1147_v55  ;;  %v1116_v18 = vmul.f32 %v1659_v22, %v2578_v48  ;;  %v1115_v35 = vmul.f32 %v1659_v22, %v2576_v14 }
 0x486   : > { %v1156_v40 = vrot.slane %v350_v2, 2  ;;  %v1159_v1 = vrot.slane %v351_v63, 2  ;;  %v1214_v48 = vunpack.c.h.bf16 %v1662_v8 }
 0x487   : > { %v1661_v37 = vpop.eup %1660 }
 0x488   : > { %v1161_v17 = vsel %vm1155_vm3, %v1159_v1, %v1160_v16  ;;  %v1158_v9 = vsel %vm1155_vm3, %v1156_v40, %v1157_v13  ;;  %v1118_v52 = vmul.f32 %v1661_v37, %v2584_v41  ;;  %v1117_v4 = vmul.f32 %v1661_v37, %v2582_v0 }
 0x489   : > { %1196 = vmatprep.mubr.bf16.mxu0 %v1161_v17  ;;  %v1216_v0 = vunpack.c.h.bf16 %v1663_v11 }
 0x48a   : > { %v1150_v29 = vpack.c.bf16 %v1118_v52, %v1116_v18  ;;  %v1149_v20 = vpack.c.bf16 %v1117_v4, %v1115_v35 }
 0x48c   : > { %1194 = vmatprep.subr.bf16.mxu0 %v1150_v29 }
 0x48d   : > { %1195 = vmatpush1.bf16.xpose.msra.mxu0 %v1149_v20 }
 0x494   : > { %1197 = vmatmul.mubr.bf16.vlgmr.msra.gmra.mrb[8].mxu0 %v1158_v9 }
 0x567   : > { %v1198_v47 = vpop.f32.mrb[8].mxu0 }
 0x568   : > { %v1209_v53 = vmul.f32 %v1208_v26, %v1198_v47  ;;  %v1200_v41 = vpop.f32.mrb[9].mxu0 }
 0x569   : > { %v1210_v14 = vmul.f32 %v1208_v26, %v1200_v41  ;;  %v1202_v61 = vpop.f32.mrb[10].mxu0 }
 0x56a   : > { %v1217_v58 = vadd.f32 %v1213_v24, %v1209_v53  ;;  %v1211_v7 = vmul.f32 %v1208_v26, %v1202_v61  ;;  %v1204_v59 = vpop.f32.mrb[11].mxu0 }
 0x56b   : > { %v1218_v44 = vadd.f32 %v1214_v48, %v1210_v14  ;;  %v1212_v49 = vmul.f32 %v1208_v26, %v1204_v59 }
 0x56c   : > { %v1219_v62 = vadd.f32 %v1215_v5, %v1211_v7 }
 0x56d   : > { %v1385_v51 = vpack.c.bf16 %v1218_v44, %v1217_v58  ;;  %v1220_v54 = vadd.f32 %v1216_v0, %v1212_v49 }
 0x56f   : > { %1233 = vst [vmem:[%s245_s30] sm:$0xff] %v1385_v51  ;;  %v1386_v10 = vpack.c.bf16 %v1220_v54, %v1219_v62 }
 0x571   : > { %1234 = vst [vmem:[%s245_s30 + $0x8] sm:$0xff] %v1386_v10 }
 0x572   : > { %1763 = shalt.err (!%p1760_p5)
}
 0x573   : > { %s1764_s15 = scalar_lea.hbm %s2656_s6, 256  ;;  %s1768_s5 = scalar_lea.hbm %s2704_s4, 512 }
 0x574   : > { %p1765_p11 = scmp.ne.s32.totalorder %s2656_s6, %s1764_s15  ;;  %p1769_p6 = scmp.lt.u32.totalorder %s2656_s6, %s2704_s4 }
 0x575   : > { %p1770_p2 = scmp.lt.u32.totalorder %s1768_s5, %s1764_s15  ;;  %p1772_p7 = scmp.lt.u32.totalorder %s1764_s15, %s2656_s6 }
 0x576   : > { %p1766_p12 = pnand %p1765_p11, %p2823_p9 }
 0x577   : > { %p1771_p13 = por %p1770_p2, %p1769_p6 }
 0x578   : > { %p1767_p3 = pneg %p1766_p12 }
 0x579   : > { %p1773_p10 = por %p1772_p7, %p1771_p13 }
 0x57b   : > { %p1774_p1 = pnand %p1773_p10, %p1767_p3 }
 0x57d   : > { %1777 = shalt.err (!%p1774_p1)
}
 0x57e   : > { %s1832_s27 = smov 128   ;;  %s1833_s30 = smov 256  }
 0x57f   : > { %s1834_s24 = smov 8  }
 0x580   : > { %1398 = dma.vmem_to_hbm [thread:$0]  (%p2823_p9), %s2651_s23, 256, %s2656_s6, %s1236_s13, %s1832_s27, %s1833_s30, %s1834_s24  }
 0x581 PF: > { %s1264_s16 = sand.u32 1, %s1808_s17   ;;  %p2824_p0 = scmp.ne.s32.totalorder %s2742_s29, 0 }
 0x582   : > { %p2825_p4 = scmp.ge.s32.totalorder %s1820_s20, 2  ;;  %s1265_s7 = scalar_lea.sflag [#allocation5], %s1264_s16 }
 0x584   : > { %p1412_p8 = pnand %p2825_p4, %p2824_p0 }
 0x586   : > { %1803 = dma.done.wait (!%p1412_p8), %s1265_s7, 256  }
 0x587   : > { %1805 = vsyncadd (!%p1412_p8), %s1265_s7, 4294967040  ;;  %p19_p5 = scmp.ge.s32.totalorder %s1888_s22, 4   ;;  %s2826_s17 = smov %s1812_s18 }
 0x588   : > { %s2827_s18 = smov %s1816_s19  ;;  %s2828_s19 = smov %s1900_s25 }
 0x589   : > { %s2829_s20 = smov %s1888_s22  ;;  %21 = sbr.rel (!%p19_p5) target bundleno = 8 (0x8), region = 89 }
 0x590   :  { %1270 = vsyncpa [#allocation4], 1 }
 0x591   :  { %1272 = vsyncpa [#allocation4 + $0x1], 1 }
 0x592   :  { %1273 = vsyncpa [#allocation7], 1 }
 0x593   :  { %1274 = vsyncpa [#allocation5], 1 }
 0x594   :  { %1276 = vsyncpa [#allocation5 + $0x1], 1 }

// kernel: generator_forward.17
= control target key start
LH: loop header
LB: loop body
LE: loop exit
PB: predicated region body
PF: predicated region fallthrough
CT: control target
= control target key end

     0   :  { %9 = vsyncpa [#allocation3], 0  ;;  %s1275_s0 = inlined_call_operand.hbm [shape: bf16[4,8,64], index: 0, kind: input, shape index: {}]   ;;  %s1276_s1 = inlined_call_operand.hbm [shape: bf16[4,64,512], index: 1, kind: input, shape index: {}]   ;;  %s1277_s2 = inlined_call_operand.hbm [shape: bf16[4,8,512], index: 2, kind: output, shape index: {0}]   ;;  %s1278_s3 = inlined_call_operand.hbm [shape: f32[4,8,2], index: 3, kind: output, shape index: {1}]  }
   0x1   :  { %11 = vsyncpa [#allocation3 + $0x1], 0 }
   0x2   :  { %12 = vsyncpa [#allocation6], 0 }
   0x3   :  { %14 = vsyncpa [#allocation6 + $0x1], 0 }
   0x4   :  { %15 = vsyncpa [#allocation4], 0 }
   0x5   :  { %17 = vsyncpa [#allocation4 + $0x1], 0 }
   0x6   :  { %18 = vsyncpa [#allocation9], 0 }
   0x7   :  { %20 = vsyncpa [#allocation9 + $0x1], 0  ;;  %s1007_s12 = smov 0   ;;  %s1009_s13 = smov 0  }
   0x8   :  { %s1011_s14 = smov 0   ;;  %s1013_s15 = smov 0  }
   0x9   :  { %s1015_s16 = smov 0   ;;  %s1017_s17 = smov 0  }
   0xa LB: > { %s656_s18 = sadd.s32 4294967295, %s978_s17   ;;  %s657_s19 = sadd.s32 4294967294, %s978_s17   ;;  %s978_s17 = sphi %s1017_s17, %s26_s17   ;;  %s974_s16 = sphi %s1015_s16, %s1296_s16   ;;  %s970_s15 = sphi %s1013_s15, %s1295_s15   ;;  %s966_s14 = sphi %s1011_s14, %s1294_s14   ;;  %s962_s13 = sphi %s1009_s13, %s1293_s13   ;;  %s958_s12 = sphi %s1007_s12, %s1292_s12  }
   0xb   : > { %s38_s20 = sadd.s32 1, %s974_s16  ;;  %s45_s21 = sadd.s32 1, %s966_s14 }
   0xc   : > { %p40_p0 = scmp.ge.s32.totalorder %s38_s20, 4  ;;  %p52_p1 = scmp.ne.s32.totalorder %s966_s14, %s962_s13 }
   0xd   : > { %p53_p2 = scmp.eq.s32.totalorder %s978_s17, 0  ;;  %p58_p3 = scmp.ne.s32.totalorder %s962_s13, %s958_s12 }
   0xe   : > { %s1298_s20 = smov (%p40_p0, %s38_s20), 0  ;;  %p59_p5 = scmp.eq.s32.totalorder %s656_s18, 0 }
   0xf   : > { %p1048_p4 = por %p53_p2, %p52_p1  ;;  %s42_s23 = ssub.s32 %s974_s16, %s1298_s20 }
  0x10   : > { %p112_p6 = scmp.eq.s32.totalorder %s656_s18, 3  ;;  %p43_p7 = scmp.eq.s32.totalorder %s42_s23, 0 }
  0x11   : > { %p1054_p8 = por %p59_p5, %p58_p3  ;;  %p118_p10 = scmp.eq.s32.totalorder %s657_s19, 3 }
  0x12   : > { %p1058_p9 = por %p112_p6, %p52_p1  ;;  %p723_p12 = scmp.lt.s32.totalorder %s978_s17, 4 }
  0x13   : > { %s1282_s24 = scalar_select %p1054_p8, 1, 0 }
  0x14   : > { %s1283_s25 = scalar_select %p1058_p9, 1, 0 }
  0x15   : > { %s1063_s26 = scalar_select %p43_p7, %s966_s14, %s45_s21  }
  0x16   : > { %p1065_p11 = por %p118_p10, %p58_p3  ;;  %s1071_s28 = sand.u32 1, %s966_s14  }
  0x17   : > { %s660_s29 = sshll.u32 %s1071_s28, 2  ;;  %s661_s30 = sshll.u32 %s974_s16, 6 }
  0x18   : > { %s1284_s27 = scalar_select %p1065_p11, 1, 0 }
  0x19   : > { %s1078_s6 = scalar_lea.hbm %s1275_s0, %s661_s30  ;;  %s170_s7 = scalar_lea.vmem [#allocation2], %s660_s29 }
  0x1a   : > { %s177_s8 = sshll.u32 %s170_s7, 4  ;;  %p1084_p13 = pnand %p723_p12, %p1048_p4  ;;  %s1080_s8 = int_to_ptr.vmem [resolvable:$true] %s177_s8 }
  0x1b   : > { %s167_s10 = scalar_lea.sflag [#allocation3], %s1071_s28  ;;  %s800_s11 = scalar_lea.hbm %s1078_s6, 64 }
  0x1c   : > { %p801_p2 = scmp.ne.s32.totalorder %s1078_s6, %s800_s11  ;;  %p802_p3 = pneg %p1084_p13 }
  0x1d   : > { %s805_s21 = scalar_lea.hbm %s1275_s0, 256  ;;  %p806_p4 = scmp.lt.u32.totalorder %s1078_s6, %s1275_s0 }
  0x1e   : > { %p803_p5 = pnand %p802_p3, %p801_p2  ;;  %p807_p7 = scmp.lt.u32.totalorder %s805_s21, %s800_s11 }
  0x1f   : > { %p809_p12 = scmp.lt.u32.totalorder %s800_s11, %s1078_s6 }
  0x20   : > { %p804_p6 = pneg %p803_p5  ;;  %p808_p10 = por %p807_p7, %p806_p4 }
  0x22   : > { %p810_p0 = por %p809_p12, %p808_p10 }
  0x24   : > { %p811_p1 = pnand %p810_p0, %p804_p6 }
  0x26   : > { %814 = shalt.err (!%p811_p1)
}
  0x27   : > { %s815_s29 = scalar_lea.vmem %s1080_s8, 64  ;;  %s980_s30 = smov [#allocation2]  }
  0x28   : > { %p816_p2 = scmp.ne.s32.totalorder %s1080_s8, %s815_s29  ;;  %s820_s4 = sshll.u32 %s980_s30, 4  ;;  %s821_s4 = int_to_ptr.vmem [resolvable:$false] %s820_s4 }
  0x29   : > { %s822_s5 = scalar_lea.vmem %s821_s4, 128  ;;  %p823_p9 = scmp.lt.s32.totalorder %s1080_s8, %s821_s4 }
  0x2a   : > { %p818_p5 = pnand %p816_p2, %p802_p3  ;;  %p824_p4 = scmp.lt.s32.totalorder %s822_s5, %s815_s29 }
  0x2c   : > { %p819_p11 = pneg %p818_p5  ;;  %p825_p7 = por %p824_p4, %p823_p9 }
  0x2e   : > { %p826_p10 = pnand %p825_p7, %p819_p11 }
  0x30   : > { %829 = shalt.err (!%p826_p10)
}
  0x31   : > { %712 = dma.hbm_to_vmem [thread:$0]  (!%p1084_p13), %s1078_s6, 64, %s1080_s8, %s167_s10  }
  0x32   : > { %p1286_p0 = scmp.lt.s32.totalorder %s978_s17, 5  ;;  %p1287_p1 = scmp.ge.s32.totalorder %s978_s17, 1 }
  0x33   : > { %s662_s11 = sshll.u32 %s1071_s28, 7  ;;  %s697_s18 = sshll.u32 %s974_s16, 11 }
  0x34   : > { %p1120_p6 = pnand %p1287_p1, %p1286_p0  ;;  %s1129_s22 = scalar_lea.hbm %s1276_s1, %s697_s18 }
  0x35   : > { %s188_s23 = scalar_lea.vmem [#allocation5], %s662_s11  ;;  %s185_s6 = scalar_lea.sflag [#allocation6], %s1071_s28 }
  0x36   : > { %s197_s29 = sshll.u32 %s188_s23, 4  ;;  %s830_s8 = scalar_lea.hbm %s1129_s22, 2048  ;;  %s1131_s29 = int_to_ptr.vmem [resolvable:$true] %s197_s29 }
  0x37   : > { %p831_p9 = scmp.ne.s32.totalorder %s1129_s22, %s830_s8  ;;  %s835_s4 = scalar_lea.hbm %s1276_s1, 8192 }
  0x38   : > { %p836_p2 = scmp.lt.u32.totalorder %s1129_s22, %s1276_s1  ;;  %p837_p5 = scmp.lt.u32.totalorder %s835_s4, %s830_s8 }
  0x39   : > { %p833_p11 = pnand %p831_p9, %p802_p3  ;;  %p839_p7 = scmp.lt.u32.totalorder %s830_s8, %s1129_s22 }
  0x3a   : > { %p838_p4 = por %p837_p5, %p836_p2 }
  0x3b   : > { %p834_p12 = pneg %p833_p11 }
  0x3c   : > { %p840_p10 = por %p839_p7, %p838_p4 }
  0x3e   : > { %p841_p0 = pnand %p840_p10, %p834_p12 }
  0x40   : > { %844 = shalt.err (!%p841_p0)
}
  0x41   : > { %s845_s11 = scalar_lea.vmem %s1131_s29, 2048  ;;  %s981_s19 = smov [#allocation5]  }
  0x42   : > { %p846_p1 = scmp.ne.s32.totalorder %s1131_s29, %s845_s11  ;;  %s850_s21 = sshll.u32 %s981_s19, 4  ;;  %s851_s21 = int_to_ptr.vmem [resolvable:$false] %s850_s21 }
  0x43   : > { %s852_s23 = scalar_lea.vmem %s851_s21, 4096  ;;  %p853_p8 = scmp.lt.s32.totalorder %s1131_s29, %s851_s21 }
  0x44   : > { %p848_p9 = pnand %p846_p1, %p802_p3  ;;  %p854_p2 = scmp.lt.s32.totalorder %s852_s23, %s845_s11 }
  0x46   : > { %p849_p11 = pneg %p848_p9  ;;  %p855_p5 = por %p854_p2, %p853_p8 }
  0x48   : > { %p856_p4 = pnand %p855_p5, %p849_p11 }
  0x4a   : > { %859 = shalt.err (!%p856_p4)
}
  0x4b   : > { %s982_s8 = smov 256   ;;  %s983_s10 = smov 16  }
  0x4c   : > { %715 = dma.hbm_to_vmem [thread:$0]  (!%p1084_p13), %s1129_s22, 2048, %s1131_s29, %s185_s6, %s982_s8, %s982_s8, %s983_s10  }
  0x4d   : > { %209 = sbr.rel (%p1120_p6) target bundleno = 486 (0x1e6), region = 28  ;;  %s1162_s30 = sand.u32 (!%p1120_p6), 1, %s962_s13  }
  0x4e   : > { %s666_s4 = sshll.u32 (!%p1120_p6), %s1162_s30, 2  ;;  %s212_s5 = scalar_lea.sflag (!%p1120_p6), [#allocation3], %s1162_s30 }
  0x4f   : > { %s1166_s18 = scalar_lea.vmem (!%p1120_p6), [#allocation2], %s666_s4  ;;  %p1289_p8 = scmp.ne.s32.totalorder (!%p1120_p6), %s1282_s24, 0 }
  0x54   : > { %941 = dma.done.wait (%p1289_p8), %s212_s5, 64  }
  0x55   : > { %943 = vsyncadd (%p1289_p8), %s212_s5, 4294967232  ;;  %s667_s28 = sshll.u32 %s1162_s30, 7  ;;  %s221_s9 = scalar_lea.sflag [#allocation6], %s1162_s30 }
  0x56   : > { %s1174_s7 = scalar_lea.vmem [#allocation5], %s667_s28 }
  0x57   : > { %945 = dma.done.wait (%p1289_p8), %s221_s9, 2048  }
  0x58   : > { %947 = vsyncadd (%p1289_p8), %s221_s9, 4294965248  ;;  %v984_v0 = vmov 0   ;;  %v776_v1 = vld [vmem:[%s1174_s7 + $0x4] ss:$16 sps:$4 sm:$0xff]   ;;  %v778_v2 = vld [vmem:[%s1174_s7 + $0xc] ss:$16 sps:$4 sm:$0xff]  }
  0x59   : > { %394 = vmatprep.mubr.bf16.mxu0 %v984_v0  ;;  %435 = vmatprep.mubr.bf16.mxu1 %v984_v0  ;;  %v780_v3 = vld [vmem:[%s1174_s7] ss:$16 sps:$4 sm:$0xff]   ;;  %v781_v4 = vld [vmem:[%s1174_s7 + $0x8] ss:$16 sps:$4 sm:$0xff]   ;;  %v782_v5 = vld [vmem:[%s1174_s7 + $0x24] ss:$16 sps:$4 sm:$0xff]  }
  0x5a   : > { %362 = vmatprep.subr.bf16.mxu0 %v776_v1  ;;  %403 = vmatprep.subr.bf16.mxu1 %v778_v2  ;;  %v784_v6 = vld [vmem:[%s1174_s7 + $0x2c] ss:$16 sps:$4 sm:$0xff]   ;;  %v786_v7 = vld [vmem:[%s1174_s7 + $0x20] ss:$16 sps:$4 sm:$0xff]   ;;  %v787_v8 = vld [vmem:[%s1174_s7 + $0x28] ss:$16 sps:$4 sm:$0xff]  }
  0x5b   : > { %363 = vmatpush1.bf16.msra.mxu0 %v780_v3  ;;  %404 = vmatpush1.bf16.msra.mxu1 %v781_v4  ;;  %v788_v9 = vld [vmem:[%s1174_s7 + $0x44] ss:$16 sps:$4 sm:$0xff]   ;;  %v790_v10 = vld [vmem:[%s1174_s7 + $0x4c] ss:$16 sps:$4 sm:$0xff]   ;;  %v792_v11 = vld [vmem:[%s1174_s7 + $0x40] ss:$16 sps:$4 sm:$0xff]  }
  0x5c   : > { %364 = vmatprep.subr.bf16.mxu0 %v782_v5  ;;  %405 = vmatprep.subr.bf16.mxu1 %v784_v6  ;;  %v793_v12 = vld [vmem:[%s1174_s7 + $0x48] ss:$16 sps:$4 sm:$0xff]   ;;  %v794_v13 = vld [vmem:[%s1174_s7 + $0x64] ss:$16 sps:$4 sm:$0xff]   ;;  %v796_v14 = vld [vmem:[%s1174_s7 + $0x6c] ss:$16 sps:$4 sm:$0xff]  }
  0x5d   : > { %v798_v15 = vld [vmem:[%s1174_s7 + $0x60] ss:$16 sps:$4 sm:$0xff]   ;;  %v799_v16 = vld [vmem:[%s1174_s7 + $0x68] ss:$16 sps:$4 sm:$0xff]   ;;  %vm358_vm0 = vcmask 523264   ;;  %s668_s24 = sshll.u32 %s1162_s30, 4 }
  0x5e   : > { %v261_v17 = vld [vmem:[%s1166_s18] sm:$0xf]  ;;  %s249_s22 = scalar_lea.vmem [#allocation7], %s668_s24  ;;  %s700_s29 = sshll.u32 %s970_s15, 8 }
  0x5f   : > { %365 = vmatpush1.bf16.msra.mxu0 %v786_v7  ;;  %406 = vmatpush1.bf16.msra.mxu1 %v787_v8  ;;  %s1202_s19 = scalar_lea.hbm %s1277_s2, %s700_s29  ;;  %s502_s21 = sshll.u32 %s249_s22, 4  ;;  %s503_s21 = int_to_ptr.vmem [resolvable:$true] %s502_s21 }
  0x60   : > { %366 = vmatprep.subr.bf16.mxu0 %v788_v9  ;;  %407 = vmatprep.subr.bf16.mxu1 %v790_v10  ;;  %s481_s23 = scalar_lea.sflag [#allocation4], %s1162_s30  ;;  %s860_s8 = scalar_lea.vmem %s503_s21, 256 }
  0x61   : > { %p861_p13 = scmp.ne.s32.totalorder %s503_s21, %s860_s8  ;;  %p1290_p3 = scmp.ne.s32.totalorder %s1283_s25, 0 }
  0x62   : > { %s985_s10 = smov [#allocation7]  }
  0x63   : > { %367 = vmatpush1.bf16.msra.mxu0 %v792_v11  ;;  %408 = vmatpush1.bf16.msra.mxu1 %v793_v12  ;;  %p862_p6 = pnand %p861_p13, %p1290_p3  ;;  %s864_s4 = sshll.u32 %s985_s10, 4  ;;  %s865_s4 = int_to_ptr.vmem [resolvable:$false] %s864_s4 }
  0x64   : > { %368 = vmatprep.subr.bf16.mxu0 %v794_v13  ;;  %409 = vmatprep.subr.bf16.mxu1 %v796_v14  ;;  %s866_s5 = scalar_lea.vmem %s865_s4, 512  ;;  %p867_p7 = scmp.lt.s32.totalorder %s503_s21, %s865_s4 }
  0x65   : > { %p863_p12 = pneg %p862_p6  ;;  %p868_p10 = scmp.lt.s32.totalorder %s866_s5, %s860_s8 }
  0x67   : > { %369 = vmatpush1.bf16.msra.mxu0 %v798_v15  ;;  %410 = vmatpush1.bf16.msra.mxu1 %v799_v16  ;;  %p869_p0 = por %p868_p10, %p867_p7 }
  0x69   : > { %p870_p1 = pnand %p869_p0, %p863_p12 }
  0x6a   : > { %686 = vmatmul.mubr.msk.bf16.vlgmr.msra.gmra.mrb[0].mxu0 %vm358_vm0, %v261_v17  ;;  %687 = vmatmul.mubr.msk.bf16.vlgmr.msra.gmra.mrb[0].mxu1 %vm358_vm0, %v261_v17 }
 0x13d   : > { %v396_v18 = vpop.f32.mrb[0].mxu0  ;;  %v437_v19 = vpop.f32.mrb[0].mxu1 }
 0x13e   : > { %v467_v20 = vmul.f32 %v396_v18, %v396_v18  ;;  %v469_v21 = vmul.f32 %v437_v19, %v437_v19  ;;  %v398_v22 = vpop.f32.mrb[1].mxu0  ;;  %v439_v23 = vpop.f32.mrb[1].mxu1 }
 0x13f   : > { %v698_v24 = vpack.c.bf16 %v398_v22, %v396_v18  ;;  %v462_v25 = vadd.f32 %v398_v22, %v396_v18  ;;  %v468_v26 = vmul.f32 %v398_v22, %v398_v22  ;;  %v699_v27 = vpack.c.bf16 %v439_v23, %v437_v19  ;;  %v400_v28 = vpop.f32.mrb[2].mxu0  ;;  %v441_v29 = vpop.f32.mrb[2].mxu1 }
 0x140   : > { %v401_v30 = vpop.f32.mrb[3].mxu0  ;;  %v442_v31 = vpop.f32.mrb[3].mxu1  ;;  %v470_v35 = vmul.f32 %v439_v23, %v439_v23 }
 0x141   : > { %460 = vst [vmem:[%s249_s22] sm:$0xff] %v698_v24  ;;  %461 = vst [vmem:[%s249_s22 + $0x8] sm:$0xff] %v699_v27  ;;  %v463_v32 = vadd.f32 %v462_v25, %v437_v19  ;;  %v471_v33 = vadd.f32 %v468_v26, %v467_v20 }
 0x143   : > { %v464_v34 = vadd.f32 %v463_v32, %v439_v23  ;;  %v472_v36 = vadd.f32 %v471_v33, %v469_v21 }
 0x145   : > { %465 = vadd.xlane.f32.xlu0 %v464_v34  ;;  %v473_v37 = vadd.f32 %v472_v36, %v470_v35 }
 0x149   : > { %474 = vadd.xlane.f32.xlu0 %v473_v37 }
 0x14a   : > { %873 = shalt.err (!%p870_p1)
}
 0x14b   : > { %s874_s18 = scalar_lea.hbm %s1202_s19, 256  ;;  %s878_s7 = scalar_lea.hbm %s1277_s2, 1024 }
 0x14c   : > { %p875_p9 = scmp.ne.s32.totalorder %s1202_s19, %s874_s18  ;;  %p879_p5 = scmp.lt.u32.totalorder %s1202_s19, %s1277_s2 }
 0x14d   : > { %p880_p4 = scmp.lt.u32.totalorder %s878_s7, %s874_s18  ;;  %p882_p13 = scmp.lt.u32.totalorder %s874_s18, %s1202_s19 }
 0x14e   : > { %p876_p11 = pnand %p875_p9, %p1290_p3 }
 0x14f   : > { %p881_p8 = por %p880_p4, %p879_p5 }
 0x150   : > { %p877_p2 = pneg %p876_p11 }
 0x151   : > { %p883_p6 = por %p882_p13, %p881_p8 }
 0x153   : > { %p884_p12 = pnand %p883_p6, %p877_p2 }
 0x155   : > { %887 = shalt.err (!%p884_p12)
}
 0x156   : > { %705 = dma.vmem_to_hbm [thread:$0]  (%p1290_p3), %s503_s21, 256, %s1202_s19, %s481_s23   ;;  %vm476_vm1 = vcmask 7168   ;;  %vm478_vm2 = vcmask 15360  }
 0x157   : > { %s669_s29 = sshll.u32 %s1162_s30, 3  ;;  %s694_s6 = sshll.u32 %s970_s15, 7 }
 0x158   : > { %s256_s11 = scalar_lea.vmem [#allocation8], %s669_s29  ;;  %s1227_s5 = scalar_lea.hbm %s1278_s3, %s694_s6 }
 0x159   : > { %s516_s8 = sshll.u32 %s256_s11, 4  ;;  %s486_s19 = scalar_lea.sflag [#allocation9], %s1162_s30  ;;  %s1229_s8 = int_to_ptr.vmem [resolvable:$true] %s516_s8 }
 0x15a   : > { %s888_s21 = scalar_lea.vmem %s1229_s8, 128  ;;  %s986_s15 = smov [#allocation8]  }
 0x15b   : > { %p889_p7 = scmp.ne.s32.totalorder %s1229_s8, %s888_s21  ;;  %s892_s23 = sshll.u32 %s986_s15, 4  ;;  %s893_s23 = int_to_ptr.vmem [resolvable:$false] %s892_s23 }
 0x15c   : > { %s894_s18 = scalar_lea.vmem %s893_s23, 256  ;;  %p895_p1 = scmp.lt.s32.totalorder %s1229_s8, %s893_s23 }
 0x15d   : > { %p890_p10 = pnand %p889_p7, %p1290_p3  ;;  %p896_p9 = scmp.lt.s32.totalorder %s894_s18, %s888_s21 }
 0x15f   : > { %p891_p0 = pneg %p890_p10  ;;  %p897_p11 = por %p896_p9, %p895_p1 }
 0x161   : > { %p898_p2 = pnand %p897_p11, %p891_p0 }
 0x1d2   : > { %v466_v38 = vpop.xlane.xlu0 %465 }
 0x1d6   : > { %v475_v39 = vpop.xlane.xlu0 %474 }
 0x1d7   : > { %v477_v40 = vsel %vm476_vm1, %v466_v38, %v475_v39 }
 0x1d8   : > { %479 = vst.msk [vmem:[%s256_s11] sm:$0xff] %vm478_vm2, %v477_v40 }
 0x1d9   : > { %901 = shalt.err (!%p898_p2)
}
 0x1da   : > { %s902_s30 = scalar_lea.hbm %s1227_s5, 128  ;;  %s906_s7 = scalar_lea.hbm %s1278_s3, 512 }
 0x1db   : > { %p903_p5 = scmp.ne.s32.totalorder %s1227_s5, %s902_s30  ;;  %p907_p13 = scmp.lt.u32.totalorder %s1227_s5, %s1278_s3 }
 0x1dc   : > { %p908_p6 = scmp.lt.u32.totalorder %s906_s7, %s902_s30  ;;  %p910_p7 = scmp.lt.u32.totalorder %s902_s30, %s1227_s5 }
 0x1dd   : > { %p904_p4 = pnand %p903_p5, %p1290_p3 }
 0x1de   : > { %p909_p12 = por %p908_p6, %p907_p13 }
 0x1df   : > { %p905_p8 = pneg %p904_p4 }
 0x1e0   : > { %p911_p10 = por %p910_p7, %p909_p12 }
 0x1e2   : > { %p912_p0 = pnand %p911_p10, %p905_p8 }
 0x1e4   : > { %915 = shalt.err (!%p912_p0)
}
 0x1e5   : > { %706 = dma.vmem_to_hbm [thread:$0]  (%p1290_p3), %s1229_s8, 128, %s1227_s5, %s486_s19  }
 0x1e6 PF: > { %p724_p1 = scmp.ge.s32.totalorder %s978_s17, 2  ;;  %s528_s29 = sand.u32 1, %s958_s12  }
 0x1e7   : > { %p1291_p9 = scmp.ne.s32.totalorder %s1284_s27, 0  ;;  %s529_s6 = scalar_lea.sflag [#allocation4], %s528_s29 }
 0x1e9   : > { %p717_p11 = pnand %p724_p1, %p1291_p9 }
 0x1eb   : > { %949 = dma.done.wait (!%p717_p11), %s529_s6, 256  }
 0x1ec   : > { %951 = vsyncadd (!%p717_p11), %s529_s6, 4294967040  ;;  %s538_s11 = scalar_lea.sflag [#allocation9], %s528_s29 }
 0x1ed   : > { %953 = dma.done.wait (!%p717_p11), %s538_s11, 128  }
 0x1ee   : > { %955 = vsyncadd (!%p717_p11), %s538_s11, 4294967168  ;;  %s26_s17 = sadd.s32 1, %s978_s17   ;;  %s1292_s12 = smov %s962_s13 }
 0x1ef   : > { %p23_p2 = scmp.ge.s32.totalorder %s26_s17, 6   ;;  %s1293_s13 = smov %s966_s14 }
 0x1f0   : > { %s1294_s14 = smov %s1063_s26  ;;  %s1295_s15 = smov %s974_s16 }
 0x1f1   : > { %s1296_s16 = smov %s1298_s20  ;;  %25 = sbr.rel (!%p23_p2) target bundleno = 10 (0xa), region = 103 }
 0x1f8   :  { %543 = vsyncpa [#allocation3], 1 }
 0x1f9   :  { %545 = vsyncpa [#allocation3 + $0x1], 1 }
 0x1fa   :  { %546 = vsyncpa [#allocation6], 1 }
 0x1fb   :  { %548 = vsyncpa [#allocation6 + $0x1], 1 }
 0x1fc   :  { %549 = vsyncpa [#allocation4], 1 }
 0x1fd   :  { %551 = vsyncpa [#allocation4 + $0x1], 1 }
 0x1fe   :  { %552 = vsyncpa [#allocation9], 1 }
 0x1ff   :  { %554 = vsyncpa [#allocation9 + $0x1], 1 }

// kernel: generator_forward.18
= control target key start
LH: loop header
LB: loop body
LE: loop exit
PB: predicated region body
PF: predicated region fallthrough
CT: control target
= control target key end

     0   :  { %8 = vsyncpa [#allocation3], 0  ;;  %s954_s0 = inlined_call_operand.hbm [shape: bf16[4,8,512], index: 0, kind: input, shape index: {}]   ;;  %s955_s1 = inlined_call_operand.hbm [shape: f32[8,1], index: 1, kind: input, shape index: {}]   ;;  %s956_s2 = inlined_call_operand.hbm [shape: f32[8,1], index: 2, kind: input, shape index: {}]   ;;  %s957_s3 = inlined_call_operand.hbm [shape: bf16[4,8,512], index: 3, kind: output, shape index: {}]  }
   0x1   :  { %10 = vsyncpa [#allocation3 + $0x1], 0 }
   0x2   :  { %11 = vsyncpa [#allocation6], 0 }
   0x3   :  { %12 = vsyncpa [#allocation4], 0 }
   0x4   :  { %14 = vsyncpa [#allocation4 + $0x1], 0  ;;  %s709_s12 = smov 0   ;;  %s711_s13 = smov 0  }
   0x5   :  { %s713_s14 = smov 0   ;;  %s715_s15 = smov 0  }
   0x6   :  { %s717_s16 = smov 0   ;;  %s719_s17 = smov 0  }
   0x7 LB: > { %s400_s18 = sadd.s32 4294967295, %s682_s17   ;;  %s401_s19 = sadd.s32 4294967294, %s682_s17   ;;  %s682_s17 = sphi %s719_s17, %s20_s17   ;;  %s678_s16 = sphi %s717_s16, %s979_s16   ;;  %s674_s15 = sphi %s715_s15, %s978_s15   ;;  %s670_s14 = sphi %s713_s14, %s977_s14   ;;  %s666_s13 = sphi %s711_s13, %s976_s13   ;;  %s662_s12 = sphi %s709_s12, %s975_s12  }
   0x8   : > { %p54_p0 = scmp.ne.s32.totalorder %s666_s13, %s662_s12  ;;  %p743_p1 = scmp.eq.s32.totalorder %s400_s18, 0 }
   0x9   : > { %p747_p2 = scmp.eq.s32.totalorder %s400_s18, 3  ;;  %p128_p3 = scmp.eq.s32.totalorder %s401_s19, 3 }
   0xa   : > { %s962_s20 = scalar_select %p743_p1, 1, 0 }
   0xb   : > { %s963_s21 = scalar_select %p747_p2, 1, 0 }
   0xc   : > { %p753_p4 = por %p743_p1, %p54_p0  ;;  %p402_p5 = scmp.ge.s32.totalorder %s682_s17, 1 }
   0xd   : > { %p758_p6 = por %p128_p3, %p54_p0  ;;  %p135_p7 = scmp.lt.s32.totalorder %s682_s17, 5 }
   0xe   : > { %s964_s22 = scalar_select %p753_p4, 1, 0 }
   0xf   : > { %s965_s23 = scalar_select %p758_p6, 1, 0 }
  0x10   : > { %p763_p8 = pnand %p402_p5, %p135_p7  ;;  %s684_s25 = smov [#allocation5]  }
  0x11   : > { %s148_s26 = sshll.u32 %s684_s25, 4  ;;  %s685_s27 = smov [#allocation7]   ;;  %s149_s26 = int_to_ptr.vmem [resolvable:$true] %s148_s26 }
  0x12   : > { %s966_s24 = scalar_select %p763_p8, 1, 0 }
  0x13   : > { %p437_p9 = pneg %p763_p8  ;;  %s159_s28 = sshll.u32 %s685_s27, 4  ;;  %s775_s28 = int_to_ptr.vmem [resolvable:$true] %s159_s28 }
  0x14   : > { %s510_s5 = scalar_lea.hbm %s955_s1, 128 }
  0x15   : > { %p771_p10 = pnand %p437_p9, %p743_p1  ;;  %p511_p11 = scmp.ne.s32.totalorder %s955_s1, %s510_s5 }
  0x16   : > { %p517_p3 = scmp.lt.u32.totalorder %s510_s5, %s955_s1 }
  0x17   : > { %p512_p12 = pneg %p771_p10 }
  0x19   : > { %p513_p13 = pnand %p512_p12, %p511_p11 }
  0x1b   : > { %p514_p0 = pneg %p513_p13 }
  0x1d   : > { %p519_p5 = pnand %p517_p3, %p514_p0 }
  0x1f   : > { %522 = shalt.err (!%p519_p5)
}
  0x20   : > { %s523_s10 = scalar_lea.vmem %s149_s26, 128  ;;  %p531_p1 = scmp.lt.s32.totalorder %s149_s26, %s149_s26 }
  0x21   : > { %p524_p7 = scmp.ne.s32.totalorder %s149_s26, %s523_s10  ;;  %p532_p4 = scmp.lt.s32.totalorder %s523_s10, %s523_s10 }
  0x23   : > { %p526_p9 = pnand %p524_p7, %p512_p12  ;;  %p533_p8 = por %p532_p4, %p531_p1 }
  0x25   : > { %p527_p6 = pneg %p526_p9 }
  0x27   : > { %p534_p2 = pnand %p533_p8, %p527_p6 }
  0x29   : > { %537 = shalt.err (!%p534_p2)
}
  0x2a   : > { %440 = dma.hbm_to_vmem [thread:$0]  (!%p771_p10), %s955_s1, 128, %s149_s26, [#allocation6]  }
  0x2b   : > { %s538_s27 = scalar_lea.hbm %s956_s2, 128 }
  0x2c   : > { %p539_p11 = scmp.ne.s32.totalorder %s956_s2, %s538_s27  ;;  %p545_p2 = scmp.lt.u32.totalorder %s538_s27, %s956_s2 }
  0x2e   : > { %p541_p1 = pnand %p539_p11, %p512_p12 }
  0x30   : > { %p542_p4 = pneg %p541_p1 }
  0x32   : > { %p547_p6 = pnand %p545_p2, %p542_p4 }
  0x34   : > { %550 = shalt.err (!%p547_p6)
}
  0x35   : > { %s551_s26 = scalar_lea.vmem %s775_s28, 128  ;;  %p559_p3 = scmp.lt.s32.totalorder %s775_s28, %s775_s28 }
  0x36   : > { %p552_p8 = scmp.ne.s32.totalorder %s775_s28, %s551_s26  ;;  %p560_p5 = scmp.lt.s32.totalorder %s551_s26, %s551_s26 }
  0x38   : > { %p554_p13 = pnand %p552_p8, %p512_p12  ;;  %p561_p7 = por %p560_p5, %p559_p3 }
  0x3a   : > { %p555_p0 = pneg %p554_p13 }
  0x3c   : > { %p562_p9 = pnand %p561_p7, %p555_p0 }
  0x3e   : > { %565 = shalt.err (!%p562_p9)
}
  0x3f   : > { %443 = dma.hbm_to_vmem [thread:$0]  (!%p771_p10), %s956_s2, 128, %s775_s28, [#allocation6]  }
  0x40   : > { %s32_s9 = sadd.s32 1, %s678_s16  ;;  %s41_s10 = sadd.s32 1, %s670_s14 }
  0x41   : > { %p34_p12 = scmp.ge.s32.totalorder %s32_s9, 4  ;;  %p48_p11 = scmp.ne.s32.totalorder %s670_s14, %s666_s13 }
  0x42   : > { %p49_p1 = scmp.eq.s32.totalorder %s682_s17, 0  ;;  %p454_p4 = scmp.lt.s32.totalorder %s682_s17, 4 }
  0x43   : > { %s981_s9 = smov (%p34_p12, %s32_s9), 0  ;;  %p968_p6 = scmp.ne.s32.totalorder %s963_s21, 0 }
  0x44   : > { %p50_p2 = por %p49_p1, %p48_p11  ;;  %s36_s11 = ssub.s32 %s678_s16, %s981_s9 }
  0x45   : > { %p834_p8 = por %p968_p6, %p48_p11  ;;  %s170_s18 = sand.u32 1, %s670_s14  }
  0x46   : > { %p39_p13 = scmp.eq.s32.totalorder %s36_s11, 0  ;;  %s406_s28 = sshll.u32 %s170_s18, 4 }
  0x47   : > { %s421_s19 = sshll.u32 %s678_s16, 8  ;;  %s174_s21 = scalar_lea.vmem [#allocation2], %s406_s28 }
  0x48   : > { %s843_s25 = scalar_select %p39_p13, %s670_s14, %s41_s10  }
  0x49   : > { %s848_s4 = scalar_lea.hbm %s954_s0, %s421_s19  ;;  %s184_s5 = sshll.u32 %s174_s21, 4  ;;  %s856_s5 = int_to_ptr.vmem [resolvable:$true] %s184_s5 }
  0x4a   : > { %p852_p10 = pnand %p454_p4, %p50_p2  ;;  %s171_s26 = scalar_lea.sflag [#allocation3], %s170_s18 }
  0x4b   : > { %s566_s7 = scalar_lea.hbm %s848_s4, 256  ;;  %s571_s11 = scalar_lea.hbm %s954_s0, 1024 }
  0x4c   : > { %p567_p0 = scmp.ne.s32.totalorder %s848_s4, %s566_s7  ;;  %p568_p3 = pneg %p852_p10 }
  0x4d   : > { %p572_p9 = scmp.lt.u32.totalorder %s848_s4, %s954_s0  ;;  %p573_p12 = scmp.lt.u32.totalorder %s571_s11, %s566_s7 }
  0x4e   : > { %p569_p5 = pnand %p568_p3, %p567_p0  ;;  %p575_p1 = scmp.lt.u32.totalorder %s566_s7, %s848_s4 }
  0x4f   : > { %p574_p11 = por %p573_p12, %p572_p9 }
  0x50   : > { %p570_p7 = pneg %p569_p5 }
  0x51   : > { %p576_p4 = por %p575_p1, %p574_p11 }
  0x53   : > { %p577_p2 = pnand %p576_p4, %p570_p7 }
  0x55   : > { %580 = shalt.err (!%p577_p2)
}
  0x56   : > { %s581_s18 = scalar_lea.vmem %s856_s5, 256  ;;  %s686_s27 = smov [#allocation2]  }
  0x57   : > { %p582_p6 = scmp.ne.s32.totalorder %s856_s5, %s581_s18  ;;  %s586_s30 = sshll.u32 %s686_s27, 4  ;;  %s587_s30 = int_to_ptr.vmem [resolvable:$false] %s586_s30 }
  0x58   : > { %s588_s21 = scalar_lea.vmem %s587_s30, 512  ;;  %p589_p5 = scmp.lt.s32.totalorder %s856_s5, %s587_s30 }
  0x59   : > { %p584_p13 = pnand %p582_p6, %p568_p3  ;;  %p590_p9 = scmp.lt.s32.totalorder %s588_s21, %s581_s18 }
  0x5b   : > { %p585_p0 = pneg %p584_p13  ;;  %p591_p12 = por %p590_p9, %p589_p5 }
  0x5d   : > { %p592_p11 = pnand %p591_p12, %p585_p0 }
  0x5f   : > { %595 = shalt.err (!%p592_p11)
}
  0x60   : > { %447 = dma.hbm_to_vmem [thread:$0]  (!%p852_p10), %s848_s4, 256, %s856_s5, %s171_s26  }
  0x61   : > { %p971_p7 = scmp.ne.s32.totalorder %s966_s24, 0 }
  0x62   : > { %s886_s7 = sand.u32 (!%p971_p7), 1, %s666_s13   ;;  %p972_p3 = scmp.ne.s32.totalorder (!%p971_p7), %s964_s22, 0 }
  0x63   : > { %193 = sbr.rel (%p971_p7) target bundleno = 264 (0x108), region = 32  ;;  %s410_s8 = sshll.u32 (!%p971_p7), %s886_s7, 4 }
  0x64   : > { %s196_s10 = scalar_lea.sflag (!%p971_p7), [#allocation3], %s886_s7  ;;  %s199_s11 = scalar_lea.vmem (!%p971_p7), [#allocation2], %s410_s8 }
  0x6a   : > { %649 = dma.done.wait (%p972_p3), %s196_s10, 256  }
  0x6b   : > { %651 = vsyncadd (%p972_p3), %s196_s10, 4294967040  ;;  %p973_p10 = scmp.ne.s32.totalorder %s962_s20, 0 }
  0x6d   : > { %653 = dma.done.wait (%p973_p10), [#allocation6], 256  }
  0x6e   : > { %655 = vsyncadd (%p973_p10), [#allocation6], 4294967040  ;;  %v687_v0 = vmov 0   ;;  %v238_v1 = vld [vmem:[#allocation5] sm:$0xff]  ;;  %v248_v2 = vld [vmem:[#allocation7] sm:$0xff]  ;;  %s424_s20 = sshll.u32 %s674_s15, 8 }
  0x6f   : > { %509 = vset.pattern.permute.xlu0 %v687_v0  ;;  %v232_v3 = vld [vmem:[%s199_s11] sm:$0xff]  ;;  %v233_v4 = vld [vmem:[%s199_s11 + $0x8] sm:$0xff]  ;;  %s229_s22 = scalar_lea.vmem [#allocation8], %s410_s8  ;;  %s906_s6 = scalar_lea.hbm %s957_s3, %s424_s20 }
  0x70   : > { %241 = vperm.xlu0 %509, %v238_v1   ;;  %v234_v5 = vunpack.c.l.bf16 %v232_v3  ;;  %v235_v6 = vunpack.c.h.bf16 %v232_v3  ;;  %v236_v7 = vunpack.c.l.bf16 %v233_v4  ;;  %v237_v8 = vunpack.c.h.bf16 %v233_v4  ;;  %s297_s24 = sshll.u32 %s229_s22, 4  ;;  %s281_s15 = scalar_lea.sflag [#allocation4], %s886_s7  ;;  %s908_s24 = int_to_ptr.vmem [resolvable:$true] %s297_s24 }
  0x71   : > { %s596_s26 = scalar_lea.vmem %s908_s24, 256  ;;  %s688_s28 = smov [#allocation8]  }
  0x72   : > { %p597_p1 = scmp.ne.s32.totalorder %s908_s24, %s596_s26  ;;  %s600_s19 = sshll.u32 %s688_s28, 4  ;;  %s601_s19 = int_to_ptr.vmem [resolvable:$false] %s600_s19 }
  0x73   : > { %s602_s18 = scalar_lea.vmem %s601_s19, 512  ;;  %p603_p6 = scmp.lt.s32.totalorder %s908_s24, %s601_s19 }
  0x74   : > { %251 = vperm.xlu0 %509, %v248_v2   ;;  %p598_p4 = pnand %p597_p1, %p834_p8  ;;  %p604_p13 = scmp.lt.s32.totalorder %s602_s18, %s596_s26 }
  0x76   : > { %p599_p2 = pneg %p598_p4  ;;  %p605_p0 = por %p604_p13, %p603_p6 }
  0x78   : > { %p606_p5 = pnand %p605_p0, %p599_p2 }
  0xef   : > { %v242_v9 = vpop.permute.xlu0 %241 }
  0xf0   : > { %v244_v10 = vmul.f32 %v242_v9, %v234_v5  ;;  %v245_v11 = vmul.f32 %v242_v9, %v235_v6  ;;  %v246_v12 = vmul.f32 %v242_v9, %v236_v7  ;;  %v247_v13 = vmul.f32 %v242_v9, %v237_v8 }
  0xf3   : > { %v252_v14 = vpop.permute.xlu0 %251 }
  0xf4   : > { %v254_v15 = vadd.f32 %v252_v14, %v244_v10  ;;  %v255_v16 = vadd.f32 %v252_v14, %v245_v11  ;;  %v256_v17 = vadd.f32 %v252_v14, %v246_v12  ;;  %v257_v18 = vadd.f32 %v252_v14, %v247_v13 }
  0xf6   : > { %v258_v19 = vmax.f32 %v254_v15, 0.0  ;;  %v259_v20 = vmax.f32 %v255_v16, 0.0  ;;  %v260_v21 = vmax.f32 %v256_v17, 0.0  ;;  %v261_v22 = vmax.f32 %v257_v18, 0.0 }
  0xf8   : > { %v422_v23 = vpack.c.bf16 %v259_v20, %v258_v19  ;;  %v423_v24 = vpack.c.bf16 %v261_v22, %v260_v21 }
  0xfa   : > { %278 = vst [vmem:[%s229_s22] sm:$0xff] %v422_v23  ;;  %279 = vst [vmem:[%s229_s22 + $0x8] sm:$0xff] %v423_v24 }
  0xfb   : > { %609 = shalt.err (!%p606_p5)
}
  0xfc   : > { %s610_s27 = scalar_lea.hbm %s906_s6, 256  ;;  %s614_s7 = scalar_lea.hbm %s957_s3, 1024 }
  0xfd   : > { %p611_p9 = scmp.ne.s32.totalorder %s906_s6, %s610_s27  ;;  %p615_p7 = scmp.lt.u32.totalorder %s906_s6, %s957_s3 }
  0xfe   : > { %p616_p3 = scmp.lt.u32.totalorder %s614_s7, %s610_s27  ;;  %p618_p1 = scmp.lt.u32.totalorder %s610_s27, %s906_s6 }
  0xff   : > { %p612_p12 = pnand %p611_p9, %p834_p8 }
 0x100   : > { %p617_p10 = por %p616_p3, %p615_p7 }
 0x101   : > { %p613_p11 = pneg %p612_p12 }
 0x102   : > { %p619_p4 = por %p618_p1, %p617_p10 }
 0x104   : > { %p620_p2 = pnand %p619_p4, %p613_p11 }
 0x106   : > { %623 = shalt.err (!%p620_p2)
}
 0x107   : > { %435 = dma.vmem_to_hbm [thread:$0]  (%p834_p8), %s908_s24, 256, %s906_s6, %s281_s15  }
 0x108 PF: > { %p457_p6 = scmp.ge.s32.totalorder %s682_s17, 2  ;;  %s309_s11 = sand.u32 1, %s662_s12  }
 0x109   : > { %p974_p13 = scmp.ne.s32.totalorder %s965_s23, 0  ;;  %s310_s20 = scalar_lea.sflag [#allocation4], %s309_s11 }
 0x10b   : > { %p449_p0 = pnand %p457_p6, %p974_p13 }
 0x10d   : > { %657 = dma.done.wait (!%p449_p0), %s310_s20, 256  }
 0x10e   : > { %659 = vsyncadd (!%p449_p0), %s310_s20, 4294967040  ;;  %s20_s17 = sadd.s32 1, %s682_s17   ;;  %s975_s12 = smov %s666_s13 }
 0x10f   : > { %p17_p5 = scmp.ge.s32.totalorder %s20_s17, 6   ;;  %s976_s13 = smov %s670_s14 }
 0x110   : > { %s977_s14 = smov %s843_s25  ;;  %s978_s15 = smov %s678_s16 }
 0x111   : > { %s979_s16 = smov %s981_s9  ;;  %19 = sbr.rel (!%p17_p5) target bundleno = 7 (0x7), region = 85 }
 0x118   :  { %315 = vsyncpa [#allocation3], 1 }
 0x119   :  { %317 = vsyncpa [#allocation3 + $0x1], 1 }
 0x11a   :  { %318 = vsyncpa [#allocation6], 1 }
 0x11b   :  { %319 = vsyncpa [#allocation4], 1 }
 0x11c   :  { %321 = vsyncpa [#allocation4 + $0x1], 1 }

// kernel: generator_forward.19
= control target key start
LH: loop header
LB: loop body
LE: loop exit
PB: predicated region body
PF: predicated region fallthrough
CT: control target
= control target key end

     0   :  { %s1321_s0 = inlined_call_operand.hbm [shape: bf16[4,3,32], index: 0, kind: input, shape index: {}]   ;;  %s1322_s1 = inlined_call_operand.hbm [shape: bf16[4,32,2048], index: 1, kind: input, shape index: {}]   ;;  %s1323_s2 = inlined_call_operand.hbm [shape: f32[3,1], index: 2, kind: input, shape index: {}]   ;;  %s1324_s3 = inlined_call_operand.hbm [shape: f32[4,3,2048], index: 3, kind: output, shape index: {}]  }
   0x1   :  { %1339 = sst [smem:[#allocation19_spill]] %s1323_s2 }
   0x2   :  { %1340 = sst [smem:[#allocation20_spill]] %s1324_s3 }
   0x3   :  { %8 = vsyncpa [#allocation3], 0 }
   0x4   :  { %10 = vsyncpa [#allocation3 + $0x1], 0 }
   0x5   :  { %11 = vsyncpa [#allocation6], 0 }
   0x6   :  { %13 = vsyncpa [#allocation6 + $0x1], 0 }
   0x7   :  { %14 = vsyncpa [#allocation4], 0 }
   0x8   :  { %16 = vsyncpa [#allocation4 + $0x1], 0  ;;  %s973_s12 = smov 0   ;;  %s975_s13 = smov 0  }
   0x9   :  { %s977_s14 = smov 0   ;;  %s979_s15 = smov 0  }
   0xa   :  { %s981_s16 = smov 0   ;;  %s983_s17 = smov 0  }
   0xb   :  { %s985_s18 = smov 0   ;;  %s987_s19 = smov 0  }
   0xc   :  { %s989_s20 = smov 0   ;;  %s991_s21 = smov 0  }
   0xd   :  { %s993_s22 = smov 0  }
   0xe LB: > { %1341 = sst [smem:[#allocation13_spill]] %s903_s12  ;;  %s1027_s23 = sadd.s32 4294967295, %s943_s22   ;;  %s943_s22 = sphi %s993_s22, %s22_s22   ;;  %s939_s21 = sphi %s991_s21, %s1386_s21   ;;  %s935_s20 = sphi %s989_s20, %s1385_s20   ;;  %s931_s19 = sphi %s987_s19, %s1384_s19   ;;  %s927_s18 = sphi %s985_s18, %s1383_s18   ;;  %s923_s17 = sphi %s983_s17, %s1382_s17   ;;  %s919_s16 = sphi %s981_s16, %s1381_s16   ;;  %s915_s15 = sphi %s979_s15, %s1380_s15   ;;  %s911_s14 = sphi %s977_s14, %s1379_s14   ;;  %s907_s13 = sphi %s975_s13, %s1378_s13   ;;  %s903_s12 = sphi %s973_s12, %s1377_s12  }
   0xf   : > { %1342 = sst [smem:[#allocation14_spill]] %s931_s19  ;;  %s551_s24 = sadd.s32 4294967294, %s943_s22  }
  0x10   : > { %p54_p0 = scmp.ne.s32.totalorder %s919_s16, %s915_s15  ;;  %p1325_p1 = scmp.eq.s32.totalorder %s1027_s23, 0 }
  0x11   : > { %p1327_p2 = scmp.ne.s32.totalorder %s911_s14, %s907_s13  ;;  %p82_p4 = scmp.ne.s32.totalorder %s907_s13, %s903_s12 }
  0x12   : > { %p1037_p3 = por %p1325_p1, %p54_p0  ;;  %p129_p5 = scmp.eq.s32.totalorder %s1027_s23, 15 }
  0x13   : > { %p135_p6 = scmp.eq.s32.totalorder %s551_s24, 15  ;;  %p1046_p7 = por %p82_p4, %p1325_p1 }
  0x14   : > { %s1343_s26 = scalar_select %p1037_p3, 1, 0 }
  0x15   : > { %s1344_s27 = scalar_select %p1046_p7, 1, 0 }
  0x16   : > { %p552_p8 = scmp.ge.s32.totalorder %s943_s22, 1  ;;  %p1054_p9 = por %p129_p5, %p1327_p2 }
  0x17   : > { %p1058_p10 = por %p135_p6, %p82_p4  ;;  %p142_p11 = scmp.lt.s32.totalorder %s943_s22, 17 }
  0x18   : > { %s1345_s28 = scalar_select %p1054_p9, 1, 0 }
  0x19   : > { %s1347_s29 = scalar_select %p1058_p10, 1, 0 }
  0x1a   : > { %1346 = sst [smem:[#allocation15_spill]] %s1345_s28  ;;  %p1063_p12 = pnand %p552_p8, %p142_p11 }
  0x1b   : > { %1348 = sst [smem:[#allocation16_spill]] %s1347_s29  ;;  %s945_s4 = smov [#allocation7]  }
  0x1c   : > { %s1349_s30 = scalar_select %p1063_p12, 1, 0 }
  0x1d   : > { %s155_s5 = sshll.u32 %s945_s4, 4  ;;  %p592_p13 = pneg %p1063_p12  ;;  %s156_s5 = int_to_ptr.vmem [resolvable:$true] %s155_s5 }
  0x1e   : > { %s31_s7 = sadd.s32 1, %s935_s20  ;;  %s1352_s2 = sld [smem:[#allocation19_spill]] }
  0x1f   : > { %p1071_p0 = pnand %p592_p13, %p1325_p1  ;;  %p1076_p4 = scmp.ge.s32.totalorder %s31_s7, 4 }
  0x21   : > { %s1351_s8 = scalar_select %p1076_p4, 1, 0 }
  0x22   : > { %p727_p6 = pneg %p1071_p0 }
  0x24   : > { %s725_s11 = scalar_lea.hbm %s1352_s2, 64 }
  0x25   : > { %p726_p5 = scmp.ne.s32.totalorder %s1352_s2, %s725_s11  ;;  %p732_p13 = scmp.lt.u32.totalorder %s725_s11, %s1352_s2 }
  0x27   : > { %p728_p8 = pnand %p727_p6, %p726_p5 }
  0x29   : > { %p729_p11 = pneg %p728_p8 }
  0x2b   : > { %p734_p1 = pnand %p732_p13, %p729_p11 }
  0x2d   : > { %737 = shalt.err (!%p734_p1)
}
  0x2e   : > { %s738_s29 = scalar_lea.vmem %s156_s5, 64  ;;  %p746_p7 = scmp.lt.s32.totalorder %s156_s5, %s156_s5 }
  0x2f   : > { %p739_p2 = scmp.ne.s32.totalorder %s156_s5, %s738_s29  ;;  %p747_p3 = scmp.lt.s32.totalorder %s738_s29, %s738_s29 }
  0x31   : > { %p741_p10 = pnand %p739_p2, %p727_p6  ;;  %p748_p12 = por %p747_p3, %p746_p7 }
  0x33   : > { %p742_p9 = pneg %p741_p10 }
  0x35   : > { %p749_p4 = pnand %p748_p12, %p742_p9 }
  0x37   : > { %752 = shalt.err (!%p749_p4)
}
  0x38   : > { %595 = dma.hbm_to_vmem [thread:$0]  (!%p1071_p0), %s1352_s2, 64, %s156_s5, [#allocation6]  }
  0x39   : > { %p1353_p1 = scmp.ne.s32.totalorder %s1351_s8, 0  ;;  %s34_s25 = sadd.s32 1, %s939_s21 }
  0x3a   : > { %s41_s29 = sadd.s32 1, %s923_s17  ;;  %p48_p2 = scmp.ne.s32.totalorder %s923_s17, %s919_s16 }
  0x3b   : > { %s1388_s7 = smov (%p1353_p1, %s31_s7), 0  ;;  %s1390_s25 = smov (!%p1353_p1, %s34_s25), %s939_s21 }
  0x3c   : > { %1354 = sst [smem:[#allocation17_spill]] %s1388_s7  ;;  %p49_p3 = scmp.eq.s32.totalorder %s943_s22, 0 }
  0x3d   : > { %p36_p7 = scmp.ge.s32.totalorder %s1390_s25, 4  ;;  %s65_s6 = ssub.s32 %s935_s20, %s1388_s7 }
  0x3e   : > { %p1110_p9 = por %p49_p3, %p48_p2  ;;  %p1356_p10 = scmp.ne.s32.totalorder %s911_s14, %s907_s13 }
  0x3f   : > { %s1392_s25 = smov (%p36_p7, %s1390_s25), 0  ;;  %p608_p0 = scmp.lt.s32.totalorder %s943_s22, 16 }
  0x40   : > { %p1117_p12 = por %p1356_p10, %p49_p3  ;;  %1358 = sst [smem:[#allocation18_spill]] %s1392_s25 }
  0x41   : > { %s166_s8 = sand.u32 1, %s923_s17   ;;  %s38_s15 = ssub.s32 %s939_s21, %s1392_s25 }
  0x42   : > { %p39_p4 = scmp.eq.s32.totalorder %s38_s15, 0  ;;  %s66_s24 = sor.u32 %s65_s6, %s38_s15 }
  0x43   : > { %p67_p5 = scmp.eq.s32.totalorder %s66_s24, 0  ;;  %s555_s4 = sshll.u32 %s166_s8, 1 }
  0x44   : > { %s1128_s9 = scalar_select %p39_p4, %s923_s17, %s41_s29  }
  0x45   : > { %s1359_s10 = sadd.s32 1, %s911_s14  ;;  %s556_s7 = sshll.u32 %s939_s21, 5 }
  0x46   : > { %s1133_s2 = scalar_select %p67_p5, %s911_s14, %s1359_s10  }
  0x47   : > { %s1139_s28 = scalar_lea.hbm %s1321_s0, %s556_s7  ;;  %s170_s19 = scalar_lea.vmem [#allocation2], %s555_s4 }
  0x48   : > { %s177_s25 = sshll.u32 %s170_s19, 4  ;;  %p1147_p6 = pnand %p608_p0, %p1110_p9  ;;  %s1141_s25 = int_to_ptr.vmem [resolvable:$true] %s177_s25 }
  0x49   : > { %s559_s6 = sshll.u32 %s939_s21, 6  ;;  %p1156_p8 = pnand %p608_p0, %p1117_p12 }
  0x4a   : > { %s167_s19 = scalar_lea.sflag [#allocation3], %s166_s8  ;;  %s753_s7 = scalar_lea.hbm %s1139_s28, 32 }
  0x4b   : > { %p754_p11 = scmp.ne.s32.totalorder %s1139_s28, %s753_s7  ;;  %p755_p13 = pneg %p1147_p6 }
  0x4c   : > { %s758_s24 = scalar_lea.hbm %s1321_s0, 128  ;;  %p759_p3 = scmp.lt.u32.totalorder %s1139_s28, %s1321_s0 }
  0x4d   : > { %p756_p1 = pnand %p755_p13, %p754_p11  ;;  %p760_p7 = scmp.lt.u32.totalorder %s758_s24, %s753_s7 }
  0x4e   : > { %p762_p10 = scmp.lt.u32.totalorder %s753_s7, %s1139_s28 }
  0x4f   : > { %p757_p2 = pneg %p756_p1  ;;  %p761_p9 = por %p760_p7, %p759_p3 }
  0x51   : > { %p763_p12 = por %p762_p10, %p761_p9 }
  0x53   : > { %p764_p0 = pnand %p763_p12, %p757_p2 }
  0x55   : > { %767 = shalt.err (!%p764_p0)
}
  0x56   : > { %s768_s8 = scalar_lea.vmem %s1141_s25, 32  ;;  %s946_s10 = smov [#allocation2]  }
  0x57   : > { %p769_p4 = scmp.ne.s32.totalorder %s1141_s25, %s768_s8  ;;  %s773_s11 = sshll.u32 %s946_s10, 4  ;;  %s774_s11 = int_to_ptr.vmem [resolvable:$false] %s773_s11 }
  0x58   : > { %s775_s15 = scalar_lea.vmem %s774_s11, 64  ;;  %p776_p1 = scmp.lt.s32.totalorder %s1141_s25, %s774_s11 }
  0x59   : > { %p771_p5 = pnand %p769_p4, %p755_p13  ;;  %p777_p3 = scmp.lt.s32.totalorder %s775_s15, %s768_s8 }
  0x5b   : > { %p772_p11 = pneg %p771_p5  ;;  %p778_p7 = por %p777_p3, %p776_p1 }
  0x5d   : > { %p779_p9 = pnand %p778_p7, %p772_p11 }
  0x5f   : > { %782 = shalt.err (!%p779_p9)
}
  0x60   : > { %599 = dma.hbm_to_vmem [thread:$0]  (!%p1147_p6), %s1139_s28, 32, %s1141_s25, %s167_s19  }
  0x61   : > { %s186_s7 = sand.u32 1, %s911_s14   ;;  %s558_s24 = sshll.u32 %s935_s20, 2 }
  0x62   : > { %s557_s5 = sshll.u32 %s186_s7, 6  ;;  %s194_s4 = sadd.s32 %s559_s6, %s558_s24 }
  0x63   : > { %s560_s8 = sshll.u32 %s194_s4, 6  ;;  %s188_s29 = scalar_lea.vmem [#allocation5], %s557_s5 }
  0x64   : > { %s1193_s15 = scalar_lea.hbm %s1322_s1, %s560_s8  ;;  %s197_s12 = sshll.u32 %s188_s29, 4  ;;  %s1195_s12 = int_to_ptr.vmem [resolvable:$true] %s197_s12 }
  0x65   : > { %s1362_s28 = sand.u32 1, %s943_s22   ;;  %s783_s19 = scalar_lea.hbm %s1193_s15, 1024 }
  0x66   : > { %s1199_s25 = scalar_lea.sflag [#allocation6], %s1362_s28  ;;  %p784_p6 = scmp.ne.s32.totalorder %s1193_s15, %s783_s19 }
  0x67   : > { %p785_p13 = pneg %p1156_p8  ;;  %s788_s24 = scalar_lea.hbm %s1322_s1, 16384 }
  0x68   : > { %p789_p12 = scmp.lt.u32.totalorder %s1193_s15, %s1322_s1  ;;  %p790_p0 = scmp.lt.u32.totalorder %s788_s24, %s783_s19 }
  0x69   : > { %p786_p2 = pnand %p785_p13, %p784_p6  ;;  %p792_p5 = scmp.lt.u32.totalorder %s783_s19, %s1193_s15 }
  0x6a   : > { %p791_p4 = por %p790_p0, %p789_p12 }
  0x6b   : > { %p787_p10 = pneg %p786_p2 }
  0x6c   : > { %p793_p11 = por %p792_p5, %p791_p4 }
  0x6e   : > { %p794_p1 = pnand %p793_p11, %p787_p10 }
  0x70   : > { %797 = shalt.err (!%p794_p1)
}
  0x71   : > { %s798_s8 = scalar_lea.vmem %s1195_s12, 1024  ;;  %s947_s10 = smov [#allocation5]  }
  0x72   : > { %p799_p3 = scmp.ne.s32.totalorder %s1195_s12, %s798_s8  ;;  %s803_s11 = sshll.u32 %s947_s10, 4  ;;  %s804_s11 = int_to_ptr.vmem [resolvable:$false] %s803_s11 }
  0x73   : > { %s805_s29 = scalar_lea.vmem %s804_s11, 2048  ;;  %p806_p6 = scmp.lt.s32.totalorder %s1195_s12, %s804_s11 }
  0x74   : > { %p801_p7 = pnand %p799_p3, %p785_p13  ;;  %p807_p2 = scmp.lt.s32.totalorder %s805_s29, %s798_s8 }
  0x76   : > { %p802_p9 = pneg %p801_p7  ;;  %p808_p12 = por %p807_p2, %p806_p6 }
  0x78   : > { %p809_p0 = pnand %p808_p12, %p802_p9 }
  0x7a   : > { %812 = shalt.err (!%p809_p0)
}
  0x7b   : > { %s948_s28 = smov 1024   ;;  %s949_s19 = smov 256  }
  0x7c   : > { %s950_s6 = smov 16   ;;  %p1363_p13 = scmp.ne.s32.totalorder %s1349_s30, 0 }
  0x7d   : > { %602 = dma.hbm_to_vmem [thread:$0]  (!%p1156_p8), %s1193_s15, 1024, %s1195_s12, %s1199_s25, %s948_s28, %s949_s19, %s950_s6  }
  0x7e   : > { %209 = sbr.rel (%p1363_p13) target bundleno = 396 (0x18c), region = 32  ;;  %s211_s7 = sand.u32 (!%p1363_p13), 1, %s919_s16  }
  0x7f   : > { %s1230_s24 = sshll.u32 (!%p1363_p13), %s211_s7, 1  ;;  %s212_s4 = scalar_lea.sflag (!%p1363_p13), [#allocation3], %s211_s7 }
  0x80   : > { %s215_s5 = scalar_lea.vmem (!%p1363_p13), [#allocation2], %s1230_s24  ;;  %p1364_p10 = scmp.ne.s32.totalorder (!%p1363_p13), %s1343_s26, 0 }
  0x85   : > { %886 = dma.done.wait (%p1364_p10), %s212_s4, 32  }
  0x86   : > { %888 = vsyncadd (%p1364_p10), %s212_s4, 4294967264  ;;  %s220_s3 = sand.u32 1, %s1027_s23   ;;  %s1239_s12 = sand.u32 1, %s907_s13  }
  0x87   : > { %s563_s30 = sshll.u32 %s1239_s12, 6  ;;  %s221_s15 = scalar_lea.sflag [#allocation6], %s220_s3 }
  0x88   : > { %s224_s25 = scalar_lea.vmem [#allocation5], %s563_s30  ;;  %p1365_p8 = scmp.ne.s32.totalorder %s1344_s27, 0 }
  0x8a   : > { %890 = dma.done.wait (%p1365_p8), %s221_s15, 1024  }
  0x8b   : > { %892 = vsyncadd (%p1365_p8), %s221_s15, 4294966272  ;;  %p1366_p4 = scmp.eq.s32.totalorder %s1027_s23, 0 }
  0x8d   : > { %894 = dma.done.wait (%p1366_p4), [#allocation6], 64   ;;  %p1367_p5 = pmov %p1366_p4 }
  0x8e   : > { %v951_v0 = vmov 0   ;;  %v705_v1 = vld [vmem:[%s224_s25 + $0x4] ss:$16 sps:$4 sm:$0xff]   ;;  %v707_v2 = vld [vmem:[%s224_s25 + $0xc] ss:$16 sps:$4 sm:$0xff]   ;;  %vm314_vm0 = vcmask 261120  }
  0x8f   : > { %896 = vsyncadd (%p1367_p5), [#allocation6], 4294967232  ;;  %350 = vmatprep.mubr.bf16.mxu0 %v951_v0  ;;  %391 = vmatprep.mubr.bf16.mxu1 %v951_v0  ;;  %v709_v3 = vld [vmem:[%s224_s25] ss:$16 sps:$4 sm:$0xff]   ;;  %v710_v4 = vld [vmem:[%s224_s25 + $0x8] ss:$16 sps:$4 sm:$0xff]  }
  0x90   : > { %704 = vset.pattern.permute.xlu0 %v951_v0  ;;  %318 = vmatprep.subr.bf16.mxu0 %v705_v1  ;;  %v711_v5 = vld [vmem:[%s224_s25 + $0x24] ss:$16 sps:$4 sm:$0xff]   ;;  %v713_v6 = vld [vmem:[%s224_s25 + $0x2c] ss:$16 sps:$4 sm:$0xff]   ;;  %v715_v7 = vld [vmem:[%s224_s25 + $0x20] ss:$16 sps:$4 sm:$0xff]  }
  0x91   : > { %359 = vmatprep.subr.bf16.mxu1 %v707_v2  ;;  %319 = vmatpush1.bf16.msra.mxu0 %v709_v3  ;;  %v716_v8 = vld [vmem:[%s224_s25 + $0x28] ss:$16 sps:$4 sm:$0xff]   ;;  %v268_v9 = vld [vmem:[#allocation7] sm:$0x7]  ;;  %v259_v10 = vld [vmem:[%s215_s5] sm:$0x3] }
  0x92   : > { %360 = vmatpush1.bf16.msra.mxu1 %v710_v4  ;;  %320 = vmatprep.subr.bf16.mxu0 %v711_v5  ;;  %s1368_s23 = sld [smem:[#allocation14_spill]]  ;;  %s565_s26 = sshll.u32 %s1239_s12, 4 }
  0x93   : > { %361 = vmatprep.subr.bf16.mxu1 %v713_v6  ;;  %271 = vperm.xlu0 %704, %v268_v9   ;;  %s577_s27 = sshll.u32 %s927_s18, 2  ;;  %s1369_s11 = sld [smem:[#allocation15_spill]] }
  0x94   : > { %s255_s28 = scalar_lea.vmem [#allocation8], %s565_s26  ;;  %s1370_s24 = sld [smem:[#allocation20_spill]] }
  0x95   : > { %321 = vmatpush1.bf16.msra.mxu0 %v715_v7  ;;  %s431_s19 = sshll.u32 %s255_s28, 4  ;;  %s415_s18 = scalar_lea.sflag [#allocation4], %s1239_s12  ;;  %s1260_s19 = int_to_ptr.vmem [resolvable:$true] %s431_s19 }
  0x96   : > { %362 = vmatpush1.bf16.msra.mxu1 %v716_v8  ;;  %s813_s5 = scalar_lea.vmem %s1260_s19, 256  ;;  %s952_s3 = smov [#allocation8]  }
  0x97   : > { %p814_p11 = scmp.ne.s32.totalorder %s1260_s19, %s813_s5  ;;  %s817_s30 = sshll.u32 %s952_s3, 4  ;;  %s818_s30 = int_to_ptr.vmem [resolvable:$false] %s817_s30 }
  0x98   : > { %574 = vmatmul.mubr.msk.bf16.vlgmr.msra.gmra.mrb[0].mxu0 %vm314_vm0, %v259_v10  ;;  %s578_s8 = sshll.u32 %s1368_s23, 4  ;;  %s819_s15 = scalar_lea.vmem %s818_s30, 512 }
  0x99   : > { %575 = vmatmul.mubr.msk.bf16.vlgmr.msra.gmra.mrb[0].mxu1 %vm314_vm0, %v259_v10  ;;  %s427_s10 = sadd.s32 %s578_s8, %s577_s27  ;;  %p1371_p1 = scmp.ne.s32.totalorder %s1369_s11, 0 }
  0x9a   : > { %s579_s29 = sshll.u32 %s427_s10, 6  ;;  %p820_p9 = scmp.lt.s32.totalorder %s1260_s19, %s818_s30 }
  0x9b   : > { %s1258_s4 = scalar_lea.hbm %s1370_s24, %s579_s29  ;;  %p815_p3 = pnand %p814_p11, %p1371_p1 }
  0x9c   : > { %p821_p6 = scmp.lt.s32.totalorder %s819_s15, %s813_s5 }
  0x9d   : > { %p816_p7 = pneg %p815_p3 }
  0x9e   : > { %p822_p2 = por %p821_p6, %p820_p9 }
  0xa0   : > { %p823_p12 = pnand %p822_p2, %p816_p7 }
 0x112   : > { %v272_v11 = vpop.permute.xlu0 %271 }
 0x16b   : > { %v352_v12 = vpop.f32.mrb[0].mxu0 }
 0x16c   : > { %v393_v13 = vpop.f32.mrb[0].mxu1  ;;  %v353_v14 = vadd.f32 %v352_v12, %v272_v11  ;;  %v354_v16 = vpop.f32.mrb[1].mxu0 }
 0x16d   : > { %v394_v15 = vadd.f32 %v393_v13, %v272_v11  ;;  %v395_v17 = vpop.f32.mrb[1].mxu1  ;;  %v355_v18 = vadd.f32 %v354_v16, %v272_v11  ;;  %v356_v20 = vpop.f32.mrb[2].mxu0 }
 0x16e   : > { %v396_v19 = vadd.f32 %v395_v17, %v272_v11  ;;  %v397_v21 = vpop.f32.mrb[2].mxu1  ;;  %717 = vtanh.f32 %v353_v14  ;;  %v357_v22 = vpop.f32.mrb[3].mxu0 }
 0x16f   : > { %v398_v23 = vpop.f32.mrb[3].mxu1  ;;  %719 = vtanh.f32 %v394_v15 }
 0x170   : > { %721 = vtanh.f32 %v355_v18 }
 0x171   : > { %723 = vtanh.f32 %v396_v19 }
 0x178   : > { %v718_v24 = vpop.eup %717 }
 0x179   : > { %v720_v25 = vpop.eup %719 }
 0x17a   : > { %v722_v26 = vpop.eup %721 }
 0x17b   : > { %v724_v27 = vpop.eup %723  ;;  %v408_v28 = vcombine.low %v718_v24, %v722_v26 }
 0x17c   : > { %v409_v29 = vcombine.low %v720_v25, %v724_v27 }
 0x17d   : > { %412 = vst [vmem:[%s255_s28] sm:$0x77] %v408_v28 }
 0x17e   : > { %413 = vst [vmem:[%s255_s28 + $0x8] sm:$0x77] %v409_v29 }
 0x17f   : > { %826 = shalt.err (!%p823_p12)
}
 0x180   : > { %s827_s12 = scalar_lea.hbm %s1258_s4, 256  ;;  %s831_s26 = scalar_lea.hbm %s1370_s24, 4096 }
 0x181   : > { %p828_p0 = scmp.ne.s32.totalorder %s1258_s4, %s827_s12  ;;  %p832_p8 = scmp.lt.u32.totalorder %s1258_s4, %s1370_s24 }
 0x182   : > { %p833_p4 = scmp.lt.u32.totalorder %s831_s26, %s827_s12  ;;  %p835_p11 = scmp.lt.u32.totalorder %s827_s12, %s1258_s4 }
 0x183   : > { %p829_p13 = pnand %p828_p0, %p1371_p1 }
 0x184   : > { %p834_p5 = por %p833_p4, %p832_p8 }
 0x185   : > { %p830_p10 = pneg %p829_p13 }
 0x186   : > { %p836_p3 = por %p835_p11, %p834_p5 }
 0x188   : > { %p837_p7 = pnand %p836_p3, %p830_p10 }
 0x18a   : > { %840 = shalt.err (!%p837_p7)
}
 0x18b   : > { %590 = dma.vmem_to_hbm [thread:$0]  (%p1371_p1), %s1260_s19, 256, %s1258_s4, %s415_s18  }
 0x18c PF: > { %s1372_s10 = sld [smem:[#allocation13_spill]]  ;;  %s1373_s29 = sld [smem:[#allocation16_spill]] }
 0x18d   : > { %p610_p9 = scmp.ge.s32.totalorder %s943_s22, 2 }
 0x192   : > { %s443_s28 = sand.u32 1, %s1372_s10   ;;  %p1374_p6 = scmp.ne.s32.totalorder %s1373_s29, 0 }
 0x193   : > { %s444_s6 = scalar_lea.sflag [#allocation4], %s443_s28 }
 0x194   : > { %p604_p2 = pnand %p610_p9, %p1374_p6 }
 0x196   : > { %898 = dma.done.wait (!%p604_p2), %s444_s6, 256  }
 0x197   : > { %900 = vsyncadd (!%p604_p2), %s444_s6, 4294967040  ;;  %s22_s22 = sadd.s32 1, %s943_s22   ;;  %s1375_s11 = sld [smem:[#allocation17_spill]] }
 0x198   : > { %p19_p12 = scmp.ge.s32.totalorder %s22_s22, 18   ;;  %s1376_s7 = sld [smem:[#allocation18_spill]] }
 0x199   : > { %s1377_s12 = smov %s907_s13  ;;  %s1378_s13 = smov %s911_s14 }
 0x19a   : > { %s1379_s14 = smov %s1133_s2  ;;  %s1380_s15 = smov %s919_s16 }
 0x19b   : > { %s1381_s16 = smov %s923_s17  ;;  %s1382_s17 = smov %s1128_s9 }
 0x19c   : > { %s1383_s18 = smov %s935_s20  ;;  %s1384_s19 = smov %s939_s21 }
 0x19d   : > { %s1385_s20 = smov %s1375_s11  ;;  %21 = sbr.rel (!%p19_p12) target bundleno = 14 (0xe), region = 94 }
 0x19e   : > { %s1386_s21 = smov %s1376_s7 }
 0x1a4   :  { %449 = vsyncpa [#allocation3], 1 }
 0x1a5   :  { %451 = vsyncpa [#allocation3 + $0x1], 1 }
 0x1a6   :  { %452 = vsyncpa [#allocation6], 1 }
 0x1a7   :  { %454 = vsyncpa [#allocation6 + $0x1], 1 }
 0x1a8   :  { %455 = vsyncpa [#allocation4], 1 }
 0x1a9   :  { %457 = vsyncpa [#allocation4 + $0x1], 1 }

</bundles_post_ra>
